<compile_context>
chip_gen: v5e
topology: v5e:2x2
jax: 0.10.0
libtpu: 0.0.40
codegen_flags: <defaults>
</compile_context>

<pallas_src>
import math
from functools import partial

import jax
import jax.numpy as jnp
from jax.experimental import pallas as pl
from jax.experimental.pallas import tpu as pltpu

LANE = 128  # TPU lane width

_DEVICE_KIND = None


def _max_cout_tile():
    """256-wide output tiles on v6e/v7x (256-wide MXU); 128 on v5e (128x128 MXUs)."""
    global _DEVICE_KIND
    if _DEVICE_KIND is None:
        try:
            _DEVICE_KIND = jax.devices()[0].device_kind.lower()
        except Exception:
            _DEVICE_KIND = ""
    return 128 if "v5" in _DEVICE_KIND else 256


def _round_up(x, m):
    return (x + m - 1) // m * m


def _pick_cout_tile(cout_pad):
    tc = _max_cout_tile()
    return tc if cout_pad % tc == 0 else LANE


# ---------------------------------------------------------------------------
# One-time weight preparation (hoisted out of the forward pass)
# ---------------------------------------------------------------------------
def _flatten_weight(w, cout_pad):
    """(K,K,Cin,Cout) -> (K*K*Cin_pad, Cout_pad) bf16 with per-tap channel padding."""
    k1, k2, ci, co = w.shape
    ci_pad = _round_up(ci, LANE)
    w = jnp.pad(w, ((0, 0), (0, 0), (0, ci_pad - ci), (0, cout_pad - co)))
    return w.reshape(k1 * k2 * ci_pad, cout_pad).astype(jnp.bfloat16)


def prepare_conv(conv):
    """Flatten / pad / cast conv weights ONCE at parameter-load time."""
    w, b = conv["w"], conv["b"]
    cout = w.shape[-1]
    cout_pad = _round_up(cout, LANE)
    wf = _flatten_weight(w, cout_pad)
    bf = jnp.pad(b, (0, cout_pad - cout)).reshape(1, cout_pad).astype(jnp.float32)
    return dict(conv, wf=wf, bf=bf)


def prepare_params(params):
    return {
        "conv_in": prepare_conv(params["conv_in"]),
        "body": [{k: prepare_conv(v) for k, v in blk.items()} for blk in params["body"]],
    }


# ---------------------------------------------------------------------------
# In-kernel helpers
# ---------------------------------------------------------------------------
def _pad_into(scr, val, pad):
    """Write val (h,w,c) into the interior of scr (h+2p, w+2p, cp>=c), zeroing only the
    halo ring and the channel-pad tail (the interior is fully overwritten)."""
    hp, wp, cp = scr.shape
    h, w, c = val.shape
    dt = scr.dtype
    if pad > 0:
        scr[:pad, :, :] = jnp.zeros((pad, wp, cp), dt)
        scr[pad + h:, :, :] = jnp.zeros((hp - pad - h, wp, cp), dt)
        scr[pad:pad + h, :pad, :] = jnp.zeros((h, pad, cp), dt)
        scr[pad:pad + h, pad + w:, :] = jnp.zeros((h, wp - pad - w, cp), dt)
    if cp > c:
        scr[pad:pad + h, pad:pad + w, c:] = jnp.zeros((h, w, cp - c), dt)
    scr[pad:pad + h, pad:pad + w, :c] = val.astype(dt)


def _conv_from_padded(xp, w_ref, k, hout, wout, ch, nout):
    """Accumulating im2col: k dots of contraction k*ch each (one per kernel row) instead
    of one materialized (hout*wout, k*k*ch) patch.  xp: (hp, wp, >=ch) padded bf16."""
    row_c = k * ch
    acc = jnp.zeros((hout * wout, nout), jnp.float32)
    for kh in range(k):
        taps = [xp[kh:kh + hout, kw:kw + wout, :ch] for kw in range(k)]
        patch = jnp.concatenate(taps, axis=-1).reshape(hout * wout, row_c)
        acc = acc + jnp.dot(patch, w_ref[kh * row_c:(kh + 1) * row_c, :],
                            preferred_element_type=jnp.float32)
    return acc


# ---------------------------------------------------------------------------
# Kernel 1: stride-1 KxK conv + bias [+ ReLU] [+ per-(batch,channel) residual]
# ---------------------------------------------------------------------------
def _conv_s1_kernel(x_ref, w_ref, b_ref, *rest, k, pad, apply_relu, has_residual):
    if has_residual:
        r_ref, o_ref, xpad = rest
    else:
        o_ref, xpad = rest
        r_ref = None
    _, hout, wout, tc = o_ref.shape
    cin_pad = xpad.shape[-1]

    _pad_into(xpad, x_ref[0], pad)
    acc = _conv_from_padded(xpad[...], w_ref, k, hout, wout, cin_pad, tc)
    acc = acc + b_ref[...]
    if apply_relu:
        acc = jnp.maximum(acc, 0.0)
    if r_ref is not None:
        acc = acc + r_ref[0]                      # (1, tc) broadcast over H*W
    o_ref[0] = acc.reshape(hout, wout, tc).astype(o_ref.dtype)


def pallas_conv_s1(x, conv, *, apply_relu=False, residual_nc=None):
    """x: (N,H,W,Cin); conv: prepared param dict (w, b, wf, bf).
    residual_nc: optional (N, Cout) additive term broadcast over H,W in-kernel."""
    n, h, w_sp, cin = x.shape
    wf, bf = conv["wf"], conv["bf"]
    k = conv["w"].shape[0]
    cout = conv["w"].shape[-1]
    cout_pad = bf.shape[-1]
    pad = k // 2
    hp, wp = h + 2 * pad, w_sp + 2 * pad
    cin_pad = _round_up(cin, LANE)
    tc = _pick_cout_tile(cout_pad)
    n_ct = cout_pad // tc

    x = x.astype(jnp.bfloat16)
    in_specs = [
        pl.BlockSpec((1, h, w_sp, cin), lambda j, i: (i, 0, 0, 0)),
        pl.BlockSpec((k * k * cin_pad, tc), lambda j, i: (0, j)),
        pl.BlockSpec((1, tc), lambda j, i: (0, j)),
    ]
    args = [x, wf, bf]
    if residual_nc is not None:
        assert residual_nc.shape == (n, cout)
        r = jnp.pad(residual_nc.astype(jnp.float32), ((0, 0), (0, cout_pad - cout)))
        args.append(r.reshape(n, 1, cout_pad))
        in_specs.append(pl.BlockSpec((1, 1, tc), lambda j, i: (i, 0, j)))

    kernel = partial(_conv_s1_kernel, k=k, pad=pad, apply_relu=apply_relu,
                     has_residual=residual_nc is not None)
    out = pl.pallas_call(
        kernel,
        out_shape=jax.ShapeDtypeStruct((n, h, w_sp, cout_pad), jnp.bfloat16),
        grid=(n_ct, n),   # batch innermost: each weight tile is DMA'd once, not per frame
        in_specs=in_specs,
        out_specs=pl.BlockSpec((1, h, w_sp, tc), lambda j, i: (i, 0, 0, j)),
        scratch_shapes=[pltpu.VMEM((hp, wp, cin_pad), jnp.bfloat16)],
        compiler_params=pltpu.CompilerParams(
            dimension_semantics=("parallel", "parallel")),
    )(*args)
    return out[..., :cout] if cout_pad != cout else out


# ---------------------------------------------------------------------------
# Kernel 2: 3x3 stride-2 conv + bias from four (row, col) parity planes
# ---------------------------------------------------------------------------
def _conv_s2_kernel(p00, p01, p10, p11, w_ref, b_ref, o_ref):
    _, hout, wout, tc = o_ref.shape
    cin_pad = p00.shape[-1]
    planes = ((p00[0], p01[0]), (p10[0], p11[0]))
    row_c = 3 * cin_pad
    acc = jnp.zeros((hout * wout, tc), jnp.float32)
    for kh in range(3):
        taps = []
        for kw in range(3):
            plane = planes[kh % 2][kw % 2]
            taps.append(plane[kh // 2:kh // 2 + hout, kw // 2:kw // 2 + wout, :])
        patch = jnp.concatenate(taps, axis=-1).reshape(hout * wout, row_c)
        acc = acc + jnp.dot(patch, w_ref[kh * row_c:(kh + 1) * row_c, :],
                            preferred_element_type=jnp.float32)
    acc = acc + b_ref[...]
    o_ref[0] = acc.reshape(hout, wout, tc).astype(o_ref.dtype)


def pallas_conv_s2(x, conv):
    """3x3, stride-2, zero-pad-1 conv (DownsampleEmbed). `x` must already be
    replicate-padded to even H, W by the caller (as in the PyTorch module)."""
    n, h, w_sp, cin = x.shape
    assert h % 2 == 0 and w_sp % 2 == 0
    wf, bf = conv["wf"], conv["bf"]
    cout = conv["w"].shape[-1]
    cout_pad = bf.shape[-1]
    k = 3
    cin_pad = _round_up(cin, LANE)
    hp, wp = h + 2, w_sp + 2
    hout, wout = (hp - k) // 2 + 1, (wp - k) // 2 + 1
    tc = _pick_cout_tile(cout_pad)
    n_ct = cout_pad // tc

    # TODO(synk): pad + 4 strided slices is an extra XLA HBM pass over the downsample
    # input; could be replaced with an in-kernel strided DMA.
    xp = jnp.pad(x.astype(jnp.bfloat16),
                 ((0, 0), (1, 1), (1, 1), (0, cin_pad - cin)))
    planes = [xp[:, r::2, cpar::2, :] for r in (0, 1) for cpar in (0, 1)]

    plane_specs = [pl.BlockSpec((1,) + p.shape[1:], lambda j, i: (i, 0, 0, 0))
                   for p in planes]
    out = pl.pallas_call(
        _conv_s2_kernel,
        out_shape=jax.ShapeDtypeStruct((n, hout, wout, cout_pad), jnp.bfloat16),
        grid=(n_ct, n),
        in_specs=plane_specs + [
            pl.BlockSpec((k * k * cin_pad, tc), lambda j, i: (0, j)),
            pl.BlockSpec((1, tc), lambda j, i: (0, j)),
        ],
        out_specs=pl.BlockSpec((1, hout, wout, tc), lambda j, i: (i, 0, 0, j)),
        compiler_params=pltpu.CompilerParams(
            dimension_semantics=("parallel", "parallel")),
    )(*planes, wf, bf)
    return out[..., :cout] if cout_pad != cout else out


# ---------------------------------------------------------------------------
# Kernel 3: fused ResnetBlockEmbed (sk=False): in_conv -> block1 -> ReLU -> block2 + skep
# ---------------------------------------------------------------------------
def _resblock_kernel(x_ref, w_in_ref, b_in_ref, w1_ref, b1_ref, w2_ref, b2_ref,
                     wsk_ref, bsk_ref, o_ref, pad_a, pad_b, *, cin_pad, c_pad):
    _, h, w, _ = o_ref.shape

    # x = in_conv(x)
    _pad_into(pad_a, x_ref[0], 1)
    x_act = (_conv_from_padded(pad_a[...], w_in_ref, 3, h, w, cin_pad, c_pad)
             + b_in_ref[...])

    # block1 and skep share the padded in_conv output (pad_b)
    _pad_into(pad_b, x_act.reshape(h, w, c_pad).astype(pad_b.dtype), 1)
    h_act = jnp.maximum(
        _conv_from_padded(pad_b[...], w1_ref, 3, h, w, c_pad, c_pad) + b1_ref[...], 0.0)

    # out = block2(h) + skep(x); pad_a is dead after in_conv, reuse it for padded h
    _pad_into(pad_a, h_act.reshape(h, w, c_pad).astype(pad_a.dtype), 1)
    out = (_conv_from_padded(pad_a[...], w2_ref, 3, h, w, c_pad, c_pad) + b2_ref[...]
           + _conv_from_padded(pad_b[...], wsk_ref, 3, h, w, c_pad, c_pad) + bsk_ref[...])
    o_ref[0] = out.reshape(h, w, c_pad).astype(o_ref.dtype)


def pallas_resblock(x, blk):
    """Fused ResnetBlockEmbed forward (sk=False). Intermediates stay in VMEM."""
    n, h, w_sp, cin = x.shape
    c = blk["block1"]["w"].shape[-1]
    assert blk["in_conv"]["w"].shape[:2] == (3, 3), "fused block kernel assumes ksize == 3"
    assert blk["skep"]["w"].shape[2] == c, \
        "skep only type-checks when in_c == out_c (as in the PyTorch module)"
    hp, wp = h + 2, w_sp + 2
    cin_pad, c_pad = _round_up(cin, LANE), _round_up(c, LANE)

    x = x.astype(jnp.bfloat16)

    def full2d(a):
        return pl.BlockSpec(a.shape, lambda i: (0, 0))

    args = [x,
            blk["in_conv"]["wf"], blk["in_conv"]["bf"],
            blk["block1"]["wf"], blk["block1"]["bf"],
            blk["block2"]["wf"], blk["block2"]["bf"],
            blk["skep"]["wf"], blk["skep"]["bf"]]
    in_specs = ([pl.BlockSpec((1, h, w_sp, cin), lambda i: (i, 0, 0, 0))]
                + [full2d(a) for a in args[1:]])

    kernel = partial(_resblock_kernel, cin_pad=cin_pad, c_pad=c_pad)
    # TODO(synk): production channels need H-strip / Cout / Cin-reduction tiling here.
    out = pl.pallas_call(
        kernel,
        out_shape=jax.ShapeDtypeStruct((n, h, w_sp, c_pad), jnp.bfloat16),
        grid=(n,),
        in_specs=in_specs,
        out_specs=pl.BlockSpec((1, h, w_sp, c_pad), lambda i: (i, 0, 0, 0)),
        scratch_shapes=[pltpu.VMEM((hp, wp, max(cin_pad, c_pad)), jnp.bfloat16),  # xin / h
                        pltpu.VMEM((hp, wp, c_pad), jnp.bfloat16)],               # in_conv out
        compiler_params=pltpu.CompilerParams(dimension_semantics=("parallel",)),
    )(*args)
    return out[..., :c] if c_pad != c else out


# ---------------------------------------------------------------------------
# Pure-JAX references (same bf16-operand / f32-accumulate / bf16-activation convention)
# ---------------------------------------------------------------------------
def _ref_conv_f32(x, conv, strides=(1, 1), padding=None):
    w, b = conv["w"], conv["b"]
    k = w.shape[0]
    if padding is None:
        padding = [(k // 2, k // 2)] * 2
    y = jax.lax.conv_general_dilated(
        x.astype(jnp.bfloat16), w.astype(jnp.bfloat16),
        window_strides=strides, padding=padding,
        dimension_numbers=("NHWC", "HWIO", "NHWC"),
        preferred_element_type=jnp.float32)
    return y + b[None, None, None, :]


def ref_conv_s1(x, conv, *, apply_relu=False, residual_nc=None):
    y = _ref_conv_f32(x, conv)
    if apply_relu:
        y = jnp.maximum(y, 0.0)
    if residual_nc is not None:
        y = y + residual_nc[:, None, None, :].astype(jnp.float32)
    return y.astype(jnp.bfloat16)


def ref_conv_s2(x, conv):
    return _ref_conv_f32(x, conv, strides=(2, 2),
                         padding=[(1, 1), (1, 1)]).astype(jnp.bfloat16)


def ref_resblock(x, blk):
    xin = _ref_conv_f32(x, blk["in_conv"]).astype(jnp.bfloat16)
    h = jnp.maximum(_ref_conv_f32(xin, blk["block1"]), 0.0).astype(jnp.bfloat16)
    out = _ref_conv_f32(h, blk["block2"]) + _ref_conv_f32(xin, blk["skep"])
    return out.astype(jnp.bfloat16)


# ---------------------------------------------------------------------------
# Model glue (matches the PyTorch module structure)
# ---------------------------------------------------------------------------
def fixed_positional_embedding(t, d_model):
    position = jnp.arange(t, dtype=jnp.float32)[:, None]
    div_term = jnp.exp(jnp.arange(0, d_model, 2, dtype=jnp.float32)
                       * (-math.log(10000.0) / d_model))
    sin = jnp.sin(position * div_term)
    cos = jnp.cos(position * div_term)
    return jnp.stack([sin, cos], axis=-1).reshape(t, d_model)  # even/odd interleave


def adapter_forward(params, x_nchw, *, video_length, batched_number, channels,
                    nums_rb, ref_drift=0.5,
                    insertion_weights=(1.0, 1.0, 1.0, 1.0), ops):
    conv_s1, conv_s2, resblock = ops["conv_s1"], ops["conv_s2"], ops["resblock"]
    assert x_nchw.shape[0] == video_length, "pos-embedding add requires N == video_length"
    x = jnp.transpose(x_nchw, (0, 2, 3, 1)).astype(jnp.bfloat16)  # NCHW -> NHWC, bf16 carry
    d_model = channels[0]

    # x = conv_in(x) + pos_embedding * ref_drift (broadcast over H,W inside the kernel)
    pos_nc = fixed_positional_embedding(video_length, d_model) * ref_drift  # (t, d_model)
    x = conv_s1(x, params["conv_in"], residual_nc=pos_nc)

    features = []
    idx = 0
    for i in range(len(channels)):
        for j in range(nums_rb):
            blk = params["body"][idx]
            if i != 0 and j == 0:
                # DownsampleEmbed: replicate-pad H,W to even, then 3x3 stride-2 conv (pad 1)
                _, hh, ww, _ = x.shape
                ph = math.ceil(hh / 2) * 2 - hh
                pw = math.ceil(ww / 2) * 2 - ww
                xrep = jnp.pad(x, ((0, 0), (0, ph), (0, pw), (0, 0)), mode="edge")
                x = conv_s2(xrep, blk["down"])
            x = resblock(x, blk)
            idx += 1
        features.append(jnp.tile(x, (batched_number, 1, 1, 1)))  # x.repeat(batched_number,1,1,1)
    features = [wt * f for wt, f in zip(insertion_weights, features)]
    return [jnp.transpose(f, (0, 3, 1, 2)) for f in features]    # back to NCHW


# ---------------------------------------------------------------------------
# Deterministic parameter init (PyTorch zero-inits conv_in/in_conv/block2; we use
# small random weights so the kernels do non-trivial work)
# ---------------------------------------------------------------------------
def init_conv_params(key, cin, cout, k=3):
    kw, kb = jax.random.split(key)
    w = jax.random.normal(kw, (k, k, cin, cout), jnp.float32) / math.sqrt(k * k * cin)
    b = 0.01 * jax.random.normal(kb, (cout,), jnp.float32)
    return {"w": w, "b": b}


def init_adapter_params(key, *, channels, nums_rb, cin, ksize=3, sk=False, use_conv=True):
    nblocks = len(channels) * nums_rb
    keys = iter(jax.random.split(key, 1 + 5 * nblocks))
    params = {"conv_in": init_conv_params(next(keys), cin, channels[0], 3)}
    body = []
    for i in range(len(channels)):
        for j in range(nums_rb):
            if i != 0 and j == 0:
                in_c, out_c, down = channels[i - 1], channels[i], True
            else:
                in_c, out_c, down = channels[i], channels[i], False
            blk = {}
            if down and use_conv:
                blk["down"] = init_conv_params(next(keys), in_c, in_c, 3)
            if in_c != out_c or sk is False:
                blk["in_conv"] = init_conv_params(next(keys), in_c, out_c, ksize)
            blk["block1"] = init_conv_params(next(keys), out_c, out_c, 3)
            blk["block2"] = init_conv_params(next(keys), out_c, out_c, ksize)
            if sk is False:
                # As in the PyTorch code, skep is declared (in_c -> out_c) but applied to
                # the post-in_conv activation; this only type-checks when in_c == out_c.
                blk["skep"] = init_conv_params(next(keys), in_c, out_c, ksize)
            body.append(blk)
    params["body"] = body
    return params


def _assert_close(a, b, tol, what):
    assert a.shape == b.shape, (what, a.shape, b.shape)
    a = a.astype(jnp.float32)
    b = b.astype(jnp.float32)
    rel = float(jnp.linalg.norm(a - b) / (jnp.linalg.norm(b) + 1e-6))
    assert rel < tol, f"{what}: relative error {rel} >= {tol}"


# ---------------------------------------------------------------------------
if __name__ == "__main__":
    # Small configuration consistent with AdapterEmbed (channels/nums_rb/cin shrunk;
    # equal channels so the sk=False skep shape constraint holds).
    channels = [128, 128, 128, 128]
    nums_rb = 2
    cin = 64
    video_length = 2          # == batch of x (pos-embedding add requires this)
    batched_number = 2
    H = W = 16

    root = jax.random.PRNGKey(0)
    kp, kx = jax.random.split(root)
    params = init_adapter_params(kp, channels=channels, nums_rb=nums_rb, cin=cin,
                                 ksize=3, sk=False, use_conv=True)
    # Weights are flattened / padded / cast to bf16 ONCE here, outside the jitted forward.
    params = prepare_params(params)
    x = jax.random.normal(kx, (video_length, cin, H, W), jnp.float32)

    pallas_ops = dict(conv_s1=pallas_conv_s1, conv_s2=pallas_conv_s2, resblock=pallas_resblock)
    ref_ops = dict(conv_s1=ref_conv_s1, conv_s2=ref_conv_s2, resblock=ref_resblock)

    # --- per-kernel checks (both sides use bf16 operands + bf16 activation carry; only
    #     f32 accumulation order differs) ---------------------------------------------
    x_nhwc = jnp.transpose(x, (0, 2, 3, 1)).astype(jnp.bfloat16)
    pos_nc = fixed_positional_embedding(video_length, channels[0]) * 0.5
    y_p = pallas_conv_s1(x_nhwc, params["conv_in"], residual_nc=pos_nc)
    y_r = ref_conv_s1(x_nhwc, params["conv_in"], residual_nc=pos_nc)
    _assert_close(y_p, y_r, 1e-3, "conv_s1 kernel")

    blk0 = params["body"][0]
    _assert_close(pallas_resblock(y_p, blk0), ref_resblock(y_p, blk0), 3e-3, "resblock kernel")

    dblk = params["body"][nums_rb]   # first down block
    _assert_close(pallas_conv_s2(y_p, dblk["down"]), ref_conv_s2(y_p, dblk["down"]),
                  1e-3, "conv_s2 kernel")

    # --- full forward --------------------------------------------------------------
    fwd = jax.jit(partial(adapter_forward, video_length=video_length,
                          batched_number=batched_number, channels=tuple(channels),
                          nums_rb=nums_rb, ops=pallas_ops))
    fwd_ref = jax.jit(partial(adapter_forward, video_length=video_length,
                              batched_number=batched_number, channels=tuple(channels),
                              nums_rb=nums_rb, ops=ref_ops))

    feats = fwd(params, x)
    jax.block_until_ready(feats)
    feats_ref = fwd_ref(params, x)

    # End-to-end: every intermediate is rounded to bf16 in both pipelines with different
    # f32 accumulation orders; per-kernel checks above catch mis-fused ops.
    for n_feat, (f, fr) in enumerate(zip(feats, feats_ref)):
        _assert_close(f, fr, 1.5e-2, f"feature {n_feat}")

    print("KERNEL_OK")
</pallas_src>

<mosaic_0001>
module attributes {stable_mosaic.version = 11 : i64} {
  func.func @_conv_s1_kernel(%arg0: i32, %arg1: i32, %arg2: memref<1x16x16x64xbf16, #tpu.memory_space<vmem>>, %arg3: memref<1152x128xbf16, #tpu.memory_space<vmem>>, %arg4: memref<1x128xf32, #tpu.memory_space<vmem>>, %arg5: memref<1x1x128xf32, #tpu.memory_space<vmem>>, %arg6: memref<1x16x16x128xbf16, #tpu.memory_space<vmem>>, %arg7: memref<18x18x128xbf16, #tpu.memory_space<vmem>>) attributes {dimension_semantics = [#tpu.dimension_semantics<parallel>, #tpu.dimension_semantics<parallel>], iteration_bounds = array<i64: 1, 2>, scalar_prefetch = 0 : i64, scratch_operands = 1 : i64, tpu.core_type = #tpu.core_type<tc>, window_params = [{transform_indices = @transform_0, window_bounds = array<i64: 1, 16, 16, 64>}, {transform_indices = @transform_1, window_bounds = array<i64: 1152, 128>}, {transform_indices = @transform_2, window_bounds = array<i64: 1, 128>}, {transform_indices = @transform_3, window_bounds = array<i64: 1, 1, 128>}, {transform_indices = @transform_4, window_bounds = array<i64: 1, 16, 16, 128>}]} {
    %c0 = arith.constant 0 : index
    %c0_0 = arith.constant 0 : index
    %c0_1 = arith.constant 0 : index
    %c0_2 = arith.constant 0 : index
    %0 = vector.load %arg2[%c0, %c0_0, %c0_1, %c0_2] : memref<1x16x16x64xbf16, #tpu.memory_space<vmem>>, vector<1x16x16x64xbf16>
    %1 = vector.shape_cast %0 : vector<1x16x16x64xbf16> to vector<16x16x64xbf16>
    %cst = arith.constant 0.000000e+00 : bf16
    %2 = vector.broadcast %cst : bf16 to vector<1x18x128xbf16>
    %c0_3 = arith.constant 0 : index
    %c0_4 = arith.constant 0 : index
    %c0_5 = arith.constant 0 : index
    %3 = vector.load %arg7[%c0_3, %c0_4, %c0_5] : memref<18x18x128xbf16, #tpu.memory_space<vmem>>, vector<1x18x128xbf16>
    tpu.vector_store %arg7[%c0_3, %c0_4, %c0_5], %2 {strides = array<i32>} : memref<18x18x128xbf16, #tpu.memory_space<vmem>>, vector<1x18x128xbf16>,
    %cst_6 = arith.constant 0.000000e+00 : bf16
    %4 = vector.broadcast %cst_6 : bf16 to vector<1x18x128xbf16>
    %c17 = arith.constant 17 : index
    %c0_7 = arith.constant 0 : index
    %c0_8 = arith.constant 0 : index
    %5 = vector.load %arg7[%c17, %c0_7, %c0_8] : memref<18x18x128xbf16, #tpu.memory_space<vmem>>, vector<1x18x128xbf16>
    tpu.vector_store %arg7[%c17, %c0_7, %c0_8], %4 {strides = array<i32>} : memref<18x18x128xbf16, #tpu.memory_space<vmem>>, vector<1x18x128xbf16>,
    %cst_9 = arith.constant 0.000000e+00 : bf16
    %6 = vector.broadcast %cst_9 : bf16 to vector<16x1x128xbf16>
    %c1 = arith.constant 1 : index
    %c0_10 = arith.constant 0 : index
    %c0_11 = arith.constant 0 : index
    %7 = vector.load %arg7[%c1, %c0_10, %c0_11] : memref<18x18x128xbf16, #tpu.memory_space<vmem>>, vector<16x1x128xbf16>
    tpu.vector_store %arg7[%c1, %c0_10, %c0_11], %6 {strides = array<i32>} : memref<18x18x128xbf16, #tpu.memory_space<vmem>>, vector<16x1x128xbf16>,
    %cst_12 = arith.constant 0.000000e+00 : bf16
    %8 = vector.broadcast %cst_12 : bf16 to vector<16x1x128xbf16>
    %c1_13 = arith.constant 1 : index
    %c17_14 = arith.constant 17 : index
    %c0_15 = arith.constant 0 : index
    %9 = vector.load %arg7[%c1_13, %c17_14, %c0_15] : memref<18x18x128xbf16, #tpu.memory_space<vmem>>, vector<16x1x128xbf16>
    tpu.vector_store %arg7[%c1_13, %c17_14, %c0_15], %8 {strides = array<i32>} : memref<18x18x128xbf16, #tpu.memory_space<vmem>>, vector<16x1x128xbf16>,
    %cst_16 = arith.constant 0.000000e+00 : bf16
    %10 = vector.broadcast %cst_16 : bf16 to vector<16x16x64xbf16>
    %c1_17 = arith.constant 1 : index
    %c1_18 = arith.constant 1 : index
    %c64 = arith.constant 64 : index
    %11 = vector.load %arg7[%c1_17, %c1_18, %c64] : memref<18x18x128xbf16, #tpu.memory_space<vmem>>, vector<16x16x64xbf16>
    tpu.vector_store %arg7[%c1_17, %c1_18, %c64], %10 {strides = array<i32>} : memref<18x18x128xbf16, #tpu.memory_space<vmem>>, vector<16x16x64xbf16>,
    %c1_19 = arith.constant 1 : index
    %c1_20 = arith.constant 1 : index
    %c0_21 = arith.constant 0 : index
    %12 = vector.load %arg7[%c1_19, %c1_20, %c0_21] : memref<18x18x128xbf16, #tpu.memory_space<vmem>>, vector<16x16x64xbf16>
    tpu.vector_store %arg7[%c1_19, %c1_20, %c0_21], %1 {strides = array<i32>} : memref<18x18x128xbf16, #tpu.memory_space<vmem>>, vector<16x16x64xbf16>,
    %c0_22 = arith.constant 0 : index
    %c0_23 = arith.constant 0 : index
    %c0_24 = arith.constant 0 : index
    %13 = vector.load %arg7[%c0_22, %c0_23, %c0_24] : memref<18x18x128xbf16, #tpu.memory_space<vmem>>, vector<18x18x128xbf16>
    %cst_25 = arith.constant 0.000000e+00 : f32
    %14 = vector.broadcast %cst_25 : f32 to vector<256x128xf32>
    %15 = vector.extract_strided_slice %13 {offsets = [0, 0, 0], sizes = [16, 16, 128], strides = [1, 1, 1]} : vector<18x18x128xbf16> to vector<16x16x128xbf16>
    %16 = vector.extract_strided_slice %13 {offsets = [0, 1, 0], sizes = [16, 16, 128], strides = [1, 1, 1]} : vector<18x18x128xbf16> to vector<16x16x128xbf16>
    %17 = vector.extract_strided_slice %13 {offsets = [0, 2, 0], sizes = [16, 16, 128], strides = [1, 1, 1]} : vector<18x18x128xbf16> to vector<16x16x128xbf16>
    %18 = tpu.concatenate %15, %16, %17 in 2 : vector<16x16x128xbf16>, vector<16x16x128xbf16>, vector<16x16x128xbf16> -> vector<16x16x384xbf16>
    %19 = vector.shape_cast %18 : vector<16x16x384xbf16> to vector<256x384xbf16>
    %c0_26 = arith.constant 0 : index
    %c0_27 = arith.constant 0 : index
    %20 = vector.load %arg3[%c0_26, %c0_27] : memref<1152x128xbf16, #tpu.memory_space<vmem>>, vector<384x128xbf16>
    %cst_28 = arith.constant dense<0.000000e+00> : vector<256x128xf32>
    %21 = tpu.matmul %19, %20, %cst_28 {dimension_numbers = #tpu.dot_dimension_numbers<[1], [0], [0], [1], [0, 0, 1, 1], [], []>} : vector<256x384xbf16>, vector<384x128xbf16>, vector<256x128xf32> -> vector<256x128xf32>
    %22 = arith.addf %14, %21 : vector<256x128xf32>
    %23 = vector.extract_strided_slice %13 {offsets = [1, 0, 0], sizes = [16, 16, 128], strides = [1, 1, 1]} : vector<18x18x128xbf16> to vector<16x16x128xbf16>
    %24 = vector.extract_strided_slice %13 {offsets = [1, 1, 0], sizes = [16, 16, 128], strides = [1, 1, 1]} : vector<18x18x128xbf16> to vector<16x16x128xbf16>
    %25 = vector.extract_strided_slice %13 {offsets = [1, 2, 0], sizes = [16, 16, 128], strides = [1, 1, 1]} : vector<18x18x128xbf16> to vector<16x16x128xbf16>
    %26 = tpu.concatenate %23, %24, %25 in 2 : vector<16x16x128xbf16>, vector<16x16x128xbf16>, vector<16x16x128xbf16> -> vector<16x16x384xbf16>
    %27 = vector.shape_cast %26 : vector<16x16x384xbf16> to vector<256x384xbf16>
    %c384 = arith.constant 384 : index
    %c0_29 = arith.constant 0 : index
    %28 = vector.load %arg3[%c384, %c0_29] : memref<1152x128xbf16, #tpu.memory_space<vmem>>, vector<384x128xbf16>
    %cst_30 = arith.constant dense<0.000000e+00> : vector<256x128xf32>
    %29 = tpu.matmul %27, %28, %cst_30 {dimension_numbers = #tpu.dot_dimension_numbers<[1], [0], [0], [1], [0, 0, 1, 1], [], []>} : vector<256x384xbf16>, vector<384x128xbf16>, vector<256x128xf32> -> vector<256x128xf32>
    %30 = arith.addf %22, %29 : vector<256x128xf32>
    %31 = vector.extract_strided_slice %13 {offsets = [2, 0, 0], sizes = [16, 16, 128], strides = [1, 1, 1]} : vector<18x18x128xbf16> to vector<16x16x128xbf16>
    %32 = vector.extract_strided_slice %13 {offsets = [2, 1, 0], sizes = [16, 16, 128], strides = [1, 1, 1]} : vector<18x18x128xbf16> to vector<16x16x128xbf16>
    %33 = vector.extract_strided_slice %13 {offsets = [2, 2, 0], sizes = [16, 16, 128], strides = [1, 1, 1]} : vector<18x18x128xbf16> to vector<16x16x128xbf16>
    %34 = tpu.concatenate %31, %32, %33 in 2 : vector<16x16x128xbf16>, vector<16x16x128xbf16>, vector<16x16x128xbf16> -> vector<16x16x384xbf16>
    %35 = vector.shape_cast %34 : vector<16x16x384xbf16> to vector<256x384xbf16>
    %c768 = arith.constant 768 : index
    %c0_31 = arith.constant 0 : index
    %36 = vector.load %arg3[%c768, %c0_31] : memref<1152x128xbf16, #tpu.memory_space<vmem>>, vector<384x128xbf16>
    %cst_32 = arith.constant dense<0.000000e+00> : vector<256x128xf32>
    %37 = tpu.matmul %35, %36, %cst_32 {dimension_numbers = #tpu.dot_dimension_numbers<[1], [0], [0], [1], [0, 0, 1, 1], [], []>} : vector<256x384xbf16>, vector<384x128xbf16>, vector<256x128xf32> -> vector<256x128xf32>
    %38 = arith.addf %30, %37 : vector<256x128xf32>
    %c0_33 = arith.constant 0 : index
    %c0_34 = arith.constant 0 : index
    %39 = vector.load %arg4[%c0_33, %c0_34] : memref<1x128xf32, #tpu.memory_space<vmem>>, vector<1x128xf32>
    %40 = vector.broadcast %39 : vector<1x128xf32> to vector<256x128xf32>
    %41 = arith.addf %38, %40 : vector<256x128xf32>
    %c0_35 = arith.constant 0 : index
    %c0_36 = arith.constant 0 : index
    %c0_37 = arith.constant 0 : index
    %42 = vector.load %arg5[%c0_35, %c0_36, %c0_37] : memref<1x1x128xf32, #tpu.memory_space<vmem>>, vector<1x1x128xf32>
    %43 = vector.shape_cast %42 : vector<1x1x128xf32> to vector<1x128xf32>
    %44 = vector.broadcast %43 : vector<1x128xf32> to vector<256x128xf32>
    %45 = arith.addf %41, %44 : vector<256x128xf32>
    %46 = vector.shape_cast %45 : vector<256x128xf32> to vector<16x16x128xf32>
    %47 = arith.truncf %46 : vector<16x16x128xf32> to vector<16x16x128xbf16>
    %c0_38 = arith.constant 0 : index
    %c0_39 = arith.constant 0 : index
    %c0_40 = arith.constant 0 : index
    %c0_41 = arith.constant 0 : index
    %48 = vector.load %arg6[%c0_38, %c0_39, %c0_40, %c0_41] : memref<1x16x16x128xbf16, #tpu.memory_space<vmem>>, vector<1x16x16x128xbf16>
    %49 = vector.shape_cast %48 : vector<1x16x16x128xbf16> to vector<16x16x128xbf16>
    %50 = vector.shape_cast %47 : vector<16x16x128xbf16> to vector<1x16x16x128xbf16>
    tpu.vector_store %arg6[%c0_38, %c0_39, %c0_40, %c0_41], %50 {strides = array<i32>} : memref<1x16x16x128xbf16, #tpu.memory_space<vmem>>, vector<1x16x16x128xbf16>,
    return
  }
  func.func @transform_0(%arg0: i32, %arg1: i32) -> (i32, i32, i32, i32) {
    %c0_i32 = arith.constant 0 : i32
    %c0_i32_0 = arith.constant 0 : i32
    %c0_i32_1 = arith.constant 0 : i32
    %c0_i32_2 = arith.constant 0 : i32
    return %arg1, %c0_i32, %c0_i32_0, %c0_i32_1 : i32, i32, i32, i32
  }
  func.func @transform_1(%arg0: i32, %arg1: i32) -> (i32, i32) {
    %c0_i32 = arith.constant 0 : i32
    %c0_i32_0 = arith.constant 0 : i32
    return %c0_i32, %arg0 : i32, i32
  }
  func.func @transform_2(%arg0: i32, %arg1: i32) -> (i32, i32) {
    %c0_i32 = arith.constant 0 : i32
    %c0_i32_0 = arith.constant 0 : i32
    return %c0_i32, %arg0 : i32, i32
  }
  func.func @transform_3(%arg0: i32, %arg1: i32) -> (i32, i32, i32) {
    %c0_i32 = arith.constant 0 : i32
    %c0_i32_0 = arith.constant 0 : i32
    return %arg1, %c0_i32, %arg0 : i32, i32, i32
  }
  func.func @transform_4(%arg0: i32, %arg1: i32) -> (i32, i32, i32, i32) {
    %c0_i32 = arith.constant 0 : i32
    %c0_i32_0 = arith.constant 0 : i32
    %c0_i32_1 = arith.constant 0 : i32
    return %arg1, %c0_i32, %c0_i32_0, %arg0 : i32, i32, i32, i32
  }
}

</mosaic_0001>

<bundles_post_ra>
// kernel: tpu_custom_call.1
= control target key start
LH: loop header
LB: loop body
LE: loop exit
PB: predicated region body
PF: predicated region fallthrough
CT: control target
= control target key end

     0   :  { %s5434_s0 = inlined_call_operand.hbm [shape: bf16[2,16,16,64], index: 0, kind: input, shape index: {}]   ;;  %s5435_s1 = inlined_call_operand.hbm [shape: bf16[1152,128], index: 1, kind: input, shape index: {}]   ;;  %s5436_s2 = inlined_call_operand.hbm [shape: f32[1,128], index: 2, kind: input, shape index: {}]   ;;  %s5437_s3 = inlined_call_operand.vmem [shape: f32[2,1,128], index: 3, kind: input, shape index: {}]   ;;  %s5438_s4 = inlined_call_operand.hbm [shape: bf16[2,16,16,128], index: 4, kind: output, shape index: {}]  }
   0x1   :  { %5455 = sst [smem:[#allocation42_spill]] %s5435_s1 }
   0x2   :  { %9 = vsyncpa [#allocation4], 0 }
   0x3   :  { %11 = vsyncpa [#allocation4 + $0x1], 0 }
   0x4   :  { %12 = vsyncpa [#allocation7], 0 }
   0x5   :  { %13 = vsyncpa [#allocation5], 0 }
   0x6   :  { %15 = vsyncpa [#allocation5 + $0x1], 0  ;;  %s4108_s15 = smov 0   ;;  %s4110_s16 = smov 0  }
   0x7   :  { %s4112_s17 = smov 0   ;;  %s4114_s18 = smov 0  }
   0x8   :  { %s4116_s19 = smov 0   ;;  %s4118_s20 = smov 0  }
   0x9 LB: > { %s3202_s21 = sadd.s32 4294967295, %s4074_s20   ;;  %s3203_s22 = sadd.s32 4294967294, %s4074_s20   ;;  %s4074_s20 = sphi %s4118_s20, %s21_s20   ;;  %s4070_s19 = sphi %s4116_s19, %s5539_s19   ;;  %s4066_s18 = sphi %s4114_s18, %s5538_s18   ;;  %s4062_s17 = sphi %s4112_s17, %s5537_s17   ;;  %s4058_s16 = sphi %s4110_s16, %s5536_s16   ;;  %s4054_s15 = sphi %s4108_s15, %s5535_s15  }
   0xa   : > { %p53_p0 = scmp.ne.s32.totalorder %s4058_s16, %s4054_s15  ;;  %p4142_p1 = scmp.eq.s32.totalorder %s3202_s21, 0 }
   0xb   : > { %p165_p2 = scmp.eq.s32.totalorder %s3203_s22, 1  ;;  %p3204_p4 = scmp.ge.s32.totalorder %s4074_s20, 1 }
   0xc   : > { %p4148_p3 = por %p4142_p1, %p53_p0  ;;  %p172_p6 = scmp.lt.s32.totalorder %s4074_s20, 3 }
   0xd   : > { %p4153_p5 = por %p165_p2, %p53_p0  ;;  %s5459_s1 = sld [smem:[#allocation42_spill]] }
   0xe   : > { %p4161_p7 = pnand %p3204_p4, %p172_p6  ;;  %s4076_s30 = smov [#allocation6]  }
   0xf   : > { %s187_s5 = sshll.u32 %s4076_s30, 4  ;;  %p3207_p10 = scmp.ge.s32.totalorder %s4074_s20, 2  ;;  %s188_s5 = int_to_ptr.vmem [resolvable:$true] %s187_s5 }
  0x10   : > { %p3804_p8 = pneg %p4161_p7  ;;  %s201_s8 = sshll.u32 %s5436_s2, 4  ;;  %s202_s8 = int_to_ptr.hbm [resolvable:$true] %s201_s8 }
  0x11   : > { %s5439_s9 = smov 64   ;;  %s4078_s10 = smov 4  }
  0x12   : > { %p3805_p9 = pnand %p3804_p8, %p4142_p1  ;;  %s4079_s11 = smov [#allocation8]  }
  0x13   : > { %s185_s28 = sshll.u32 %s5459_s1, 4  ;;  %s203_s12 = sshll.u32 %s4079_s11, 4  ;;  %s186_s28 = int_to_ptr.hbm [resolvable:$true] %s185_s28  ;;  %s204_s12 = int_to_ptr.vmem [resolvable:$true] %s203_s12 }
  0x14   : > { %3807 = dma.hbm_to_vmem [thread:$0]  (!%p3805_p9), %s186_s28, 9216, %s188_s5, [#allocation7], %s5439_s9, %s5439_s9, %s4078_s10  }
  0x15   : > { %3810 = dma.hbm_to_vmem [thread:$0]  (!%p3805_p9), %s202_s8, 16, %s204_s12, [#allocation7]  }
  0x16   : > { %p159_p11 = scmp.eq.s32.totalorder %s3202_s21, 1  ;;  %s30_s13 = sadd.s32 1, %s4070_s19 }
  0x17   : > { %p31_p12 = scmp.ge.s32.totalorder %s30_s13, 2  ;;  %s40_s14 = sadd.s32 1, %s4062_s17 }
  0x18   : > { %p47_p13 = scmp.ne.s32.totalorder %s4062_s17, %s4058_s16  ;;  %p48_p0 = scmp.eq.s32.totalorder %s4074_s20, 0 }
  0x19   : > { %s5541_s13 = smov (%p31_p12, %s30_s13), 0  ;;  %p3821_p4 = scmp.lt.s32.totalorder %s4074_s20, 2 }
  0x1a   : > { %p4183_p2 = por %p159_p11, %p47_p13  ;;  %s37_s26 = ssub.s32 %s4070_s19, %s5541_s13 }
  0x1b   : > { %s214_s27 = sand.u32 1, %s4062_s17   ;;  %p38_p6 = scmp.eq.s32.totalorder %s37_s26, 0 }
  0x1c   : > { %p49_p8 = por %p48_p0, %p47_p13  ;;  %s3208_s28 = sshll.u32 %s214_s27, 7 }
  0x1d   : > { %s3581_s21 = sshll.u32 %s4070_s19, 7  ;;  %s218_s11 = scalar_lea.vmem [#allocation3], %s3208_s28 }
  0x1e   : > { %s4193_s30 = scalar_select %p38_p6, %s4062_s17, %s40_s14  }
  0x1f   : > { %s223_s7 = scalar_lea.hbm %s5434_s0, %s3581_s21  ;;  %s226_s12 = sshll.u32 %s218_s11, 4  ;;  %s227_s12 = int_to_ptr.vmem [resolvable:$true] %s226_s12 }
  0x20   : > { %s224_s8 = sshll.u32 %s223_s7, 4  ;;  %p3812_p9 = pnand %p3821_p4, %p49_p8  ;;  %s225_s8 = int_to_ptr.hbm [resolvable:$true] %s224_s8 }
  0x21   : > { %s215_s9 = scalar_lea.sflag [#allocation4], %s214_s27  ;;  %s5462_s1 = smov 64  }
  0x22   : > { %3814 = dma.hbm_to_vmem [thread:$0]  (!%p3812_p9), %s225_s8, 2048, %s227_s12, %s215_s9, %s5462_s1, %s5462_s1, %s4078_s10  }
  0x23   : > { %247 = sbr.rel (%p4161_p7) target bundleno = 825 (0x339), region = 36 }
  0x28   : > { %s4206_s14 = sand.u32 1, %s4058_s16  }
  0x29   : > { %s3212_s26 = sshll.u32 %s4206_s14, 7  ;;  %s250_s28 = scalar_lea.sflag [#allocation4], %s4206_s14 }
  0x2a   : > { %s4212_s21 = scalar_lea.vmem [#allocation3], %s3212_s26 }
  0x2b   : > { %4041 = dma.done.wait (%p4148_p3), %s250_s28, 2048  }
  0x2c   : > { %4043 = vsyncadd (%p4148_p3), %s250_s28, 4294965248 }
  0x2d   : > { %4045 = dma.done.wait (%p4142_p1), [#allocation7], 9232  }
  0x2e   : > { %4047 = vsyncadd (%p4142_p1), [#allocation7], 4294958064  ;;  %vm443_vm0 = vcmask 1043968   ;;  %v4080_v0 = vmov 0   ;;  %vm342_vm1 = vcmask 1040384   ;;  %v3631_v1 = vld [vmem:[#allocation6 + $0xf8] sm:$0xff] }
  0x2f   : > { %449 = vst.msk [vmem:[#allocation2 + $0x10] sm:$0xf] %vm443_vm0, %v4080_v0  ;;  %vm343_vm2 = vsmask.f32 256  ;;  %vm560_vm4 = vsmask.f32 4368  ;;  %1737 = vmatpush.bf16.msra.mxu0 %v3631_v1  ;;  %3768 = vmatpush.bf16.msra.mxu1 %v3631_v1 }
  0x30   : > { %334 = vst [vmem:[#allocation2] sm:$0xf] %v4080_v0  ;;  %vm4231_vm3 = vmand %vm342_vm1, %vm343_vm2  ;;  %v3630_v3 = vld [vmem:[#allocation6 + $0xf0] sm:$0xff]  ;;  %v4237_v4 = vld [vmem:[%s4212_s21] sm:$0xf]  ;;  %3769 = vmatpush.bf16.msra.mxu2 %v3631_v1  ;;  %3770 = vmatpush.bf16.msra.mxu3 %v3631_v1  ;;  %vm882_vm8 = vcmask 519168  }
  0x31   : > { %335 = vst [vmem:[#allocation2 + $0x4] sm:$0xf] %v4080_v0  ;;  %v303_v5 = vld [vmem:[%s4212_s21 + $0x4] sm:$0xf]  ;;  %v345_v6 = vld [vmem:[#allocation2 + $0xc] sm:$0x1]  ;;  %vm4257_vm6 = vmor %vm343_vm2, %vm560_vm4 }
  0x32   : > { %336 = vst [vmem:[#allocation2 + $0x8] sm:$0x1] %v4080_v0  ;;  %v563_v7 = vshrl.u32 %v4237_v4, 16  ;;  %v346_v8 = vsel %vm4231_vm3, 0, %v345_v6  ;;  %v571_v9 = vshrl.u32 %v303_v5, 16  ;;  %v574_v10 = vshll.u32 %v303_v5, 16 }
  0x33   : > { %338 = vst [vmem:[#allocation2 + $0xcc] sm:$0xf] %v4080_v0  ;;  %v4248_v12 = vld [vmem:[%s4212_s21 + $0x20] sm:$0xf]  ;;  %1738 = vmatpush.bf16.msra.mxu0 %v3630_v3  ;;  %3771 = vmatpush.bf16.msra.mxu1 %v3630_v3  ;;  %v3629_v13 = vld [vmem:[#allocation6 + $0xe8] sm:$0xff]  ;;  %v3627_v30 = vld [vmem:[#allocation6 + $0xd8] sm:$0xff] }
  0x34   : > { %339 = vst [vmem:[#allocation2 + $0xd0] sm:$0xf] %v4080_v0  ;;  %v565_v11 = vrot.slane %v563_v7, 7  ;;  %v4250_v14 = vrot.slane %v571_v9, 7  ;;  %v311_v15 = vld [vmem:[%s4212_s21 + $0x24] sm:$0xf]  ;;  %3772 = vmatpush.bf16.msra.mxu2 %v3630_v3  ;;  %3773 = vmatpush.bf16.msra.mxu3 %v3630_v3 }
  0x35   : > { %340 = vst [vmem:[#allocation2 + $0xd4] sm:$0x1] %v4080_v0  ;;  %vm393_vm5 = vsmask.f32 7938  ;;  %v631_v18 = vshrl.u32 %v4248_v12, 16  ;;  %v639_v20 = vshrl.u32 %v311_v15, 16 }
  0x36   : > { %458 = vst.msk [vmem:[#allocation2 + $0x1c] sm:$0xf] %vm443_vm0, %v4080_v0  ;;  %v569_v17 = vrot.slane %v565_v11, 4  ;;  %v576_v19 = vor.u32 %v574_v10, %v4250_v14  ;;  %v4270_v21 = vld [vmem:[%s4212_s21 + $0x40] sm:$0xf]  ;;  %vm4274_vm7 = vmand %vm443_vm0, %vm393_vm5  ;;  %v642_v28 = vshll.u32 %v311_v15, 16 }
  0x37   : > { %465 = vst.msk [vmem:[#allocation2 + $0x28] sm:$0xf] %vm443_vm0, %v4080_v0  ;;  %1739 = vmatpush.bf16.msra.mxu0 %v3629_v13  ;;  %3774 = vmatpush.bf16.msra.mxu1 %v3629_v13  ;;  %v3628_v22 = vld [vmem:[#allocation6 + $0xe0] sm:$0xff]  ;;  %v4284_v26 = vrot.slane %v631_v18, 7  ;;  %v4286_v27 = vrot.slane %v639_v20, 7  ;;  %v699_v29 = vshrl.u32 %v4270_v21, 16  ;;  %vm4329_vm9 = vmand %vm882_vm8, %vm393_vm5 }
  0x38   : > { %347 = vst [vmem:[#allocation2 + $0xc] sm:$0x1] %v346_v8  ;;  %v577_v24 = vsel %vm4257_vm6, %v569_v17, %v576_v19  ;;  %v319_v25 = vld [vmem:[%s4212_s21 + $0x44] sm:$0xf]  ;;  %3775 = vmatpush.bf16.msra.mxu2 %v3629_v13  ;;  %3776 = vmatpush.bf16.msra.mxu3 %v3629_v13  ;;  %v566_v32 = vshll.u32 %v4237_v4, 16  ;;  %v634_v46 = vshll.u32 %v4248_v12, 16  ;;  %vm4520_vm10 = vmand %vm342_vm1, %vm393_vm5 }
  0x39   : > { %472 = vst.msk [vmem:[#allocation2 + $0x34] sm:$0xf] %vm443_vm0, %v4080_v0  ;;  %v357_v33 = vld [vmem:[#allocation2 + $0x3c] sm:$0x1]  ;;  %v707_v34 = vshrl.u32 %v319_v25, 16  ;;  %v4296_v37 = vrot.slane %v699_v29, 7  ;;  %v644_v42 = vor.u32 %v642_v28, %v4286_v27 }
  0x3a   : > { %479 = vst.msk [vmem:[#allocation2 + $0x40] sm:$0xf] %vm443_vm0, %v4080_v0  ;;  %v369_v36 = vld [vmem:[#allocation2 + $0x6c] sm:$0x1]  ;;  %v710_v39 = vshll.u32 %v319_v25, 16  ;;  %v637_v41 = vrot.slane %v4284_v26, 4  ;;  %v568_v45 = vor.u32 %v566_v32, %v565_v11 }
  0x3b   : > { %486 = vst.msk [vmem:[#allocation2 + $0x4c] sm:$0xf] %vm443_vm0, %v4080_v0  ;;  %1740 = vmatpush.bf16.msra.mxu0 %v3628_v22  ;;  %3777 = vmatpush.bf16.msra.mxu1 %v3628_v22  ;;  %v4298_v38 = vrot.slane %v707_v34, 7  ;;  %v4301_v40 = vld [vmem:[%s4212_s21 + $0x60] sm:$0xf]  ;;  %v358_v48 = vsel %vm4231_vm3, 0, %v357_v33 }
  0x3c   : > { %493 = vst.msk [vmem:[#allocation2 + $0x58] sm:$0xf] %vm443_vm0, %v4080_v0  ;;  %3778 = vmatpush.bf16.msra.mxu2 %v3628_v22  ;;  %3779 = vmatpush.bf16.msra.mxu3 %v3628_v22  ;;  %v327_v43 = vld [vmem:[%s4212_s21 + $0x64] sm:$0xf]  ;;  %v767_v44 = vshrl.u32 %v4301_v40, 16  ;;  %v702_v49 = vshll.u32 %v4270_v21, 16  ;;  %v645_v58 = vsel %vm4257_vm6, %v637_v41, %v644_v42 }
  0x3d   : > { %500 = vst.msk [vmem:[#allocation2 + $0x64] sm:$0xf] %vm443_vm0, %v4080_v0  ;;  %v775_v47 = vshrl.u32 %v327_v43, 16  ;;  %v778_v51 = vshll.u32 %v327_v43, 16  ;;  %v3626_v52 = vld [vmem:[#allocation6 + $0xd0] sm:$0xff]  ;;  %v370_v53 = vsel %vm4231_vm3, 0, %v369_v36  ;;  %v712_v55 = vor.u32 %v710_v39, %v4298_v38 }
  0x3e   : > { %888 = vst.msk [vmem:[#allocation2 + $0x10] sm:$0xf] %vm882_vm8, %v577_v24  ;;  %v4317_v50 = vrot.slane %v767_v44, 7  ;;  %v705_v54 = vrot.slane %v4296_v37, 4  ;;  %v381_v59 = vld [vmem:[#allocation2 + $0x9c] sm:$0x1] }
  0x3f   : > { %v445_v31 = vld [vmem:[#allocation2 + $0xc] sm:$0xf]  ;;  %507 = vst.msk [vmem:[#allocation2 + $0x70] sm:$0xf] %vm443_vm0, %v4080_v0  ;;  %1741 = vmatpush.bf16.msra.mxu0 %v3627_v30  ;;  %3780 = vmatpush.bf16.msra.mxu1 %v3627_v30  ;;  %v4325_v56 = vrot.slane %v775_v47, 7  ;;  %v770_v60 = vshll.u32 %v4301_v40, 16 }
  0x40   : > { %v446_v35 = vsel %vm4274_vm7, 0, %v445_v31  ;;  %514 = vst.msk [vmem:[#allocation2 + $0x7c] sm:$0xf] %vm443_vm0, %v4080_v0  ;;  %3781 = vmatpush.bf16.msra.mxu2 %v3627_v30  ;;  %3782 = vmatpush.bf16.msra.mxu3 %v3627_v30  ;;  %v773_v61 = vrot.slane %v4317_v50, 4  ;;  %v4343_v63 = vld [vmem:[%s4212_s21 + $0x8] sm:$0xf] }
  0x41   : > { %447 = vst [vmem:[#allocation2 + $0xc] sm:$0xf] %v446_v35  ;;  %v780_v62 = vor.u32 %v778_v51, %v4325_v56  ;;  %v305_v1 = vld [vmem:[%s4212_s21 + $0xc] sm:$0xf]  ;;  %v348_v4 = vld [vmem:[#allocation2 + $0x18] sm:$0x1] }
  0x42   : > { %521 = vst.msk [vmem:[#allocation2 + $0x88] sm:$0xf] %vm443_vm0, %v4080_v0  ;;  %v3625_v5 = vld [vmem:[#allocation6 + $0xc8] sm:$0xff]  ;;  %v382_v7 = vsel %vm4231_vm3, 0, %v381_v59  ;;  %v580_v8 = vshrl.u32 %v4343_v63, 16  ;;  %v588_v9 = vshrl.u32 %v305_v1, 16 }
  0x43   : > { %528 = vst.msk [vmem:[#allocation2 + $0x94] sm:$0xf] %vm443_vm0, %v4080_v0  ;;  %1742 = vmatpush.bf16.msra.mxu0 %v3626_v52  ;;  %3783 = vmatpush.bf16.msra.mxu1 %v3626_v52  ;;  %v591_v10 = vshll.u32 %v305_v1, 16  ;;  %v360_v11 = vld [vmem:[#allocation2 + $0x48] sm:$0x1]  ;;  %v3624_v13 = vld [vmem:[#allocation6 + $0xc0] sm:$0xff]  ;;  %v781_v15 = vsel %vm4257_vm6, %v773_v61, %v780_v62 }
  0x44   : > { %535 = vst.msk [vmem:[#allocation2 + $0xa0] sm:$0xf] %vm443_vm0, %v4080_v0  ;;  %3784 = vmatpush.bf16.msra.mxu2 %v3626_v52  ;;  %3785 = vmatpush.bf16.msra.mxu3 %v3626_v52  ;;  %v349_v17 = vsel %vm4231_vm3, 0, %v348_v4  ;;  %v4358_v18 = vrot.slane %v580_v8, 7  ;;  %v4361_v19 = vld [vmem:[%s4212_s21 + $0x28] sm:$0xf] }
  0x45   : > { %542 = vst.msk [vmem:[#allocation2 + $0xac] sm:$0xf] %vm443_vm0, %v4080_v0  ;;  %v4364_v20 = vrot.slane %v588_v9, 7  ;;  %v313_v22 = vld [vmem:[%s4212_s21 + $0x2c] sm:$0xf]  ;;  %v648_v24 = vshrl.u32 %v4361_v19, 16 }
  0x46   : > { %549 = vst.msk [vmem:[#allocation2 + $0xb8] sm:$0xf] %vm443_vm0, %v4080_v0  ;;  %v3647_v25 = vld [vmem:[#allocation6 + $0x178] sm:$0xff]  ;;  %v586_v29 = vrot.slane %v4358_v18, 4  ;;  %v361_v30 = vsel %vm4231_vm3, 0, %v360_v11  ;;  %v656_v31 = vshrl.u32 %v313_v22, 16 }
  0x47   : > { %556 = vst.msk [vmem:[#allocation2 + $0xc4] sm:$0xf] %vm443_vm0, %v4080_v0  ;;  %v713_v0 = vsel %vm4257_vm6, %v705_v54, %v712_v55  ;;  %1743 = vmatpush.bf16.msra.mxu0 %v3625_v5  ;;  %3786 = vmatpush.bf16.msra.mxu1 %v3625_v5  ;;  %v3607_v28 = vld [vmem:[#allocation6 + $0x38] sm:$0xff]  ;;  %v593_v33 = vor.u32 %v591_v10, %v4364_v20  ;;  %v4373_v34 = vrot.slane %v648_v24, 7  ;;  %v659_v35 = vshll.u32 %v313_v22, 16  ;;  %v3646_v52 = vld [vmem:[#allocation6 + $0x170] sm:$0xff] }
  0x48   : > { %v884_v3 = vld [vmem:[#allocation2 + $0xc] sm:$0xf]  ;;  %359 = vst [vmem:[#allocation2 + $0x3c] sm:$0x1] %v358_v48  ;;  %3787 = vmatpush.bf16.msra.mxu2 %v3625_v5  ;;  %3788 = vmatpush.bf16.msra.mxu3 %v3625_v5  ;;  %v3639_v32 = vld [vmem:[#allocation6 + $0x138] sm:$0xff]  ;;  %v4378_v42 = vrot.slane %v656_v31, 7  ;;  %v704_v22 = vor.u32 %v702_v49, %v4296_v37  ;;  %v772_v49 = vor.u32 %v770_v60, %v4317_v50 }
  0x49   : > { %v885_v6 = vsel %vm4329_vm9, %v568_v45, %v884_v3  ;;  %918 = vst.msk [vmem:[#allocation2 + $0x40] sm:$0xf] %vm882_vm8, %v645_v58  ;;  %v4376_v36 = vld [vmem:[%s4212_s21 + $0x48] sm:$0xf]  ;;  %v3615_v41 = vld [vmem:[#allocation6 + $0x78] sm:$0xff]  ;;  %v594_v45 = vsel %vm4257_vm6, %v586_v29, %v593_v33  ;;  %v654_v47 = vrot.slane %v4373_v34, 4 }
  0x4a   : > { %886 = vst [vmem:[#allocation2 + $0xc] sm:$0xf] %v885_v6  ;;  %v716_v43 = vshrl.u32 %v4376_v36, 16  ;;  %v321_v48 = vld [vmem:[%s4212_s21 + $0x4c] sm:$0xf]  ;;  %v583_v59 = vshll.u32 %v4343_v63, 16 }
  0x4b   : > { %371 = vst [vmem:[#allocation2 + $0x6c] sm:$0x1] %v370_v53  ;;  %1744 = vmatpush.bf16.msra.mxu0 %v3624_v13  ;;  %3789 = vmatpush.bf16.msra.mxu1 %v3624_v13  ;;  %v661_v53 = vor.u32 %v659_v35, %v4378_v42  ;;  %v372_v54 = vld [vmem:[#allocation2 + $0x78] sm:$0x1]  ;;  %v3606_v1 = vld [vmem:[#allocation6 + $0x30] sm:$0xff]  ;;  %v651_v3 = vshll.u32 %v4361_v19, 16 }
  0x4c   : > { %946 = vst.msk [vmem:[#allocation2 + $0x70] sm:$0xf] %vm882_vm8, %v713_v0  ;;  %v4390_v55 = vrot.slane %v716_v43, 7  ;;  %3790 = vmatpush.bf16.msra.mxu2 %v3624_v13  ;;  %3791 = vmatpush.bf16.msra.mxu3 %v3624_v13  ;;  %v373_v61 = vsel %vm4231_vm3, 0, %v372_v54  ;;  %v724_v63 = vshrl.u32 %v321_v48, 16  ;;  %v727_v0 = vshll.u32 %v321_v48, 16 }
  0x4d   : > { %383 = vst [vmem:[#allocation2 + $0x9c] sm:$0x1] %v382_v7  ;;  %v662_v4 = vsel %vm4257_vm6, %v654_v47, %v661_v53  ;;  %v636_v7 = vor.u32 %v634_v46, %v4284_v26  ;;  %v4412_v10 = vld [vmem:[%s4212_s21 + $0x68] sm:$0xf]  ;;  %v329_v13 = vld [vmem:[%s4212_s21 + $0x6c] sm:$0xf]  ;;  %v653_v48 = vor.u32 %v651_v3, %v4373_v34 }
  0x4e   : > { %974 = vst.msk [vmem:[#allocation2 + $0xa0] sm:$0xf] %vm882_vm8, %v781_v15  ;;  %v722_v6 = vrot.slane %v4390_v55, 4  ;;  %v4409_v9 = vrot.slane %v724_v63, 7  ;;  %v384_v46 = vld [vmem:[#allocation2 + $0xa8] sm:$0x1] }
  0x4f   : > { %v476_v39 = vld [vmem:[#allocation2 + $0x3c] sm:$0xf]  ;;  %350 = vst [vmem:[#allocation2 + $0x18] sm:$0x1] %v349_v17  ;;  %1826 = vmatpush.bf16.msrb.mxu1 %v3639_v32  ;;  %2237 = vmatpush.bf16.msrb.mxu0 %v3615_v41  ;;  %v784_v17 = vshrl.u32 %v4412_v10, 16  ;;  %v3638_v21 = vld [vmem:[#allocation6 + $0x130] sm:$0xff] }
  0x50   : > { %v477_v44 = vsel %vm4274_vm7, 0, %v476_v39  ;;  %362 = vst [vmem:[#allocation2 + $0x48] sm:$0x1] %v361_v30  ;;  %1915 = vmatpush.bf16.msrb.mxu2 %v3647_v25  ;;  %2148 = vmatpush.bf16.msrb.mxu3 %v3607_v28  ;;  %v729_v26 = vor.u32 %v727_v0, %v4409_v9  ;;  %v719_v25 = vshll.u32 %v4376_v36, 16  ;;  %v385_v30 = vsel %vm4231_vm3, 0, %v384_v46  ;;  %v3645_v37 = vld [vmem:[#allocation6 + $0x168] sm:$0xff] }
  0x51   : > { %v4387_v51 = vld [vmem:[#allocation2 + $0xc] sm:$0xff]  ;;  %478 = vst [vmem:[#allocation2 + $0x3c] sm:$0xf] %v477_v44  ;;  %v4431_v31 = vrot.slane %v784_v17, 7  ;;  %v792_v33 = vshrl.u32 %v329_v13, 16  ;;  %v795_v35 = vshll.u32 %v329_v13, 16  ;;  %v585_v44 = vor.u32 %v583_v59, %v4358_v18 }
  0x52   : > { %v504_v58 = vld [vmem:[#allocation2 + $0x6c] sm:$0xf]  ;;  %897 = vst.msk [vmem:[#allocation2 + $0x1c] sm:$0xf] %vm882_vm8, %v594_v45  ;;  %1745 = vmatmul.bf16.vlgmr.msra.gmra.mxu0 %v4387_v51  ;;  %v730_v29 = vsel %vm4257_vm6, %v722_v6, %v729_v26  ;;  %v3605_v50 = vld [vmem:[#allocation6 + $0x28] sm:$0xff]  ;;  %v3604_v18 = vld [vmem:[#allocation6 + $0x20] sm:$0xff]  ;;  %v721_v3 = vor.u32 %v719_v25, %v4390_v55 }
  0x53   : > { %v505_v62 = vsel %vm4274_vm7, 0, %v504_v58  ;;  %374 = vst [vmem:[#allocation2 + $0x78] sm:$0x1] %v373_v61  ;;  %v790_v41 = vrot.slane %v4431_v31, 4  ;;  %1827 = vmatpush.bf16.msrb.mxu1 %v3638_v21  ;;  %v4443_v40 = vrot.slane %v792_v33, 7  ;;  %v3614_v60 = vld [vmem:[#allocation6 + $0x70] sm:$0xff] }
  0x54   : > { %506 = vst [vmem:[#allocation2 + $0x6c] sm:$0xf] %v505_v62  ;;  %v532_v5 = vld [vmem:[#allocation2 + $0x9c] sm:$0xf]  ;;  %1916 = vmatpush.bf16.msrb.mxu2 %v3646_v52  ;;  %2149 = vmatpush.bf16.msrb.mxu3 %v3606_v1  ;;  %v3637_v45 = vld [vmem:[#allocation6 + $0x128] sm:$0xff]  ;;  %v787_v21 = vshll.u32 %v4412_v10, 16 }
  0x55   : > { %v533_v8 = vsel %vm4274_vm7, 0, %v532_v5  ;;  %925 = vst.msk [vmem:[#allocation2 + $0x4c] sm:$0xf] %vm882_vm8, %v662_v4  ;;  %v3644_v52 = vld [vmem:[#allocation6 + $0x160] sm:$0xff]  ;;  %v797_v54 = vor.u32 %v795_v35, %v4443_v40  ;;  %2238 = vmatpush.bf16.msrb.mxu0 %v3614_v60  ;;  %v3613_v58 = vld [vmem:[#allocation6 + $0x68] sm:$0xff]  ;;  %vm450_vm11 = vcmask 1040896  }
  0x56   : > { %534 = vst [vmem:[#allocation2 + $0x9c] sm:$0xf] %v533_v8  ;;  %v455_v11 = vld [vmem:[#allocation2 + $0x18] sm:$0xf]  ;;  %v4450_v59 = vld [vmem:[%s4212_s21 + $0x10] sm:$0xf]  ;;  %vm4674_vm12 = vmand %vm450_vm11, %vm343_vm2 }
  0x57   : > { %v456_v15 = vsel %vm4274_vm7, 0, %v455_v11  ;;  %v483_v12 = vld [vmem:[#allocation2 + $0x48] sm:$0xf]  ;;  %953 = vst.msk [vmem:[#allocation2 + $0x7c] sm:$0xf] %vm882_vm8, %v730_v29  ;;  %1828 = vmatpush.bf16.msrb.mxu1 %v3637_v45  ;;  %v798_v4 = vsel %vm4257_vm6, %v790_v41, %v797_v54  ;;  %v597_v5 = vshrl.u32 %v4450_v59, 16 }
  0x58   : > { %v915_v19 = vld [vmem:[#allocation2 + $0x3c] sm:$0xf]  ;;  %457 = vst [vmem:[#allocation2 + $0x18] sm:$0xf] %v456_v15  ;;  %v484_v24 = vsel %vm4274_vm7, 0, %v483_v12  ;;  %1917 = vmatpush.bf16.msrb.mxu2 %v3645_v37  ;;  %2150 = vmatpush.bf16.msrb.mxu3 %v3605_v50  ;;  %v600_v50 = vshll.u32 %v4450_v59, 16 }
  0x59   : > { %v916_v28 = vsel %vm4329_vm9, %v636_v7, %v915_v19  ;;  %485 = vst [vmem:[#allocation2 + $0x48] sm:$0xf] %v484_v24  ;;  %v307_v62 = vld [vmem:[%s4212_s21 + $0x14] sm:$0xf]  ;;  %v351_v63 = vld [vmem:[#allocation2 + $0x24] sm:$0x1]  ;;  %2239 = vmatpush.bf16.msrb.mxu0 %v3613_v58 }
  0x5a   : > { %917 = vst [vmem:[#allocation2 + $0x3c] sm:$0xf] %v916_v28  ;;  %v511_v32 = vld [vmem:[#allocation2 + $0x78] sm:$0xf]  ;;  %v352_v7 = vsel %vm4231_vm3, 0, %v351_v63  ;;  %v605_v8 = vshrl.u32 %v307_v62, 16 }
  0x5b   : > { %v943_v36 = vld [vmem:[#allocation2 + $0x6c] sm:$0xf]  ;;  %v512_v39 = vsel %vm4274_vm7, 0, %v511_v32  ;;  %386 = vst [vmem:[#allocation2 + $0xa8] sm:$0x1] %v385_v30  ;;  %v608_v11 = vshll.u32 %v307_v62, 16 }
  0x5c   : > { %v944_v43 = vsel %vm4329_vm9, %v704_v22, %v943_v36  ;;  %513 = vst [vmem:[#allocation2 + $0x78] sm:$0xf] %v512_v39  ;;  %1918 = vmatpush.bf16.msrb.mxu2 %v3644_v52  ;;  %2151 = vmatpush.bf16.msrb.mxu3 %v3604_v18  ;;  %v4465_v55 = vrot.slane %v597_v5, 7  ;;  %v4468_v13 = vld [vmem:[%s4212_s21 + $0x30] sm:$0xf]  ;;  %v4472_v12 = vrot.slane %v605_v8, 7  ;;  %v789_v52 = vor.u32 %v787_v21, %v4431_v31 }
  0x5d   : > { %945 = vst [vmem:[#allocation2 + $0x6c] sm:$0xf] %v944_v43  ;;  %v971_v47 = vld [vmem:[#allocation2 + $0x9c] sm:$0xf]  ;;  %v665_v26 = vshrl.u32 %v4468_v13, 16  ;;  %v3655_v23 = vld [vmem:[#allocation6 + $0x1b8] sm:$0xff] }
  0x5e   : > { %v972_v53 = vsel %vm4329_vm9, %v772_v49, %v971_v47  ;;  %981 = vst.msk [vmem:[#allocation2 + $0xac] sm:$0xf] %vm882_vm8, %v798_v4  ;;  %v603_v19 = vrot.slane %v4465_v55, 4  ;;  %v315_v22 = vld [vmem:[%s4212_s21 + $0x34] sm:$0xf]  ;;  %v610_v25 = vor.u32 %v608_v11, %v4472_v12  ;;  %vm889_vm13 = vcmask 516096  }
  0x5f   : > { %973 = vst [vmem:[#allocation2 + $0x9c] sm:$0xf] %v972_v53  ;;  %v894_v61 = vld [vmem:[#allocation2 + $0x18] sm:$0xf]  ;;  %v363_v28 = vld [vmem:[#allocation2 + $0x54] sm:$0x1]  ;;  %vm4698_vm14 = vmand %vm889_vm13, %vm343_vm2 }
  0x60   : > { %v895_v34 = vsel %vm4329_vm9, %v585_v44, %v894_v61  ;;  %v922_v1 = vld [vmem:[#allocation2 + $0x48] sm:$0xf]  ;;  %353 = vst [vmem:[#allocation2 + $0x24] sm:$0x1] %v352_v7  ;;  %v364_v37 = vsel %vm4231_vm3, 0, %v363_v28  ;;  %v4485_v49 = vrot.slane %v665_v26, 7  ;;  %v611_v32 = vsel %vm4257_vm6, %v603_v19, %v610_v25 }
  0x61   : > { %v4459_v6 = vld [vmem:[#allocation2 + $0x3c] sm:$0xff]  ;;  %896 = vst [vmem:[#allocation2 + $0x18] sm:$0xf] %v895_v34  ;;  %v923_v0 = vsel %vm4329_vm9, %v653_v48, %v922_v1  ;;  %v673_v33 = vshrl.u32 %v315_v22, 16  ;;  %v676_v35 = vshll.u32 %v315_v22, 16  ;;  %v668_v61 = vshll.u32 %v4468_v13, 16 }
  0x62   : > { %924 = vst [vmem:[#allocation2 + $0x48] sm:$0xf] %v923_v0  ;;  %1765 = vmatmul.bf16.vlgmr.msra.gmra.mxu1 %v4459_v6  ;;  %v539_v24 = vld [vmem:[#allocation2 + $0xa8] sm:$0xf]  ;;  %v323_v10 = vld [vmem:[%s4212_s21 + $0x54] sm:$0xf] }
  0x63   : > { %v950_v15 = vld [vmem:[#allocation2 + $0x78] sm:$0xf]  ;;  %v540_v30 = vsel %vm4274_vm7, 0, %v539_v24  ;;  %v4490_v36 = vld [vmem:[%s4212_s21 + $0x50] sm:$0xf]  ;;  %v671_v41 = vrot.slane %v4485_v49, 4 }
  0x64   : > { %v3591_v46 = vld [vmem:[#allocation2 + $0x6c] sm:$0xff]  ;;  %v951_v17 = vsel %vm4329_vm9, %v721_v3, %v950_v15  ;;  %541 = vst [vmem:[#allocation2 + $0xa8] sm:$0xf] %v540_v30  ;;  %v4497_v43 = vrot.slane %v673_v33, 7  ;;  %v375_v44 = vld [vmem:[#allocation2 + $0x84] sm:$0x1]  ;;  %v602_v30 = vor.u32 %v600_v50, %v4465_v55 }
  0x65   : > { %952 = vst [vmem:[#allocation2 + $0x78] sm:$0xf] %v951_v17  ;;  %1785 = vmatmul.bf16.vlgmr.msra.gmra.mxu2 %v3591_v46  ;;  %v376_v60 = vsel %vm4231_vm3, 0, %v375_v44  ;;  %v733_v45 = vshrl.u32 %v4490_v36, 16  ;;  %v741_v47 = vshrl.u32 %v323_v10, 16  ;;  %v744_v18 = vshll.u32 %v323_v10, 16 }
  0x66   : > { %v3595_v29 = vld [vmem:[#allocation2 + $0x9c] sm:$0xff]  ;;  %904 = vst.msk [vmem:[#allocation2 + $0x28] sm:$0xf] %vm882_vm8, %v611_v32  ;;  %v4505_v48 = vld [vmem:[%s4212_s21 + $0x70] sm:$0xf]  ;;  %v678_v54 = vor.u32 %v676_v35, %v4497_v43  ;;  %v736_v63 = vshll.u32 %v4490_v36, 16 }
  0x67   : > { %1805 = vmatmul.bf16.vlgmr.msra.gmra.mxu3 %v3595_v29  ;;  %365 = vst [vmem:[#allocation2 + $0x54] sm:$0x1] %v364_v37  ;;  %v462_v53 = vld [vmem:[#allocation2 + $0x24] sm:$0xf]  ;;  %v801_v58 = vshrl.u32 %v4505_v48, 16  ;;  %v4513_v62 = vrot.slane %v733_v45, 7 }
  0x68   : > { %v4492_v39 = vld [vmem:[#allocation2 + $0x18] sm:$0xff]  ;;  %377 = vst [vmem:[#allocation2 + $0x84] sm:$0x1] %v376_v60  ;;  %v463_v59 = vsel %vm4274_vm7, 0, %v462_v53  ;;  %v4515_v34 = vrot.slane %v741_v47, 7  ;;  %v679_v4 = vsel %vm4257_vm6, %v671_v41, %v678_v54  ;;  %v3643_v19 = vld [vmem:[#allocation6 + $0x158] sm:$0xff] }
  0x69   : > { %1750 = vmatmul.bf16.gmra.mxu0 %v4492_v39  ;;  %v331_v1 = vld [vmem:[%s4212_s21 + $0x74] sm:$0xf]  ;;  %464 = vst [vmem:[#allocation2 + $0x24] sm:$0xf] %v463_v59  ;;  %v387_v5 = vld [vmem:[#allocation2 + $0xb4] sm:$0x1]  ;;  %1919 = vmatpush.bf16.msrb.mxu2 %v3643_v19 }
  0x6a   : > { %v4524_v3 = vld [vmem:[#allocation2 + $0x48] sm:$0xff]  ;;  %v4529_v0 = vrot.slane %v801_v58, 7  ;;  %932 = vst.msk [vmem:[#allocation2 + $0x58] sm:$0xf] %vm882_vm8, %v679_v4  ;;  %v739_v8 = vrot.slane %v4513_v62, 4  ;;  %v746_v11 = vor.u32 %v744_v18, %v4515_v34  ;;  %v388_v13 = vsel %vm4231_vm3, 0, %v387_v5 }
  0x6b   : > { %v978_v7 = vld [vmem:[#allocation2 + $0xa8] sm:$0xf]  ;;  %389 = vst [vmem:[#allocation2 + $0xb4] sm:$0x1] %v388_v13  ;;  %v809_v46 = vshrl.u32 %v331_v1, 16  ;;  %v3636_v17 = vld [vmem:[#allocation6 + $0x120] sm:$0xff] }
  0x6c   : > { %v979_v15 = vsel %vm4329_vm9, %v789_v52, %v978_v7  ;;  %v807_v26 = vrot.slane %v4529_v0, 4  ;;  %v3592_v22 = vld [vmem:[#allocation2 + $0x78] sm:$0xff]  ;;  %v747_v25 = vsel %vm4257_vm6, %v739_v8, %v746_v11  ;;  %v812_v28 = vshll.u32 %v331_v1, 16  ;;  %v3603_v29 = vld [vmem:[#allocation6 + $0x18] sm:$0xff]  ;;  %1829 = vmatpush.bf16.msrb.mxu1 %v3636_v17  ;;  %v3642_v10 = vld [vmem:[#allocation6 + $0x150] sm:$0xff]  ;;  %p295_p1 = scmp.lt.s32.totalorder %s4066_s18, 1 }
  0x6d   : > { %980 = vst [vmem:[#allocation2 + $0xa8] sm:$0xf] %v979_v15  ;;  %v4545_v37 = vrot.slane %v809_v46, 7  ;;  %v3612_v32 = vld [vmem:[#allocation6 + $0x60] sm:$0xff]  ;;  %v3635_v33 = vld [vmem:[#allocation6 + $0x118] sm:$0xff]  ;;  %2152 = vmatpush.bf16.msrb.mxu3 %v3603_v29  ;;  %v3602_v41 = vld [vmem:[#allocation6 + $0x10] sm:$0xff]  ;;  %1920 = vmatpush.bf16.msrb.mxu2 %v3642_v10  ;;  %v670_v1 = vor.u32 %v668_v61, %v4485_v49  ;;  %v738_v49 = vor.u32 %v736_v63, %v4513_v62 }
  0x6e   : > { %v490_v24 = vld [vmem:[#allocation2 + $0x54] sm:$0xf]  ;;  %960 = vst.msk [vmem:[#allocation2 + $0x88] sm:$0xf] %vm882_vm8, %v747_v25  ;;  %2240 = vmatpush.bf16.msrb.mxu0 %v3612_v32  ;;  %v4552_v60 = vld [vmem:[%s4212_s21 + $0x18] sm:$0xf] }
  0x6f   : > { %v491_v21 = vsel %vm4274_vm7, 0, %v490_v24  ;;  %v518_v35 = vld [vmem:[#allocation2 + $0x84] sm:$0xf]  ;;  %v814_v44 = vor.u32 %v812_v28, %v4545_v37  ;;  %v3611_v50 = vld [vmem:[#allocation6 + $0x58] sm:$0xff]  ;;  %v804_v54 = vshll.u32 %v4505_v48, 16  ;;  %v614_v58 = vshrl.u32 %v4552_v60, 16 }
  0x70   : > { %492 = vst [vmem:[#allocation2 + $0x54] sm:$0xf] %v491_v21  ;;  %v519_v55 = vsel %vm4274_vm7, 0, %v518_v35  ;;  %v309_v45 = vld [vmem:[%s4212_s21 + $0x1c] sm:$0xf]  ;;  %1830 = vmatpush.bf16.msrb.mxu1 %v3635_v33  ;;  %v578_v57 = vrot.slane %v4250_v14, 4 }
  0x71   : > { %v901_v47 = vld [vmem:[#allocation2 + $0x24] sm:$0xf]  ;;  %520 = vst [vmem:[#allocation2 + $0x84] sm:$0xf] %v519_v55  ;;  %v354_v52 = vld [vmem:[#allocation2 + $0x30] sm:$0x1]  ;;  %v815_v18 = vsel %vm4257_vm6, %v807_v26, %v814_v44  ;;  %2153 = vmatpush.bf16.msrb.mxu3 %v3602_v41  ;;  %v806_v21 = vor.u32 %v804_v54, %v4529_v0 }
  0x72   : > { %1770 = vmatmul.bf16.gmra.mxu1 %v4524_v3  ;;  %v902_v53 = vsel %vm4329_vm9, %v602_v30, %v901_v47  ;;  %v4562_v59 = vld [vmem:[%s4212_s21 + $0x38] sm:$0xf]  ;;  %v546_v4 = vld [vmem:[#allocation2 + $0xb4] sm:$0xf]  ;;  %v355_v5 = vsel %vm4231_vm3, 0, %v354_v52  ;;  %v622_v7 = vshrl.u32 %v309_v45, 16  ;;  %2241 = vmatpush.bf16.msrb.mxu0 %v3611_v50 }
  0x73   : > { %903 = vst [vmem:[#allocation2 + $0x24] sm:$0xf] %v902_v53  ;;  %v317_v48 = vld [vmem:[%s4212_s21 + $0x3c] sm:$0xf]  ;;  %v547_v11 = vsel %vm4274_vm7, 0, %v546_v4  ;;  %v4571_v13 = vrot.slane %v614_v58, 7 }
  0x74   : > { %v3596_v8 = vld [vmem:[#allocation2 + $0xa8] sm:$0xff]  ;;  %988 = vst.msk [vmem:[#allocation2 + $0xb8] sm:$0xf] %vm882_vm8, %v815_v18  ;;  %v625_v15 = vshll.u32 %v309_v45, 16  ;;  %v4576_v61 = vrot.slane %v622_v7, 7  ;;  %v682_v46 = vshrl.u32 %v4562_v59, 16 }
  0x75   : > { %1790 = vmatmul.bf16.gmra.mxu2 %v3592_v22  ;;  %548 = vst [vmem:[#allocation2 + $0xb4] sm:$0xf] %v547_v11  ;;  %v366_v26 = vld [vmem:[#allocation2 + $0x60] sm:$0x1]  ;;  %v620_v19 = vrot.slane %v4571_v13, 4  ;;  %v690_v28 = vshrl.u32 %v317_v48, 16 }
  0x76   : > { %356 = vst [vmem:[#allocation2 + $0x30] sm:$0x1] %v355_v5  ;;  %v367_v22 = vsel %vm4231_vm3, 0, %v366_v26  ;;  %v627_v36 = vor.u32 %v625_v15, %v4576_v61  ;;  %v684_v62 = vrot.slane %v682_v46, 7  ;;  %v4586_v63 = vld [vmem:[%s4212_s21 + $0x58] sm:$0xf] }
  0x77   : > { %1810 = vmatmul.bf16.gmra.mxu3 %v3596_v8  ;;  %v929_v17 = vld [vmem:[#allocation2 + $0x54] sm:$0xf]  ;;  %368 = vst [vmem:[#allocation2 + $0x60] sm:$0x1] %v367_v22  ;;  %v693_v29 = vshll.u32 %v317_v48, 16  ;;  %v4596_v55 = vrot.slane %v690_v28, 7 }
  0x78   : > { %v930_v24 = vsel %vm4329_vm9, %v670_v1, %v929_v17  ;;  %v957_v25 = vld [vmem:[#allocation2 + $0x84] sm:$0xf]  ;;  %v628_v32 = vsel %vm4257_vm6, %v620_v19, %v627_v36  ;;  %v688_v33 = vrot.slane %v684_v62, 4  ;;  %v325_v35 = vld [vmem:[%s4212_s21 + $0x5c] sm:$0xf]  ;;  %v750_v50 = vshrl.u32 %v4586_v63, 16 }
  0x79   : > { %931 = vst [vmem:[#allocation2 + $0x54] sm:$0xf] %v930_v24  ;;  %v958_v30 = vsel %vm4329_vm9, %v738_v49, %v957_v25  ;;  %v378_v10 = vld [vmem:[#allocation2 + $0x90] sm:$0x1]  ;;  %v758_v0 = vshrl.u32 %v325_v35, 16  ;;  %v761_v45 = vshll.u32 %v325_v35, 16  ;;  %v695_v52 = vor.u32 %v693_v29, %v4596_v55 }
  0x7a   : > { %v4594_v41 = vld [vmem:[#allocation2 + $0x24] sm:$0xff]  ;;  %959 = vst [vmem:[#allocation2 + $0x84] sm:$0xf] %v958_v30  ;;  %v379_v44 = vsel %vm4231_vm3, 0, %v378_v10  ;;  %v4604_v53 = vrot.slane %v750_v50, 7  ;;  %v617_v58 = vshll.u32 %v4552_v60, 16 }
  0x7b   : > { %911 = vst.msk [vmem:[#allocation2 + $0x34] sm:$0xf] %vm882_vm8, %v628_v32  ;;  %1755 = vmatmul.bf16.gmra.mxu0 %v4594_v41  ;;  %v4609_v1 = vrot.slane %v758_v0, 7  ;;  %v4612_v4 = vld [vmem:[%s4212_s21 + $0x78] sm:$0xf]  ;;  %v696_v48 = vsel %vm4257_vm6, %v688_v33, %v695_v52  ;;  %v685_v26 = vshll.u32 %v4562_v59, 16 }
  0x7c   : > { %v985_v47 = vld [vmem:[#allocation2 + $0xb4] sm:$0xf]  ;;  %380 = vst [vmem:[#allocation2 + $0x90] sm:$0x1] %v379_v44  ;;  %v756_v8 = vrot.slane %v4604_v53, 4  ;;  %v818_v17 = vshrl.u32 %v4612_v4, 16 }
  0x7d   : > { %v986_v54 = vsel %vm4329_vm9, %v806_v21, %v985_v47  ;;  %v469_v18 = vld [vmem:[#allocation2 + $0x30] sm:$0xf]  ;;  %v763_v15 = vor.u32 %v761_v45, %v4609_v1  ;;  %v333_v49 = vld [vmem:[%s4212_s21 + $0x7c] sm:$0xf]  ;;  %v390_v46 = vld [vmem:[#allocation2 + $0xc0] sm:$0x1]  ;;  %v619_v21 = vor.u32 %v617_v58, %v4571_v13  ;;  %v687_v2 = vor.u32 %v685_v26, %v684_v62 }
  0x7e   : > { %987 = vst [vmem:[#allocation2 + $0xb4] sm:$0xf] %v986_v54  ;;  %v470_v5 = vsel %vm4274_vm7, 0, %v469_v18  ;;  %v497_v7 = vld [vmem:[#allocation2 + $0x60] sm:$0xf]  ;;  %v391_v24 = vsel %vm4231_vm3, 0, %v390_v46 }
  0x7f   : > { %471 = vst [vmem:[#allocation2 + $0x30] sm:$0xf] %v470_v5  ;;  %v498_v60 = vsel %vm4274_vm7, 0, %v497_v7  ;;  %v764_v22 = vsel %vm4257_vm6, %v756_v8, %v763_v15  ;;  %v826_v36 = vshrl.u32 %v333_v49, 16  ;;  %v829_v25 = vshll.u32 %v333_v49, 16  ;;  %v3634_v28 = vld [vmem:[#allocation6 + $0x110] sm:$0xff] }
  0x80   : > { %v4619_v11 = vld [vmem:[#allocation2 + $0x54] sm:$0xff]  ;;  %499 = vst [vmem:[#allocation2 + $0x60] sm:$0xf] %v498_v60  ;;  %v4636_v59 = vrot.slane %v818_v17, 7  ;;  %v3641_v29 = vld [vmem:[#allocation6 + $0x148] sm:$0xff]  ;;  %v3610_v35 = vld [vmem:[#allocation6 + $0x50] sm:$0xff]  ;;  %1831 = vmatpush.bf16.msrb.mxu1 %v3634_v28 }
  0x81   : > { %v4628_v19 = vld [vmem:[#allocation2 + $0x84] sm:$0xff]  ;;  %939 = vst.msk [vmem:[#allocation2 + $0x64] sm:$0xf] %vm882_vm8, %v696_v48  ;;  %v4640_v33 = vrot.slane %v826_v36, 7  ;;  %1921 = vmatpush.bf16.msrb.mxu2 %v3641_v29  ;;  %v3640_v0 = vld [vmem:[#allocation6 + $0x140] sm:$0xff]  ;;  %v753_v47 = vshll.u32 %v4586_v63, 16  ;;  %2242 = vmatpush.bf16.msrb.mxu0 %v3610_v35 }
  0x82   : > { %1775 = vmatmul.bf16.gmra.mxu1 %v4619_v11  ;;  %967 = vst.msk [vmem:[#allocation2 + $0x94] sm:$0xf] %vm882_vm8, %v764_v22  ;;  %v3601_v30 = vld [vmem:[#allocation6 + $0x8] sm:$0xff]  ;;  %v824_v44 = vrot.slane %v4636_v59, 4  ;;  %v3600_v52 = vld [vmem:[#allocation6] sm:$0xff]  ;;  %v3663_v29 = vld [vmem:[#allocation6 + $0x1f8] sm:$0xff] }
  0x83   : > { %v525_v32 = vld [vmem:[#allocation2 + $0x90] sm:$0xf]  ;;  %392 = vst [vmem:[#allocation2 + $0xc0] sm:$0x1] %v391_v24  ;;  %v3633_v50 = vld [vmem:[#allocation6 + $0x108] sm:$0xff]  ;;  %v831_v13 = vor.u32 %v829_v25, %v4640_v33  ;;  %2154 = vmatpush.bf16.msrb.mxu3 %v3601_v30  ;;  %v3632_v48 = vld [vmem:[#allocation6 + $0x100] sm:$0xff]  ;;  %v755_v60 = vor.u32 %v753_v47, %v4604_v53 }
  0x84   : > { %v526_v10 = vsel %vm4274_vm7, 0, %v525_v32  ;;  %v3609_v54 = vld [vmem:[#allocation6 + $0x48] sm:$0xff]  ;;  %v395_v18 = vld [vmem:[#allocation2 + $0x14] sm:$0x1]  ;;  %1832 = vmatpush.bf16.msrb.mxu1 %v3633_v50  ;;  %v3608_v15 = vld [vmem:[#allocation6 + $0x40] sm:$0xff]  ;;  %v821_v24 = vshll.u32 %v4612_v4, 16 }
  0x85   : > { %1795 = vmatmul.bf16.gmra.mxu2 %v4628_v19  ;;  %v3597_v45 = vld [vmem:[#allocation2 + $0xb4] sm:$0xff]  ;;  %527 = vst [vmem:[#allocation2 + $0x90] sm:$0xf] %v526_v10  ;;  %v832_v7 = vsel %vm4257_vm6, %v824_v44, %v831_v13  ;;  %v396_v8 = vsel %vm4520_vm10, 0, %v395_v18  ;;  %2243 = vmatpush.bf16.msrb.mxu0 %v3609_v54  ;;  %v398_v49 = vld [vmem:[#allocation2 + $0x20] sm:$0x1] }
  0x86   : > { %v908_v62 = vld [vmem:[#allocation2 + $0x30] sm:$0xf]  ;;  %1922 = vmatpush.bf16.msrb.mxu2 %v3640_v0  ;;  %995 = vst.msk [vmem:[#allocation2 + $0xc4] sm:$0xf] %vm882_vm8, %v832_v7  ;;  %v399_v16 = vsel %vm4520_vm10, 0, %v398_v49  ;;  %v4664_v36 = vld [vmem:[#allocation2] sm:$0xff] }
  0x87   : > { %1815 = vmatmul.bf16.gmra.mxu3 %v3597_v45  ;;  %v909_v58 = vsel %vm4329_vm9, %v619_v21, %v908_v62  ;;  %v936_v5 = vld [vmem:[#allocation2 + $0x60] sm:$0xf]  ;;  %397 = vst [vmem:[#allocation2 + $0x14] sm:$0x1] %v396_v8  ;;  %v1001_v17 = vld [vmem:[#allocation2 + $0x8] sm:$0x1] }
  0x88   : > { %910 = vst [vmem:[#allocation2 + $0x30] sm:$0xf] %v909_v58  ;;  %v937_v63 = vsel %vm4329_vm9, %v687_v2, %v936_v5  ;;  %2155 = vmatpush.bf16.msrb.mxu3 %v3600_v52  ;;  %1833 = vmatpush.bf16.msrb.mxu1 %v3632_v48  ;;  %v401_v25 = vld [vmem:[#allocation2 + $0x2c] sm:$0x1]  ;;  %v1165_v28 = vunpack.c.l.b16 %v1001_v17  ;;  %v3623_v30 = vld [vmem:[#allocation6 + $0xb8] sm:$0xff]  ;;  %v823_v2 = vor.u32 %v821_v24, %v4636_v59  ;;  %v1201_v0 = vshll.u32 %v4664_v36, 16 }
  0x89   : > { %938 = vst [vmem:[#allocation2 + $0x60] sm:$0xf] %v937_v63  ;;  %2244 = vmatpush.bf16.msrb.mxu0 %v3608_v15  ;;  %v3671_v32 = vld [vmem:[#allocation6 + $0x238] sm:$0xff]  ;;  %v402_v4 = vsel %vm4520_vm10, 0, %v401_v25  ;;  %v1199_v62 = vshrl.u32 %v4664_v36, 16  ;;  %v595_v15 = vrot.slane %v4364_v20, 4 }
  0x8a   : > { %v553_v26 = vld [vmem:[#allocation2 + $0xc0] sm:$0xf]  ;;  %400 = vst [vmem:[#allocation2 + $0x20] sm:$0x1] %v399_v16  ;;  %2633 = vmatpush.bf16.msra.mxu2 %v3655_v23  ;;  %v4680_v50 = vpack.c.b16 %v1165_v28, %v1165_v28  ;;  %v1203_v18 = vrot.slane %v1201_v0, 1  ;;  %v612_v17 = vrot.slane %v4472_v12, 4 }
  0x8b   : > { %v554_v46 = vsel %vm4274_vm7, 0, %v553_v26  ;;  %403 = vst [vmem:[#allocation2 + $0x2c] sm:$0x1] %v402_v4  ;;  %v404_v48 = vld [vmem:[#allocation2 + $0x38] sm:$0x1]  ;;  %vm1406_vm0 = vcmask 1046528  }
  0x8c   : > { %v964_v22 = vld [vmem:[#allocation2 + $0x90] sm:$0xf]  ;;  %555 = vst [vmem:[#allocation2 + $0xc0] sm:$0xf] %v554_v46  ;;  %2722 = vmatpush.bf16.msra.mxu3 %v3663_v29  ;;  %2326 = vmatpush.bf16.msra.mxu1 %v3623_v30  ;;  %v1206_v58 = vshll.u32 %v4680_v50, 16  ;;  %v1204_v8 = vor.u32 %v1203_v18, %v1199_v62  ;;  %v405_v49 = vsel %vm4520_vm10, 0, %v404_v48 }
  0x8d   : > { %v965_v53 = vsel %vm4329_vm9, %v755_v60, %v964_v22  ;;  %2811 = vmatpush.bf16.msra.mxu0 %v3671_v32  ;;  %vm1197_vm15 = vsmask.f32 7424  ;;  %406 = vst [vmem:[#allocation2 + $0x38] sm:$0x1] %v405_v49  ;;  %v1211_v30 = vshrl.u32 %v4387_v51, 16  ;;  %v3662_v48 = vld [vmem:[#allocation6 + $0x1f0] sm:$0xff] }
  0x8e   : > { %966 = vst [vmem:[#allocation2 + $0x90] sm:$0xf] %v965_v53  ;;  %v452_v44 = vld [vmem:[#allocation2 + $0x14] sm:$0x1]  ;;  %v1208_v60 = vrot.slane %v1206_v58, 1  ;;  %v1213_v53 = vshll.u32 %v4387_v51, 16 }
  0x8f   : > { %v4666_v21 = vld [vmem:[#allocation2 + $0x30] sm:$0xff]  ;;  %v453_v45 = vsel %vm4674_vm12, 0, %v452_v44  ;;  %v3670_v49 = vld [vmem:[#allocation6 + $0x230] sm:$0xff]  ;;  %s5164_s1 = scalar_select %p295_p1, %s4066_s18, 1 }
  0x90   : > { %v4670_v35 = vld [vmem:[#allocation2 + $0x60] sm:$0xff]  ;;  %1760 = vmatmul.bf16.gmra.mxu0 %v4666_v21  ;;  %454 = vst [vmem:[#allocation2 + $0x14] sm:$0x1] %v453_v45  ;;  %v1209_v22 = vsel %vm1197_vm15, %v1204_v8, %v1208_v60  ;;  %v1215_v32 = vrot.slane %v1213_v53, 1  ;;  %v3622_v8 = vld [vmem:[#allocation6 + $0xb0] sm:$0xff]  ;;  %2723 = vmatpush.bf16.msra.mxu3 %v3662_v48  ;;  %s5265_s27 = scalar_lea.vmem [#allocation9], %s3212_s26 }
  0x91   : > { %v459_v13 = vld [vmem:[#allocation2 + $0x20] sm:$0x1]  ;;  %2327 = vmatpush.bf16.msra.mxu1 %v3622_v8  ;;  %2812 = vmatpush.bf16.msra.mxu0 %v3670_v49  ;;  %v5055_v31 = vld [vmem:[#allocation2 + $0x84] sm:$0xff]  ;;  %s300_s29 = scalar_lea.vmem %s5437_s3, %s5164_s1  ;;  %s3672_s5 = sshll.u32 %s4066_s18, 7 }
  0x92   : > { %1780 = vmatmul.bf16.gmra.mxu1 %v4670_v35  ;;  %v460_v54 = vsel %vm4674_vm12, 0, %v459_v13  ;;  %v466_v5 = vld [vmem:[#allocation2 + $0x2c] sm:$0x1]  ;;  %v1216_v0 = vor.u32 %v1215_v32, %v1211_v30  ;;  %v629_v13 = vrot.slane %v4576_v61, 4  ;;  %v3661_v49 = vld [vmem:[#allocation6 + $0x1e8] sm:$0xff]  ;;  %s3081_s8 = scalar_lea.hbm %s5438_s4, %s3672_s5  ;;  %s3082_s11 = sshll.u32 %s5265_s27, 4  ;;  %s3083_s11 = int_to_ptr.vmem [resolvable:$true] %s3082_s11 }
  0x93   : > { %v992_v59 = vld [vmem:[#allocation2 + $0xc0] sm:$0xf]  ;;  %461 = vst [vmem:[#allocation2 + $0x20] sm:$0x1] %v460_v54  ;;  %v467_v7 = vsel %vm4674_vm12, 0, %v466_v5  ;;  %v3654_v61 = vld [vmem:[#allocation6 + $0x1b0] sm:$0xff] }
  0x94   : > { %v993_v47 = vsel %vm4329_vm9, %v823_v2, %v992_v59  ;;  %468 = vst [vmem:[#allocation2 + $0x2c] sm:$0x1] %v467_v7  ;;  %v473_v28 = vld [vmem:[#allocation2 + $0x38] sm:$0x1]  ;;  %v1410_v2 = vrot.slane %v4387_v51, 1  ;;  %2634 = vmatpush.bf16.msra.mxu2 %v3654_v61  ;;  %2724 = vmatpush.bf16.msra.mxu3 %v3661_v49  ;;  %s3084_s12 = sshll.u32 %s3081_s8, 4  ;;  %s3085_s12 = int_to_ptr.hbm [resolvable:$true] %s3084_s12 }
  0x95   : > { %v4687_v52 = vld [vmem:[#allocation2 + $0x90] sm:$0xff]  ;;  %994 = vst [vmem:[#allocation2 + $0xc0] sm:$0xf] %v993_v47  ;;  %v474_v23 = vsel %vm4674_vm12, 0, %v473_v28  ;;  %v407_v47 = vld [vmem:[#allocation2 + $0x44] sm:$0x1] }
  0x96   : > { %1800 = vmatmul.bf16.gmra.mxu2 %v4687_v52  ;;  %475 = vst [vmem:[#allocation2 + $0x38] sm:$0x1] %v474_v23  ;;  %v408_v54 = vsel %vm4520_vm10, 0, %v407_v47  ;;  %v410_v28 = vld [vmem:[#allocation2 + $0x50] sm:$0x1]  ;;  %v646_v23 = vrot.slane %v4286_v27, 4 }
  0x97   : > { %v891_v26 = vld [vmem:[#allocation2 + $0x14] sm:$0x1]  ;;  %409 = vst [vmem:[#allocation2 + $0x44] sm:$0x1] %v408_v54  ;;  %s3069_s18 = scalar_lea.sflag [#allocation5], %s4206_s14  ;;  %s4002_s26 = sshra.s32 %s3085_s12, 4  ;;  %s4003_s26 = int_to_ptr.hbm [resolvable:$true] %s4002_s26 }
  0x98   : > { %v892_v16 = vsel %vm4698_vm14, %v578_v57, %v891_v26  ;;  %v1223_v26 = vshrl.u32 %v4492_v39, 16  ;;  %s4004_s28 = scalar_lea.hbm %s4003_s26, 128  ;;  %s4008_s23 = scalar_lea.hbm %s5438_s4, 256 }
  0x99   : > { %893 = vst [vmem:[#allocation2 + $0x14] sm:$0x1] %v892_v16  ;;  %p4005_p3 = scmp.ne.s32.totalorder %s4003_s26, %s4004_s28  ;;  %p4009_p12 = scmp.lt.s32.totalorder %s4003_s26, %s5438_s4 }
  0x9a   : > { %v898_v46 = vld [vmem:[#allocation2 + $0x20] sm:$0x1]  ;;  %p4010_p13 = scmp.lt.s32.totalorder %s4008_s23, %s4004_s28 }
  0x9b   : > { %v899_v20 = vsel %vm4698_vm14, %v595_v15, %v898_v46  ;;  %v905_v24 = vld [vmem:[#allocation2 + $0x2c] sm:$0x1]  ;;  %v1225_v15 = vshll.u32 %v4492_v39, 16  ;;  %p4006_p7 = pnand %p4005_p3, %p4183_p2 }
  0x9c   : > { %v3598_v14 = vld [vmem:[#allocation2 + $0xc0] sm:$0xff]  ;;  %900 = vst [vmem:[#allocation2 + $0x20] sm:$0x1] %v899_v20  ;;  %v906_v25 = vsel %vm4698_vm14, %v612_v17, %v905_v24  ;;  %v1413_v17 = vrot.slane %v4492_v39, 1  ;;  %p4011_p0 = por %p4010_p13, %p4009_p12 }
  0x9d   : > { %1820 = vmatmul.bf16.gmra.mxu3 %v3598_v14  ;;  %907 = vst [vmem:[#allocation2 + $0x2c] sm:$0x1] %v906_v25  ;;  %v912_v5 = vld [vmem:[#allocation2 + $0x38] sm:$0x1]  ;;  %v1227_v14 = vrot.slane %v1225_v15, 1  ;;  %p4007_p11 = pneg %p4006_p7 }
  0x9e   : > { %v913_v57 = vsel %vm4698_vm14, %v629_v13, %v912_v5  ;;  %v480_v46 = vld [vmem:[#allocation2 + $0x44] sm:$0x1]  ;;  %v1416_v13 = vrot.slane %v4594_v41, 1 }
  0x9f   : > { %914 = vst [vmem:[#allocation2 + $0x38] sm:$0x1] %v913_v57  ;;  %v1228_v20 = vor.u32 %v1227_v14, %v1223_v26  ;;  %v413_v57 = vld [vmem:[#allocation2 + $0x5c] sm:$0x1]  ;;  %v3621_v26 = vld [vmem:[#allocation6 + $0xa8] sm:$0xff]  ;;  %p4012_p4 = pnand %p4011_p0, %p4007_p11 }
  0xa0   : > { %2245 = vmatmul.bf16.vlgmr.msrb.gmra.mxu0 %v1209_v22  ;;  %v1004_v12 = vld [vmem:[#allocation2 + $0x14] sm:$0x1]  ;;  %v414_v61 = vsel %vm4520_vm10, 0, %v413_v57  ;;  %2328 = vmatpush.bf16.msra.mxu1 %v3621_v26 }
  0xa1   : > { %v1166_v29 = vunpack.c.l.b16 %v1004_v12  ;;  %v411_v12 = vsel %vm4520_vm10, 0, %v410_v28  ;;  %415 = vst [vmem:[#allocation2 + $0x5c] sm:$0x1] %v414_v61  ;;  %v1422_v61 = vrot.slane %v4459_v6, 1 }
  0xa2   : > { %412 = vst [vmem:[#allocation2 + $0x50] sm:$0x1] %v411_v12 }
  0xa3   : > { %v1182_v4 = vpack.c.b16 %v1166_v29, %v1166_v29  ;;  %v1007_v44 = vld [vmem:[#allocation2 + $0x20] sm:$0x1] }
  0xa4   : > { %v1167_v58 = vunpack.c.l.b16 %v1007_v44  ;;  %v1010_v53 = vld [vmem:[#allocation2 + $0x2c] sm:$0x1] }
  0xa5   : > { %v1218_v59 = vshll.u32 %v1182_v4, 16  ;;  %v1411_v45 = vrot.slane %v1182_v4, 1  ;;  %v1168_v30 = vunpack.c.l.b16 %v1010_v53  ;;  %v1419_v53 = vrot.slane %v4666_v21, 1 }
  0xa6   : > { %v1183_v60 = vpack.c.b16 %v1167_v58, %v1167_v58  ;;  %v1013_v58 = vld [vmem:[#allocation2 + $0x38] sm:$0x1] }
  0xa7   : > { %v1220_v62 = vrot.slane %v1218_v59, 1  ;;  %v4722_v18 = vsel %vm1406_vm0, %v1410_v2, %v1411_v45  ;;  %v1184_v27 = vpack.c.b16 %v1168_v30, %v1168_v30  ;;  %v1237_v2 = vshll.u32 %v4594_v41, 16 }
  0xa8   : > { %1923 = vmatmul.bf16.vlgmr.msrb.gmra.mxu2 %v4722_v18  ;;  %v1230_v16 = vshll.u32 %v1183_v60, 16  ;;  %v1414_v22 = vrot.slane %v1183_v60, 1  ;;  %v1169_v8 = vunpack.c.l.b16 %v1013_v58 }
  0xa9   : > { %v1221_v7 = vsel %vm1197_vm15, %v1216_v0, %v1220_v62  ;;  %v487_v44 = vld [vmem:[#allocation2 + $0x50] sm:$0x1]  ;;  %v1235_v0 = vshrl.u32 %v4594_v41, 16  ;;  %v1239_v59 = vrot.slane %v1237_v2, 1  ;;  %v1242_v45 = vshll.u32 %v1184_v27, 16 }
  0xaa   : > { %1834 = vmatmul.bf16.vlgmr.msrb.gmra.mxu1 %v1221_v7  ;;  %v1232_v24 = vrot.slane %v1230_v16, 1  ;;  %v4735_v25 = vsel %vm1406_vm0, %v1413_v17, %v1414_v22  ;;  %v488_v47 = vsel %vm4674_vm12, 0, %v487_v44  ;;  %v1417_v54 = vrot.slane %v1184_v27, 1  ;;  %v494_v17 = vld [vmem:[#allocation2 + $0x5c] sm:$0x1] }
  0xab   : > { %489 = vst [vmem:[#allocation2 + $0x50] sm:$0x1] %v488_v47  ;;  %v1240_v62 = vor.u32 %v1239_v59, %v1235_v0  ;;  %v1185_v14 = vpack.c.b16 %v1169_v8, %v1169_v8  ;;  %v1249_v16 = vshll.u32 %v4666_v21, 16  ;;  %v1247_v22 = vshrl.u32 %v4666_v21, 16 }
  0xac   : > { %v4741_v29 = vsel %vm1197_vm15, %v1228_v20, %v1232_v24  ;;  %v4755_v5 = vsel %vm1406_vm0, %v1416_v13, %v1417_v54  ;;  %v495_v24 = vsel %vm4674_vm12, 0, %v494_v17  ;;  %v680_v27 = vrot.slane %v4497_v43, 4 }
  0xad   : > { %2156 = vmatmul.bf16.vlgmr.msrb.gmra.mxu3 %v4664_v36  ;;  %v481_v36 = vsel %vm4674_vm12, 0, %v480_v46  ;;  %v3669_v46 = vld [vmem:[#allocation6 + $0x228] sm:$0xff]  ;;  %v1251_v20 = vrot.slane %v1249_v16, 1  ;;  %496 = vst [vmem:[#allocation2 + $0x5c] sm:$0x1] %v495_v24  ;;  %v1420_v28 = vrot.slane %v1185_v14, 1 }
  0xae   : > { %482 = vst [vmem:[#allocation2 + $0x44] sm:$0x1] %v481_v36  ;;  %2813 = vmatpush.bf16.msra.mxu0 %v3669_v46  ;;  %v1261_v54 = vshll.u32 %v4459_v6, 16  ;;  %v419_v46 = vld [vmem:[#allocation2 + $0x74] sm:$0x1]  ;;  %v697_v17 = vrot.slane %v4596_v55, 4 }
  0xaf   : > { %v3652_v55 = vld [vmem:[#allocation6 + $0x1a0] sm:$0xff] }
  0xb0   : > { %2250 = vmatmul.bf16.gmra.mxu0 %v1221_v7  ;;  %v663_v7 = vrot.slane %v4378_v42, 4  ;;  %v3653_v42 = vld [vmem:[#allocation6 + $0x1a8] sm:$0xff] }
  0xb1   : > { %2635 = vmatpush.bf16.msra.mxu2 %v3653_v42 }
  0xb2   : > { %v926_v60 = vld [vmem:[#allocation2 + $0x50] sm:$0x1] }
  0xb3   : > { %v927_v15 = vsel %vm4698_vm14, %v663_v7, %v926_v60 }
  0xb4   : > { %928 = vst [vmem:[#allocation2 + $0x50] sm:$0x1] %v927_v15  ;;  %v933_v59 = vld [vmem:[#allocation2 + $0x5c] sm:$0x1] }
  0xb5   : > { %v919_v32 = vld [vmem:[#allocation2 + $0x44] sm:$0x1]  ;;  %v934_v47 = vsel %vm4698_vm14, %v680_v27, %v933_v59  ;;  %v3668_v27 = vld [vmem:[#allocation6 + $0x220] sm:$0xff]  ;;  %2636 = vmatpush.bf16.msra.mxu2 %v3652_v55  ;;  %v1271_v59 = vshrl.u32 %v4524_v3, 16 }
  0xb6   : > { %v920_v4 = vsel %vm4698_vm14, %v646_v23, %v919_v32  ;;  %v1252_v23 = vor.u32 %v1251_v20, %v1247_v22  ;;  %v4777_v32 = vsel %vm1406_vm0, %v1419_v53, %v1420_v28  ;;  %935 = vst [vmem:[#allocation2 + $0x5c] sm:$0x1] %v934_v47  ;;  %v3660_v28 = vld [vmem:[#allocation6 + $0x1e0] sm:$0xff]  ;;  %2814 = vmatpush.bf16.msra.mxu0 %v3668_v27 }
  0xb7   : > { %921 = vst [vmem:[#allocation2 + $0x44] sm:$0x1] %v920_v4  ;;  %v416_v4 = vld [vmem:[#allocation2 + $0x68] sm:$0x1]  ;;  %2725 = vmatpush.bf16.msra.mxu3 %v3660_v28  ;;  %v4857_v28 = vld [vmem:[#allocation2 + $0x3c] sm:$0xff] }
  0xb8   : > { %1928 = vmatmul.bf16.gmra.mxu2 %v4735_v25  ;;  %v417_v2 = vsel %vm4520_vm10, 0, %v416_v4  ;;  %v1273_v4 = vshll.u32 %v4524_v3, 16  ;;  %5483 = vst [vmem:[#allocation19_spill] sm:$0xff] %v4857_v28 }
  0xb9   : > { %418 = vst [vmem:[#allocation2 + $0x68] sm:$0x1] %v417_v2 }
  0xba   : > { %1839 = vmatmul.bf16.gmra.mxu1 %v4741_v29  ;;  %v1275_v47 = vrot.slane %v1273_v4, 1 }
  0xbd   : > { %2161 = vmatmul.bf16.gmra.mxu3 %v4387_v51  ;;  %v1244_v51 = vrot.slane %v1242_v45, 1 }
  0xbe   : > { %v1016_v30 = vld [vmem:[#allocation2 + $0x44] sm:$0x1] }
  0xbf   : > { %v4761_v48 = vsel %vm1197_vm15, %v1240_v62, %v1244_v51  ;;  %v1170_v0 = vunpack.c.l.b16 %v1016_v30  ;;  %v1259_v62 = vshrl.u32 %v4459_v6, 16  ;;  %v1263_v51 = vrot.slane %v1261_v54, 1 }
  0xc0   : > { %2255 = vmatmul.bf16.gmra.mxu0 %v4741_v29  ;;  %v501_v57 = vld [vmem:[#allocation2 + $0x68] sm:$0x1]  ;;  %v420_v6 = vsel %vm4520_vm10, 0, %v419_v46 }
  0xc1   : > { %v1186_v43 = vpack.c.b16 %v1170_v0, %v1170_v0  ;;  %v502_v7 = vsel %vm4674_vm12, 0, %v501_v57  ;;  %v1264_v42 = vor.u32 %v1263_v51, %v1259_v62  ;;  %421 = vst [vmem:[#allocation2 + $0x74] sm:$0x1] %v420_v6  ;;  %v1425_v62 = vrot.slane %v4524_v3, 1 }
  0xc2   : > { %503 = vst [vmem:[#allocation2 + $0x68] sm:$0x1] %v502_v7  ;;  %v1276_v57 = vor.u32 %v1275_v47, %v1271_v59  ;;  %v1283_v59 = vshrl.u32 %v4619_v11, 16 }
  0xc3   : > { %v1266_v58 = vshll.u32 %v1186_v43, 16  ;;  %v1423_v8 = vrot.slane %v1186_v43, 1 }
  0xc5   : > { %v1268_v49 = vrot.slane %v1266_v58, 1  ;;  %v4809_v16 = vsel %vm1406_vm0, %v1422_v61, %v1423_v8  ;;  %v1022_v61 = vld [vmem:[#allocation2 + $0x5c] sm:$0x1] }
  0xc7   : > { %v4815_v22 = vsel %vm1197_vm15, %v1264_v42, %v1268_v49 }
  0xc8   : > { %1933 = vmatmul.bf16.gmra.mxu2 %v4755_v5  ;;  %5478 = vst [vmem:[#allocation14_spill] sm:$0xff] %v4815_v22 }
  0xca   : > { %1844 = vmatmul.bf16.gmra.mxu1 %v4761_v48 }
  0xcd   : > { %2166 = vmatmul.bf16.gmra.mxu3 %v4492_v39  ;;  %v1254_v39 = vshll.u32 %v1185_v14, 16  ;;  %v1019_v14 = vld [vmem:[#allocation2 + $0x50] sm:$0x1] }
  0xce   : > { %v1171_v20 = vunpack.c.l.b16 %v1019_v14  ;;  %v422_v14 = vld [vmem:[#allocation2 + $0x80] sm:$0x1] }
  0xcf   : > { %v4770_v36 = vpop.f32.mrf.mxu0  ;;  %v1256_v12 = vrot.slane %v1254_v39, 1  ;;  %v940_v39 = vld [vmem:[#allocation2 + $0x68] sm:$0x1]  ;;  %v423_v6 = vsel %vm4520_vm10, 0, %v422_v14 }
  0xd0   : > { %2260 = vmatmul.bf16.gmra.mxu0 %v4761_v48  ;;  %v941_v24 = vsel %vm4698_vm14, %v697_v17, %v940_v39  ;;  %v1187_v30 = vpack.c.b16 %v1171_v20, %v1171_v20  ;;  %v714_v17 = vrot.slane %v4298_v38, 4  ;;  %v1172_v39 = vunpack.c.l.b16 %v1022_v61  ;;  %424 = vst [vmem:[#allocation2 + $0x80] sm:$0x1] %v423_v6 }
  0xd1   : > { %v4783_v44 = vsel %vm1197_vm15, %v1252_v23, %v1256_v12  ;;  %v3620_v23 = vld [vmem:[#allocation6 + $0xa0] sm:$0xff]  ;;  %942 = vst [vmem:[#allocation2 + $0x68] sm:$0x1] %v941_v24 }
  0xd2   : > { %2329 = vmatpush.bf16.msra.mxu1 %v3620_v23  ;;  %v1278_v43 = vshll.u32 %v1187_v30, 16  ;;  %v1426_v51 = vrot.slane %v1187_v30, 1  ;;  %v1188_v23 = vpack.c.b16 %v1172_v39, %v1172_v39  ;;  %v1285_v30 = vshll.u32 %v4619_v11, 16  ;;  %v425_v39 = vld [vmem:[#allocation2 + $0x8c] sm:$0x1] }
  0xd4   : > { %v1280_v7 = vrot.slane %v1278_v43, 1  ;;  %v4839_v8 = vsel %vm1406_vm0, %v1425_v62, %v1426_v51  ;;  %v1287_v47 = vrot.slane %v1285_v30, 1  ;;  %v1290_v43 = vshll.u32 %v1188_v23, 16 }
  0xd5   : > { %5480 = vst [vmem:[#allocation16_spill] sm:$0xff] %v4839_v8  ;;  %v1428_v51 = vrot.slane %v4619_v11, 1 }
  0xd6   : > { %v4851_v20 = vsel %vm1197_vm15, %v1276_v57, %v1280_v7  ;;  %v1429_v57 = vrot.slane %v1188_v23, 1  ;;  %v1288_v7 = vor.u32 %v1287_v47, %v1283_v59  ;;  %v1292_v61 = vrot.slane %v1290_v43, 1  ;;  %v3651_v43 = vld [vmem:[#allocation6 + $0x198] sm:$0xff] }
  0xd7   : > { %v4786_v45 = vpop.f32.mrf.mxu0  ;;  %5482 = vst [vmem:[#allocation18_spill] sm:$0xff] %v4851_v20  ;;  %v515_v4 = vld [vmem:[#allocation2 + $0x80] sm:$0x1]  ;;  %2637 = vmatpush.bf16.msra.mxu2 %v3651_v43 }
  0xd8   : > { %1938 = vmatmul.bf16.gmra.mxu2 %v4777_v32  ;;  %v4877_v6 = vsel %vm1406_vm0, %v1428_v51, %v1429_v57  ;;  %v4883_v30 = vsel %vm1197_vm15, %v1288_v7, %v1292_v61  ;;  %v3659_v51 = vld [vmem:[#allocation6 + $0x1d8] sm:$0xff]  ;;  %v1297_v7 = vshll.u32 %v4670_v35, 16 }
  0xd9   : > { %5485 = vst [vmem:[#allocation21_spill] sm:$0xff] %v4877_v6  ;;  %2726 = vmatpush.bf16.msra.mxu3 %v3659_v51 }
  0xda   : > { %1849 = vmatmul.bf16.gmra.mxu1 %v4783_v44  ;;  %5486 = vst [vmem:[#allocation22_spill] sm:$0xff] %v4883_v30 }
  0xdd   : > { %2171 = vmatmul.bf16.gmra.mxu3 %v4594_v41 }
  0xdf   : > { %v4790_v13 = vpop.f32.mrf.mxu1 }
  0xe0   : > { %2265 = vmatmul.bf16.gmra.mxu0 %v4783_v44 }
  0xe6   : > { %v4804_v15 = vpop.f32.mrf.mxu0 }
  0xe7   : > { %v4800_v60 = vpop.f32.mrf.mxu1 }
  0xe8   : > { %v4802_v41 = vpop.f32.mrf.mxu2  ;;  %1943 = vmatmul.bf16.gmra.mxu2 %v4809_v16 }
  0xea   : > { %v4806_v26 = vpop.f32.mrf.mxu3  ;;  %1854 = vmatmul.bf16.gmra.mxu1 %v4815_v22 }
  0xeb   : > { %5477 = vst [vmem:[#allocation13_spill] sm:$0xff] %v4806_v26 }
  0xed   : > { %2176 = vmatmul.bf16.gmra.mxu3 %v4666_v21  ;;  %v508_v21 = vld [vmem:[#allocation2 + $0x74] sm:$0x1] }
  0xee   : > { %v4829_v0 = vpop.f32.mrf.mxu0  ;;  %v509_v54 = vsel %vm4674_vm12, 0, %v508_v21 }
  0xef   : > { %v4824_v12 = vpop.f32.mrf.mxu1  ;;  %510 = vst [vmem:[#allocation2 + $0x74] sm:$0x1] %v509_v54  ;;  %v516_v54 = vsel %vm4674_vm12, 0, %v515_v4 }
  0xf0   : > { %v4822_v53 = vpop.f32.mrf.mxu2  ;;  %2270 = vmatmul.bf16.gmra.mxu0 %v4815_v22  ;;  %517 = vst [vmem:[#allocation2 + $0x80] sm:$0x1] %v516_v54 }
  0xf2   : > { %v4827_v2 = vpop.f32.mrf.mxu3 }
  0xf3   : > { %5479 = vst [vmem:[#allocation15_spill] sm:$0xff] %v4827_v2 }
  0xf6   : > { %v947_v24 = vld [vmem:[#allocation2 + $0x74] sm:$0x1] }
  0xf7   : > { %v4843_v49 = vpop.f32.mrf.mxu1  ;;  %v948_v55 = vsel %vm4698_vm14, %v714_v17, %v947_v24  ;;  %v1025_v17 = vld [vmem:[#allocation2 + $0x68] sm:$0x1]  ;;  %v731_v24 = vrot.slane %v4409_v9, 4  ;;  %v954_v54 = vld [vmem:[#allocation2 + $0x80] sm:$0x1] }
  0xf8   : > { %v4836_v58 = vpop.f32.mrf.mxu2  ;;  %v4845_v46 = vpop.f32.mrf.mxu0  ;;  %1948 = vmatmul.bf16.gmra.mxu2 %v4839_v8  ;;  %949 = vst [vmem:[#allocation2 + $0x74] sm:$0x1] %v948_v55  ;;  %v426_v55 = vsel %vm4520_vm10, 0, %v425_v39  ;;  %v1173_v4 = vunpack.c.l.b16 %v1025_v17  ;;  %v1295_v17 = vshrl.u32 %v4670_v35, 16  ;;  %v1299_v39 = vrot.slane %v1297_v7, 1 }
  0xf9   : > { %v955_v23 = vsel %vm4698_vm14, %v731_v24, %v954_v54  ;;  %427 = vst [vmem:[#allocation2 + $0x8c] sm:$0x1] %v426_v55  ;;  %v3619_v54 = vld [vmem:[#allocation6 + $0x98] sm:$0xff]  ;;  %v765_v8 = vrot.slane %v4609_v1, 4 }
  0xfa   : > { %v4841_v42 = vpop.f32.mrf.mxu3  ;;  %1859 = vmatmul.bf16.gmra.mxu1 %v4851_v20  ;;  %956 = vst [vmem:[#allocation2 + $0x80] sm:$0x1] %v955_v23  ;;  %v1189_v57 = vpack.c.b16 %v1173_v4, %v1173_v4  ;;  %v1431_v4 = vrot.slane %v4670_v35, 1  ;;  %v1300_v7 = vor.u32 %v1299_v39, %v1295_v17  ;;  %v4926_v39 = vld [vmem:[#allocation2 + $0x6c] sm:$0xff] }
  0xfb   : > { %5481 = vst [vmem:[#allocation17_spill] sm:$0xff] %v4841_v42  ;;  %2330 = vmatpush.bf16.msra.mxu1 %v3619_v54 }
  0xfc   : > { %v1302_v24 = vshll.u32 %v1189_v57, 16 }
  0xfd   : > { %2181 = vmatmul.bf16.gmra.mxu3 %v4857_v28 }
  0xff   : > { %v4866_v21 = vpop.f32.mrf.mxu1  ;;  %v1028_v42 = vld [vmem:[#allocation2 + $0x74] sm:$0x1] }
 0x100   : > { %v4860_v38 = vpop.f32.mrf.mxu2  ;;  %2275 = vmatmul.bf16.gmra.mxu0 %v4851_v20  ;;  %v4871_v62 = vpop.f32.mrf.mxu0  ;;  %v522_v55 = vld [vmem:[#allocation2 + $0x8c] sm:$0x1] }
 0x101   : > { %v523_v23 = vsel %vm4674_vm12, 0, %v522_v55  ;;  %v748_v55 = vrot.slane %v4515_v34, 4  ;;  %v1031_v20 = vld [vmem:[#allocation2 + $0x80] sm:$0x1] }
 0x102   : > { %v4864_v27 = vpop.f32.mrf.mxu3  ;;  %524 = vst [vmem:[#allocation2 + $0x8c] sm:$0x1] %v523_v23 }
 0x103   : > { %5484 = vst [vmem:[#allocation20_spill] sm:$0xff] %v4864_v27 }
 0x107   : > { %v4890_v47 = vpop.f32.mrf.mxu1 }
 0x108   : > { %v4874_v14 = vpop.f32.mrf.mxu2  ;;  %1953 = vmatmul.bf16.gmra.mxu2 %v4877_v6  ;;  %v428_v6 = vld [vmem:[#allocation2 + $0x98] sm:$0x1] }
 0x109   : > { %v961_v17 = vld [vmem:[#allocation2 + $0x8c] sm:$0x1] }
 0x10a   : > { %v4888_v59 = vpop.f32.mrf.mxu3  ;;  %1864 = vmatmul.bf16.gmra.mxu1 %v4883_v30 }
 0x10b   : > { %5487 = vst [vmem:[#allocation23_spill] sm:$0xff] %v4888_v59  ;;  %v1432_v59 = vrot.slane %v1189_v57, 1  ;;  %v429_v57 = vsel %vm4520_vm10, 0, %v428_v6 }
 0x10c   : > { %430 = vst [vmem:[#allocation2 + $0x98] sm:$0x1] %v429_v57 }
 0x10d   : > { %2186 = vmatmul.bf16.gmra.mxu3 %v4524_v3  ;;  %v4894_v9 = vpop.f32.mrf.mxu0  ;;  %v3667_v3 = vld [vmem:[#allocation6 + $0x218] sm:$0xff]  ;;  %v4911_v2 = vsel %vm1406_vm0, %v1431_v4, %v1432_v59  ;;  %v962_v59 = vsel %vm4698_vm14, %v748_v55, %v961_v17  ;;  %v1434_v17 = vrot.slane %v4926_v39, 1 }
 0x10e   : > { %2815 = vmatpush.bf16.msra.mxu0 %v3667_v3  ;;  %5490 = vst [vmem:[#allocation26_spill] sm:$0xff] %v4911_v2  ;;  %v1174_v3 = vunpack.c.l.b16 %v1028_v42 }
 0x10f   : > { %v4908_v27 = vpop.f32.mrf.mxu1  ;;  %963 = vst [vmem:[#allocation2 + $0x8c] sm:$0x1] %v962_v59 }
 0x110   : > { %v4897_v61 = vpop.f32.mrf.mxu2  ;;  %2280 = vmatmul.bf16.gmra.mxu0 %v4883_v30  ;;  %v1304_v30 = vrot.slane %v1302_v24, 1  ;;  %v1190_v6 = vpack.c.b16 %v1174_v3, %v1174_v3 }
 0x111   : > { %5488 = vst [vmem:[#allocation24_spill] sm:$0xff] %v4897_v61 }
 0x112   : > { %v4906_v51 = vpop.f32.mrf.mxu3  ;;  %v4917_v23 = vsel %vm1197_vm15, %v1300_v7, %v1304_v30  ;;  %v1309_v30 = vshll.u32 %v4926_v39, 16  ;;  %v1307_v7 = vshrl.u32 %v4926_v39, 16  ;;  %v1314_v57 = vshll.u32 %v1190_v6, 16 }
 0x113   : > { %5489 = vst [vmem:[#allocation25_spill] sm:$0xff] %v4906_v51  ;;  %v529_v4 = vld [vmem:[#allocation2 + $0x98] sm:$0x1]  ;;  %v1435_v59 = vrot.slane %v1190_v6, 1  ;;  %v1175_v6 = vunpack.c.l.b16 %v1031_v20 }
 0x114   : > { %5491 = vst [vmem:[#allocation27_spill] sm:$0xff] %v4917_v23  ;;  %v1311_v55 = vrot.slane %v1309_v30, 1  ;;  %v431_v30 = vld [vmem:[#allocation2 + $0xa4] sm:$0x1] }
 0x115   : > { %v4904_v43 = vpop.f32.mrf.mxu0  ;;  %v4945_v26 = vsel %vm1406_vm0, %v1434_v17, %v1435_v59  ;;  %v1191_v20 = vpack.c.b16 %v1175_v6, %v1175_v6  ;;  %v4961_v17 = vld [vmem:[#allocation2 + $0x78] sm:$0xff] }
 0x116   : > { %5496 = vst [vmem:[#allocation32_spill] sm:$0xff] %v4945_v26  ;;  %v1321_v59 = vshll.u32 %v4961_v17, 16  ;;  %v1034_v28 = vld [vmem:[#allocation2 + $0x8c] sm:$0x1] }
 0x117   : > { %v4931_v42 = vpop.f32.mrf.mxu1 }
 0x118   : > { %1958 = vmatmul.bf16.gmra.mxu2 %v4911_v2  ;;  %v1316_v2 = vrot.slane %v1314_v57, 1  ;;  %v3650_v57 = vld [vmem:[#allocation6 + $0x190] sm:$0xff] }
 0x119   : > { %v4919_v54 = vpop.f32.mrf.mxu2  ;;  %2638 = vmatpush.bf16.msra.mxu2 %v3650_v57  ;;  %v1438_v57 = vrot.slane %v1191_v20, 1 }
 0x11a   : > { %5492 = vst [vmem:[#allocation28_spill] sm:$0xff] %v4919_v54  ;;  %1869 = vmatmul.bf16.gmra.mxu1 %v4917_v23 }
 0x11d   : > { %2191 = vmatmul.bf16.gmra.mxu3 %v4619_v11  ;;  %v2246_v34 = vpop.f32.mrf.mxu0  ;;  %v530_v11 = vsel %vm4674_vm12, 0, %v529_v4  ;;  %v432_v4 = vsel %vm4520_vm10, 0, %v431_v30 }
 0x11e   : > { %531 = vst [vmem:[#allocation2 + $0x98] sm:$0x1] %v530_v11 }
 0x11f   : > { %433 = vst [vmem:[#allocation2 + $0xa4] sm:$0x1] %v432_v4 }
 0x120   : > { %v4929_v24 = vpop.f32.mrf.mxu3  ;;  %2285 = vmatmul.bf16.gmra.mxu0 %v4917_v23 }
 0x121   : > { %5493 = vst [vmem:[#allocation29_spill] sm:$0xff] %v4929_v24  ;;  %v4937_v3 = vpop.f32.mrf.mxu2  ;;  %v1312_v24 = vor.u32 %v1311_v55, %v1307_v7 }
 0x122   : > { %5494 = vst [vmem:[#allocation30_spill] sm:$0xff] %v4937_v3 }
 0x123   : > { %v4951_v3 = vsel %vm1197_vm15, %v1312_v24, %v1316_v2  ;;  %v3658_v2 = vld [vmem:[#allocation6 + $0x1d0] sm:$0xff] }
 0x124   : > { %5497 = vst [vmem:[#allocation33_spill] sm:$0xff] %v4951_v3  ;;  %2727 = vmatpush.bf16.msra.mxu3 %v3658_v2 }
 0x125   : > { %v4940_v51 = vpop.f32.mrf.mxu0  ;;  %v968_v22 = vld [vmem:[#allocation2 + $0x98] sm:$0x1] }
 0x126   : > { %v969_v7 = vsel %vm4698_vm14, %v765_v8, %v968_v22  ;;  %v536_v8 = vld [vmem:[#allocation2 + $0xa4] sm:$0x1] }
 0x127   : > { %v1835_v11 = vpop.f32.mrf.mxu1  ;;  %970 = vst [vmem:[#allocation2 + $0x98] sm:$0x1] %v969_v7  ;;  %v1326_v7 = vshll.u32 %v1191_v20, 16  ;;  %v537_v6 = vsel %vm4674_vm12, 0, %v536_v8 }
 0x128   : > { %v4942_v23 = vpop.f32.mrf.mxu3  ;;  %1963 = vmatmul.bf16.gmra.mxu2 %v4945_v26  ;;  %v1836_v55 = vadd.f32 %v1835_v11, %v4770_v36  ;;  %v1323_v11 = vrot.slane %v1321_v59, 1  ;;  %v3666_v26 = vld [vmem:[#allocation6 + $0x210] sm:$0xff]  ;;  %538 = vst [vmem:[#allocation2 + $0xa4] sm:$0x1] %v537_v6  ;;  %v782_v6 = vrot.slane %v4325_v56, 4 }
 0x129   : > { %5495 = vst [vmem:[#allocation31_spill] sm:$0xff] %v4942_v23  ;;  %v3618_v23 = vld [vmem:[#allocation6 + $0x90] sm:$0xff]  ;;  %2816 = vmatpush.bf16.msra.mxu0 %v3666_v26  ;;  %v1176_v26 = vunpack.c.l.b16 %v1034_v28 }
 0x12a   : > { %1874 = vmatmul.bf16.gmra.mxu1 %v4951_v3 }
 0x12b   : > { %v1924_v24 = vpop.f32.mrf.mxu2  ;;  %2331 = vmatpush.bf16.msra.mxu1 %v3618_v23 }
 0x12c   : > { %v1925_v30 = vadd.f32 %v1924_v24, %v1836_v55  ;;  %v1437_v55 = vrot.slane %v4961_v17, 1 }
 0x12d   : > { %2196 = vmatmul.bf16.gmra.mxu3 %v4670_v35  ;;  %v4959_v1 = vpop.f32.mrf.mxu0  ;;  %v1319_v35 = vshrl.u32 %v4961_v17, 16 }
 0x12e   : > { %v4975_v61 = vsel %vm1406_vm0, %v1437_v55, %v1438_v57  ;;  %v1333_v55 = vshll.u32 %v4628_v19, 16 }
 0x12f   : > { %v1837_v4 = vpop.f32.mrf.mxu1  ;;  %v1324_v59 = vor.u32 %v1323_v11, %v1319_v35 }
 0x130   : > { %v2157_v22 = vpop.f32.mrf.mxu3  ;;  %2290 = vmatmul.bf16.gmra.mxu0 %v4951_v3  ;;  %v1838_v2 = vadd.f32 %v1837_v4, %v4786_v45  ;;  %v975_v4 = vld [vmem:[#allocation2 + $0xa4] sm:$0x1] }
 0x131   : > { %v2158_v36 = vadd.f32 %v2157_v22, %v1925_v30  ;;  %v1328_v22 = vrot.slane %v1326_v7, 1  ;;  %v976_v35 = vsel %vm4698_vm14, %v782_v6, %v975_v4  ;;  %v1192_v7 = vpack.c.b16 %v1176_v26, %v1176_v26 }
 0x132   : > { %977 = vst [vmem:[#allocation2 + $0xa4] sm:$0x1] %v976_v35  ;;  %v1440_v6 = vrot.slane %v4628_v19, 1 }
 0x133   : > { %v4968_v54 = vadd.f32 %v2246_v34, %v2158_v36  ;;  %v1926_v30 = vpop.f32.mrf.mxu2  ;;  %v434_v34 = vld [vmem:[#allocation2 + $0xb0] sm:$0x1]  ;;  %v4981_v23 = vsel %vm1197_vm15, %v1324_v59, %v1328_v22  ;;  %v1331_v59 = vshrl.u32 %v4628_v19, 16  ;;  %v1335_v22 = vrot.slane %v1333_v55, 1  ;;  %v1037_v55 = vld [vmem:[#allocation2 + $0x98] sm:$0x1] }
 0x134   : > { %v1927_v3 = vadd.f32 %v1926_v30, %v1838_v2  ;;  %v435_v45 = vsel %vm4520_vm10, 0, %v434_v34 }
 0x135   : > { %v4972_v24 = vpop.f32.mrf.mxu0  ;;  %436 = vst [vmem:[#allocation2 + $0xb0] sm:$0x1] %v435_v45  ;;  %v1441_v45 = vrot.slane %v1192_v7, 1  ;;  %v1336_v35 = vor.u32 %v1335_v22, %v1331_v59 }
 0x137   : > { %v1840_v20 = vpop.f32.mrf.mxu1 }
 0x138   : > { %v2159_v8 = vpop.f32.mrf.mxu3  ;;  %1968 = vmatmul.bf16.gmra.mxu2 %v4975_v61  ;;  %v1841_v56 = vadd.f32 %v1840_v20, %v4804_v15  ;;  %v1338_v15 = vshll.u32 %v1192_v7, 16 }
 0x139   : > { %v2160_v36 = vadd.f32 %v2159_v8, %v1927_v3 }
 0x13a   : > { %1879 = vmatmul.bf16.gmra.mxu1 %v4981_v23 }
 0x13b   : > { %v4987_v11 = vadd.f32 %v4940_v51, %v2160_v36  ;;  %v1929_v28 = vpop.f32.mrf.mxu2 }
 0x13c   : > { %v1930_v57 = vadd.f32 %v1929_v28, %v1841_v56  ;;  %v543_v8 = vld [vmem:[#allocation2 + $0xb0] sm:$0x1]  ;;  %v1340_v56 = vrot.slane %v1338_v15, 1 }
 0x13d   : > { %2201 = vmatmul.bf16.gmra.mxu3 %v4926_v39  ;;  %v4992_v3 = vpop.f32.mrf.mxu0  ;;  %v544_v34 = vsel %vm4674_vm12, 0, %v543_v8  ;;  %v437_v8 = vld [vmem:[#allocation2 + $0xbc] sm:$0x1] }
 0x13e   : > { %545 = vst [vmem:[#allocation2 + $0xb0] sm:$0x1] %v544_v34  ;;  %v438_v19 = vsel %vm4520_vm10, 0, %v437_v8 }
 0x13f   : > { %v1842_v51 = vpop.f32.mrf.mxu1  ;;  %439 = vst [vmem:[#allocation2 + $0xbc] sm:$0x1] %v438_v19  ;;  %v3617_v19 = vld [vmem:[#allocation6 + $0x88] sm:$0xff] }
 0x140   : > { %v2162_v2 = vpop.f32.mrf.mxu3  ;;  %2295 = vmatmul.bf16.gmra.mxu0 %v4981_v23  ;;  %v1843_v20 = vadd.f32 %v1842_v51, %v4829_v0  ;;  %v5013_v0 = vsel %vm1197_vm15, %v1336_v35, %v1340_v56  ;;  %v1177_v51 = vunpack.c.l.b16 %v1037_v55  ;;  %v1345_v35 = vshll.u32 %v4687_v52, 16  ;;  %2332 = vmatpush.bf16.msra.mxu1 %v3617_v19 }
 0x141   : > { %v2163_v30 = vadd.f32 %v2162_v2, %v1930_v57  ;;  %v5007_v2 = vsel %vm1406_vm0, %v1440_v6, %v1441_v45  ;;  %v3649_v6 = vld [vmem:[#allocation6 + $0x188] sm:$0xff] }
 0x142   : > { %v3657_v45 = vld [vmem:[#allocation6 + $0x1c8] sm:$0xff]  ;;  %2639 = vmatpush.bf16.msra.mxu2 %v3649_v6  ;;  %v1347_v8 = vrot.slane %v1345_v35, 1 }
 0x143   : > { %v5000_v36 = vadd.f32 %v4959_v1, %v2163_v30  ;;  %v1931_v4 = vpop.f32.mrf.mxu2  ;;  %v799_v30 = vrot.slane %v4443_v40, 4  ;;  %2728 = vmatpush.bf16.msra.mxu3 %v3657_v45 }
 0x144   : > { %v1932_v28 = vadd.f32 %v1931_v4, %v1843_v20  ;;  %v1193_v4 = vpack.c.b16 %v1177_v51, %v1177_v51 }
 0x145   : > { %v5004_v26 = vpop.f32.mrf.mxu0  ;;  %v982_v59 = vld [vmem:[#allocation2 + $0xb0] sm:$0x1] }
 0x146   : > { %v983_v15 = vsel %vm4698_vm14, %v799_v30, %v982_v59  ;;  %v1443_v59 = vrot.slane %v4687_v52, 1 }
 0x147   : > { %v1845_v7 = vpop.f32.mrf.mxu1  ;;  %984 = vst [vmem:[#allocation2 + $0xb0] sm:$0x1] %v983_v15  ;;  %v1444_v15 = vrot.slane %v1193_v4, 1 }
 0x148   : > { %v2164_v57 = vpop.f32.mrf.mxu3  ;;  %1973 = vmatmul.bf16.gmra.mxu2 %v5007_v2  ;;  %v1846_v40 = vadd.f32 %v1845_v7, %v4845_v46  ;;  %v3665_v7 = vld [vmem:[#allocation6 + $0x208] sm:$0xff] }
 0x149   : > { %v2165_v1 = vadd.f32 %v2164_v57, %v1932_v28  ;;  %v550_v28 = vld [vmem:[#allocation2 + $0xbc] sm:$0x1]  ;;  %v1343_v57 = vshrl.u32 %v4687_v52, 16  ;;  %2817 = vmatpush.bf16.msra.mxu0 %v3665_v7  ;;  %v816_v52 = vrot.slane %v4545_v37, 4 }
 0x14a   : > { %1884 = vmatmul.bf16.gmra.mxu1 %v5013_v0  ;;  %v551_v30 = vsel %vm4674_vm12, 0, %v550_v28 }
 0x14b   : > { %v5017_v22 = vadd.f32 %v4972_v24, %v2165_v1  ;;  %v1934_v20 = vpop.f32.mrf.mxu2  ;;  %v1350_v1 = vshll.u32 %v1193_v4, 16  ;;  %552 = vst [vmem:[#allocation2 + $0xbc] sm:$0x1] %v551_v30  ;;  %v5039_v30 = vsel %vm1406_vm0, %v1443_v59, %v1444_v15 }
 0x14c   : > { %v1935_v24 = vadd.f32 %v1934_v20, %v1846_v40  ;;  %v1348_v20 = vor.u32 %v1347_v8, %v1343_v57 }
 0x14d   : > { %2206 = vmatmul.bf16.gmra.mxu3 %v4961_v17  ;;  %v5024_v34 = vpop.f32.mrf.mxu0  ;;  %v1352_v35 = vrot.slane %v1350_v1, 1 }
 0x14f   : > { %v1847_v55 = vpop.f32.mrf.mxu1 }
 0x150   : > { %v2167_v56 = vpop.f32.mrf.mxu3  ;;  %2300 = vmatmul.bf16.gmra.mxu0 %v5013_v0  ;;  %v1848_v40 = vadd.f32 %v1847_v55, %v4871_v62  ;;  %v5045_v55 = vsel %vm1197_vm15, %v1348_v20, %v1352_v35 }
 0x151   : > { %v2168_v46 = vadd.f32 %v2167_v56, %v1935_v24  ;;  %v1040_v56 = vld [vmem:[#allocation2 + $0xa4] sm:$0x1] }
 0x152   : > { %v1178_v19 = vunpack.c.l.b16 %v1040_v56  ;;  %v989_v57 = vld [vmem:[#allocation2 + $0xbc] sm:$0x1] }
 0x153   : > { %v5032_v51 = vadd.f32 %v4992_v3, %v2168_v46  ;;  %v1936_v45 = vpop.f32.mrf.mxu2  ;;  %v440_v3 = vld [vmem:[#allocation2 + $0xc8] sm:$0x1]  ;;  %v990_v8 = vsel %vm4698_vm14, %v816_v52, %v989_v57 }
 0x154   : > { %v1937_v24 = vadd.f32 %v1936_v45, %v1848_v40  ;;  %v441_v62 = vsel %vm4520_vm10, 0, %v440_v3  ;;  %991 = vst [vmem:[#allocation2 + $0xbc] sm:$0x1] %v990_v8  ;;  %v1194_v15 = vpack.c.b16 %v1178_v19, %v1178_v19  ;;  %v5058_v40 = vld [vmem:[#allocation2 + $0x9c] sm:$0xff] }
 0x155   : > { %v5036_v6 = vpop.f32.mrf.mxu0  ;;  %442 = vst [vmem:[#allocation2 + $0xc8] sm:$0x1] %v441_v62  ;;  %v1357_v45 = vshll.u32 %v5058_v40, 16  ;;  %v1355_v56 = vshrl.u32 %v5058_v40, 16  ;;  %v1446_v62 = vrot.slane %v5058_v40, 1 }
 0x156   : > { %v1362_v3 = vshll.u32 %v1194_v15, 16 }
 0x157   : > { %v1850_v4 = vpop.f32.mrf.mxu1 }
 0x158   : > { %v2169_v28 = vpop.f32.mrf.mxu3  ;;  %1978 = vmatmul.bf16.gmra.mxu2 %v5039_v30  ;;  %v1851_v37 = vadd.f32 %v1850_v4, %v4894_v9  ;;  %v1447_v4 = vrot.slane %v1194_v15, 1 }
 0x159   : > { %v2170_v46 = vadd.f32 %v2169_v28, %v1937_v24  ;;  %v1359_v28 = vrot.slane %v1357_v45, 1 }
 0x15a   : > { %1889 = vmatmul.bf16.gmra.mxu1 %v5045_v55 }
 0x15b   : > { %v5051_v1 = vadd.f32 %v5004_v26, %v2170_v46  ;;  %v1939_v59 = vpop.f32.mrf.mxu2 }
 0x15c   : > { %v1940_v20 = vadd.f32 %v1939_v59, %v1851_v37  ;;  %v557_v24 = vld [vmem:[#allocation2 + $0xc8] sm:$0x1]  ;;  %v1360_v37 = vor.u32 %v1359_v28, %v1355_v56  ;;  %v1364_v59 = vrot.slane %v1362_v3, 1  ;;  %v3648_v3 = vld [vmem:[#allocation6 + $0x180] sm:$0xff] }
 0x15d   : > { %5498 = vst [vmem:[#allocation34_spill] sm:$0xff] %v5051_v1  ;;  %2211 = vmatmul.bf16.gmra.mxu3 %v5055_v31  ;;  %v2266_v7 = vpop.f32.mrf.mxu0  ;;  %v558_v46 = vsel %vm4674_vm12, 0, %v557_v24  ;;  %v5071_v1 = vsel %vm1406_vm0, %v1446_v62, %v1447_v4  ;;  %v833_v24 = vrot.slane %v4640_v33, 4  ;;  %v5085_v33 = vld [vmem:[#allocation2 + $0x90] sm:$0xff]  ;;  %v3656_v62 = vld [vmem:[#allocation6 + $0x1c0] sm:$0xff]  ;;  %2640 = vmatpush.bf16.msra.mxu2 %v3648_v3 }
 0x15e   : > { %559 = vst [vmem:[#allocation2 + $0xc8] sm:$0x1] %v558_v46  ;;  %2729 = vmatpush.bf16.msra.mxu3 %v3656_v62 }
 0x15f   : > { %v1852_v9 = vpop.f32.mrf.mxu1 }
 0x160   : > { %v2172_v35 = vpop.f32.mrf.mxu3  ;;  %2305 = vmatmul.bf16.gmra.mxu0 %v5045_v55  ;;  %v1853_v19 = vadd.f32 %v1852_v9, %v4904_v43 }
 0x161   : > { %v2173_v26 = vadd.f32 %v2172_v35, %v1940_v20  ;;  %v1043_v35 = vld [vmem:[#allocation2 + $0xb0] sm:$0x1] }
 0x162   : > { %v1179_v15 = vunpack.c.l.b16 %v1043_v35 }
 0x163   : > { %v5066_v52 = vadd.f32 %v5024_v34, %v2173_v26  ;;  %v1941_v8 = vpop.f32.mrf.mxu2  ;;  %v5075_v26 = vsel %vm1197_vm15, %v1360_v37, %v1364_v59 }
 0x164   : > { %v1942_v20 = vadd.f32 %v1941_v8, %v1853_v19  ;;  %v1195_v19 = vpack.c.b16 %v1179_v15, %v1179_v15  ;;  %v5088_v8 = vld [vmem:[#allocation2 + $0xa8] sm:$0xff] }
 0x165   : > { %5499 = vst [vmem:[#allocation35_spill] sm:$0xff] %v5066_v52  ;;  %v2268_v57 = vpop.f32.mrf.mxu0  ;;  %v996_v46 = vld [vmem:[#allocation2 + $0xc8] sm:$0x1]  ;;  %v1369_v63 = vshll.u32 %v5088_v8, 16  ;;  %v1449_v15 = vrot.slane %v5088_v8, 1 }
 0x166   : > { %v997_v43 = vsel %vm4698_vm14, %v833_v24, %v996_v46  ;;  %v3664_v24 = vld [vmem:[#allocation6 + $0x200] sm:$0xff]  ;;  %v1450_v46 = vrot.slane %v1195_v19, 1 }
 0x167   : > { %v1855_v34 = vpop.f32.mrf.mxu1  ;;  %998 = vst [vmem:[#allocation2 + $0xc8] sm:$0x1] %v997_v43  ;;  %v1371_v35 = vrot.slane %v1369_v63, 1  ;;  %2818 = vmatpush.bf16.msra.mxu0 %v3664_v24 }
 0x168   : > { %v2174_v45 = vpop.f32.mrf.mxu3  ;;  %1983 = vmatmul.bf16.gmra.mxu2 %v5071_v1  ;;  %v1856_v56 = vadd.f32 %v1855_v34, %v4790_v13  ;;  %v5098_v63 = vsel %vm1406_vm0, %v1449_v15, %v1450_v46 }
 0x169   : > { %v2175_v10 = vadd.f32 %v2174_v45, %v1942_v20  ;;  %v1367_v20 = vshrl.u32 %v5088_v8, 16  ;;  %v1374_v45 = vshll.u32 %v1195_v19, 16 }
 0x16a   : > { %1894 = vmatmul.bf16.gmra.mxu1 %v5075_v26 }
 0x16b   : > { %v5081_v9 = vadd.f32 %v5036_v6, %v2175_v10  ;;  %v1944_v4 = vpop.f32.mrf.mxu2  ;;  %v3616_v10 = vld [vmem:[#allocation6 + $0x80] sm:$0xff]  ;;  %v1372_v62 = vor.u32 %v1371_v35, %v1367_v20 }
 0x16c   : > { %v1945_v6 = vadd.f32 %v1944_v4, %v1856_v56  ;;  %2333 = vmatpush.bf16.msra.mxu1 %v3616_v10  ;;  %v1376_v4 = vrot.slane %v1374_v45, 1  ;;  %v5109_v10 = vld [vmem:[#allocation2 + $0xb4] sm:$0xff] }
 0x16d   : > { %5500 = vst [vmem:[#allocation36_spill] sm:$0xff] %v5081_v9  ;;  %2216 = vmatmul.bf16.gmra.mxu3 %v5085_v33  ;;  %v2271_v28 = vpop.f32.mrf.mxu0 }
 0x16f   : > { %v1857_v59 = vpop.f32.mrf.mxu1 }
 0x170   : > { %v2177_v37 = vpop.f32.mrf.mxu3  ;;  %2310 = vmatmul.bf16.gmra.mxu0 %v5075_v26  ;;  %v1858_v43 = vadd.f32 %v1857_v59, %v4800_v60 }
 0x171   : > { %v2178_v13 = vadd.f32 %v2177_v37, %v1945_v6  ;;  %v1046_v37 = vld [vmem:[#allocation2 + $0xbc] sm:$0x1] }
 0x172   : > { %v1180_v19 = vunpack.c.l.b16 %v1046_v37 }
 0x173   : > { %v5093_v34 = vadd.f32 %v2266_v7, %v2178_v13  ;;  %v1946_v3 = vpop.f32.mrf.mxu2  ;;  %v5101_v13 = vsel %vm1197_vm15, %v1372_v62, %v1376_v4  ;;  %v1452_v62 = vrot.slane %v5109_v10, 1 }
 0x174   : > { %v1947_v6 = vadd.f32 %v1946_v3, %v1858_v43  ;;  %v1196_v45 = vpack.c.b16 %v1180_v19, %v1180_v19 }
 0x175   : > { %5501 = vst [vmem:[#allocation37_spill] sm:$0xff] %v5093_v34  ;;  %v2273_v56 = vpop.f32.mrf.mxu0 }
 0x176   : > { %v1386_v43 = vshll.u32 %v1196_v45, 16  ;;  %v1453_v4 = vrot.slane %v1196_v45, 1 }
 0x177   : > { %v1860_v7 = vpop.f32.mrf.mxu1 }
 0x178   : > { %v2179_v9 = vpop.f32.mrf.mxu3  ;;  %1988 = vmatmul.bf16.gmra.mxu2 %v5098_v63  ;;  %v1861_v59 = vadd.f32 %v1860_v7, %v4824_v12 }
 0x179   : > { %v2180_v52 = vadd.f32 %v2179_v9, %v1947_v6  ;;  %v1381_v9 = vshll.u32 %v5109_v10, 16 }
 0x17a   : > { %1899 = vmatmul.bf16.gmra.mxu1 %v5101_v13 }
 0x17b   : > { %v5104_v60 = vadd.f32 %v2268_v57, %v2180_v52  ;;  %v1949_v35 = vpop.f32.mrf.mxu2  ;;  %v1379_v57 = vshrl.u32 %v5109_v10, 16  ;;  %v1383_v12 = vrot.slane %v1381_v9, 1 }
 0x17c   : > { %v1950_v24 = vadd.f32 %v1949_v35, %v1861_v59  ;;  %v1388_v59 = vrot.slane %v1386_v43, 1  ;;  %v5130_v43 = vld [vmem:[#allocation2 + $0xc0] sm:$0xff] }
 0x17d   : > { %5502 = vst [vmem:[#allocation38_spill] sm:$0xff] %v5104_v60  ;;  %2221 = vmatmul.bf16.gmra.mxu3 %v5058_v40  ;;  %v2276_v20 = vpop.f32.mrf.mxu0  ;;  %v1384_v19 = vor.u32 %v1383_v12, %v1379_v57  ;;  %v1049_v60 = vld [vmem:[#allocation2 + $0xc8] sm:$0x1] }
 0x17f   : > { %v1862_v52 = vpop.f32.mrf.mxu1 }
 0x180   : > { %v2182_v15 = vpop.f32.mrf.mxu3  ;;  %2315 = vmatmul.bf16.gmra.mxu0 %v5101_v13  ;;  %v1863_v6 = vadd.f32 %v1862_v52, %v4843_v49 }
 0x181   : > { %v2183_v46 = vadd.f32 %v2182_v15, %v1950_v24  ;;  %v5119_v24 = vsel %vm1406_vm0, %v1452_v62, %v1453_v4 }
 0x183   : > { %v5114_v3 = vadd.f32 %v2271_v28, %v2183_v46  ;;  %v1951_v7 = vpop.f32.mrf.mxu2  ;;  %v5122_v28 = vsel %vm1197_vm15, %v1384_v19, %v1388_v59  ;;  %v1526_v46 = vunpack.c.l.b16 %v1049_v60  ;;  %v1541_v59 = vrot.slane %v5130_v43, 1 }
 0x184   : > { %v1952_v35 = vadd.f32 %v1951_v7, %v1863_v6  ;;  %5504 = vst [vmem:[#allocation40_spill] sm:$0xff] %v5122_v28  ;;  %v1529_v6 = vshrl.u32 %v5130_v43, 16 }
 0x185   : > { %5503 = vst [vmem:[#allocation39_spill] sm:$0xff] %v5114_v3  ;;  %v2278_v37 = vpop.f32.mrf.mxu0  ;;  %v1527_v12 = vpack.c.b16 %v1526_v46, %v1526_v46 }
 0x187   : > { %v1865_v9 = vpop.f32.mrf.mxu1  ;;  %v1536_v7 = vshll.u32 %v1527_v12, 16 }
 0x188   : > { %v2184_v34 = vpop.f32.mrf.mxu3  ;;  %1993 = vmatmul.bf16.gmra.mxu2 %v5119_v24  ;;  %v1866_v49 = vadd.f32 %v1865_v9, %v4866_v21 }
 0x189   : > { %v2185_v15 = vadd.f32 %v2184_v34, %v1952_v35  ;;  %v1531_v34 = vshll.u32 %v5130_v43, 16  ;;  %v1542_v35 = vrot.slane %v1527_v12, 1 }
 0x18a   : > { %1904 = vmatmul.bf16.gmra.mxu1 %v5122_v28 }
 0x18b   : > { %v5125_v45 = vadd.f32 %v2273_v56, %v2185_v15  ;;  %v1954_v57 = vpop.f32.mrf.mxu2  ;;  %v1533_v21 = vrot.slane %v1531_v34, 1 }
 0x18c   : > { %v1955_v62 = vadd.f32 %v1954_v57, %v1866_v49  ;;  %v1538_v49 = vrot.slane %v1536_v7, 1 }
 0x18d   : > { %5505 = vst [vmem:[#allocation41_spill] sm:$0xff] %v5125_v45  ;;  %2226 = vmatmul.bf16.gmra.mxu3 %v5088_v8  ;;  %v2281_v52 = vpop.f32.mrf.mxu0  ;;  %v1534_v45 = vor.u32 %v1533_v21, %v1529_v6 }
 0x18f   : > { %v1867_v56 = vpop.f32.mrf.mxu1  ;;  %v5143_v34 = vsel %vm1197_vm15, %v1534_v45, %v1538_v49 }
 0x190   : > { %v2187_v4 = vpop.f32.mrf.mxu3  ;;  %2320 = vmatmul.bf16.gmra.mxu0 %v5122_v28  ;;  %v1868_v15 = vadd.f32 %v1867_v56, %v4890_v47 }
 0x191   : > { %v2188_v60 = vadd.f32 %v2187_v4, %v1955_v62  ;;  %v5140_v62 = vsel %vm1406_vm0, %v1541_v59, %v1542_v35  ;;  %v3891_v35 = vld [vmem:[#allocation2] sm:$0xff] }
 0x193   : > { %v5135_v19 = vadd.f32 %v2276_v20, %v2188_v60  ;;  %v1956_v46 = vpop.f32.mrf.mxu2 }
 0x194   : > { %v1957_v57 = vadd.f32 %v1956_v46, %v1868_v15 }
 0x195   : > { %v2283_v9 = vpop.f32.mrf.mxu0 }
 0x197   : > { %v1870_v28 = vpop.f32.mrf.mxu1 }
 0x198   : > { %v2189_v3 = vpop.f32.mrf.mxu3  ;;  %1998 = vmatmul.bf16.gmra.mxu2 %v5140_v62  ;;  %v1871_v47 = vadd.f32 %v1870_v28, %v4908_v27  ;;  %v1407_v27 = vrot.slane %v3891_v35, 1  ;;  %v1408_v28 = vrot.slane %v4680_v50, 1 }
 0x199   : > { %v2190_v4 = vadd.f32 %v2189_v3, %v1957_v57 }
 0x19a   : > { %1909 = vmatmul.bf16.gmra.mxu1 %v5143_v34 }
 0x19b   : > { %v5146_v20 = vadd.f32 %v2278_v37, %v2190_v4  ;;  %v1959_v60 = vpop.f32.mrf.mxu2  ;;  %v1409_v4 = vsel %vm1406_vm0, %v1407_v27, %v1408_v28 }
 0x19c   : > { %v1960_v56 = vadd.f32 %v1959_v60, %v1871_v47  ;;  %v3892_v47 = vld [vmem:[#allocation2 + $0x18] sm:$0xff] }
 0x19d   : > { %2231 = vmatmul.bf16.gmra.mxu3 %v5109_v10  ;;  %v2286_v12 = vpop.f32.mrf.mxu0 }
 0x19f   : > { %v1872_v21 = vpop.f32.mrf.mxu1 }
 0x1a0   : > { %v2192_v6 = vpop.f32.mrf.mxu3  ;;  %2819 = vmatmul.bf16.vlgmr.msra.gmra.mxu0 %v4735_v25  ;;  %v1873_v7 = vadd.f32 %v1872_v21, %v4931_v42 }
 0x1a1   : > { %v2193_v3 = vadd.f32 %v2192_v6, %v1960_v56 }
 0x1a3   : > { %v5152_v45 = vadd.f32 %v2281_v52, %v2193_v3  ;;  %v1961_v59 = vpop.f32.mrf.mxu2 }
 0x1a4   : > { %v1962_v15 = vadd.f32 %v1961_v59, %v1873_v7 }
 0x1a5   : > { %v2288_v37 = vpop.f32.mrf.mxu0 }
 0x1a7   : > { %v1875_v57 = vpop.f32.mrf.mxu1 }
 0x1a8   : > { %v2194_v46 = vpop.f32.mrf.mxu3  ;;  %2641 = vmatmul.bf16.vlgmr.msra.gmra.mxu2 %v3892_v47  ;;  %v1876_v42 = vadd.f32 %v1875_v57, %v4802_v41 }
 0x1a9   : > { %v2195_v49 = vadd.f32 %v2194_v46, %v1962_v15  ;;  %v3893_v15 = vld [vmem:[#allocation2 + $0x24] sm:$0xff] }
 0x1aa   : > { %2334 = vmatmul.bf16.vlgmr.msra.gmra.mxu1 %v1409_v4 }
 0x1ab   : > { %v5157_v52 = vadd.f32 %v2283_v9, %v2195_v49  ;;  %v1964_v56 = vpop.f32.mrf.mxu2 }
 0x1ac   : > { %v1965_v50 = vadd.f32 %v1964_v56, %v1876_v42 }
 0x1ad   : > { %2730 = vmatmul.bf16.vlgmr.msra.gmra.mxu3 %v4741_v29  ;;  %v2291_v60 = vpop.f32.mrf.mxu0 }
 0x1af   : > { %v1877_v21 = vpop.f32.mrf.mxu1 }
 0x1b0   : > { %v2197_v6 = vpop.f32.mrf.mxu3  ;;  %2824 = vmatmul.bf16.gmra.mxu0 %v4755_v5  ;;  %v1878_v29 = vadd.f32 %v1877_v21, %v4822_v53 }
 0x1b1   : > { %v2198_v3 = vadd.f32 %v2197_v6, %v1965_v50 }
 0x1b3   : > { %v5170_v41 = vadd.f32 %v2286_v12, %v2198_v3  ;;  %v1966_v7 = vpop.f32.mrf.mxu2 }
 0x1b4   : > { %v1967_v59 = vadd.f32 %v1966_v7, %v1878_v29  ;;  %v3894_v29 = vld [vmem:[#allocation2 + $0x30] sm:$0xff] }
 0x1b5   : > { %v2293_v9 = vpop.f32.mrf.mxu0 }
 0x1b7   : > { %v1880_v28 = vpop.f32.mrf.mxu1 }
 0x1b8   : > { %v2199_v35 = vpop.f32.mrf.mxu3  ;;  %2646 = vmatmul.bf16.gmra.mxu2 %v3893_v15  ;;  %v1881_v49 = vadd.f32 %v1880_v28, %v4836_v58 }
 0x1b9   : > { %v2200_v27 = vadd.f32 %v2199_v35, %v1967_v59 }
 0x1ba   : > { %2339 = vmatmul.bf16.gmra.mxu1 %v4722_v18 }
 0x1bb   : > { %v5173_v46 = vadd.f32 %v2288_v37, %v2200_v27  ;;  %v1969_v57 = vpop.f32.mrf.mxu2 }
 0x1bc   : > { %v1970_v4 = vadd.f32 %v1969_v57, %v1881_v49  ;;  %v5506_v49 = vld [vmem:[#allocation24_spill] sm:$0xff] }
 0x1bd   : > { %2735 = vmatmul.bf16.gmra.mxu3 %v4761_v48  ;;  %v2296_v12 = vpop.f32.mrf.mxu0 }
 0x1bf   : > { %v1882_v42 = vpop.f32.mrf.mxu1 }
 0x1c0   : > { %v2202_v53 = vpop.f32.mrf.mxu3  ;;  %2829 = vmatmul.bf16.gmra.mxu0 %v4777_v32  ;;  %v1883_v50 = vadd.f32 %v1882_v42, %v4860_v38  ;;  %v5507_v42 = vld [vmem:[#allocation19_spill] sm:$0xff] }
 0x1c1   : > { %v2203_v47 = vadd.f32 %v2202_v53, %v1970_v4 }
 0x1c3   : > { %v5179_v56 = vadd.f32 %v2291_v60, %v2203_v47  ;;  %v1971_v6 = vpop.f32.mrf.mxu2 }
 0x1c4   : > { %v1972_v3 = vadd.f32 %v1971_v6, %v1883_v50  ;;  %v5508_v50 = vld [vmem:[#allocation28_spill] sm:$0xff] }
 0x1c5   : > { %v2298_v37 = vpop.f32.mrf.mxu0 }
 0x1c7   : > { %v1885_v18 = vpop.f32.mrf.mxu1 }
 0x1c8   : > { %v2204_v58 = vpop.f32.mrf.mxu3  ;;  %2651 = vmatmul.bf16.gmra.mxu2 %v3894_v29  ;;  %v1886_v7 = vadd.f32 %v1885_v18, %v4874_v14  ;;  %v5510_v29 = vld [vmem:[#allocation16_spill] sm:$0xff] }
 0x1c9   : > { %v2205_v21 = vadd.f32 %v2204_v58, %v1972_v3  ;;  %v5509_v3 = vld [vmem:[#allocation14_spill] sm:$0xff] }
 0x1ca   : > { %2344 = vmatmul.bf16.gmra.mxu1 %v4735_v25 }
 0x1cb   : > { %v5182_v48 = vadd.f32 %v2293_v9, %v2205_v21  ;;  %v1974_v59 = vpop.f32.mrf.mxu2 }
 0x1cc   : > { %v1975_v35 = vadd.f32 %v1974_v59, %v1886_v7 }
 0x1cd   : > { %2740 = vmatmul.bf16.gmra.mxu3 %v4783_v44  ;;  %v2301_v60 = vpop.f32.mrf.mxu0 }
 0x1cf   : > { %v1887_v28 = vpop.f32.mrf.mxu1 }
 0x1d0   : > { %v2207_v38 = vpop.f32.mrf.mxu3  ;;  %2834 = vmatmul.bf16.gmra.mxu0 %v4809_v16  ;;  %v1888_v57 = vadd.f32 %v1887_v28, %v5506_v49 }
 0x1d1   : > { %v2208_v27 = vadd.f32 %v2207_v38, %v1975_v35  ;;  %v5511_v38 = vld [vmem:[#allocation30_spill] sm:$0xff] }
 0x1d3   : > { %v5188_v15 = vadd.f32 %v2296_v12, %v2208_v27  ;;  %v1976_v4 = vpop.f32.mrf.mxu2 }
 0x1d4   : > { %v1977_v53 = vadd.f32 %v1976_v4, %v1888_v57 }
 0x1d5   : > { %v2303_v9 = vpop.f32.mrf.mxu0 }
 0x1d7   : > { %v1890_v25 = vpop.f32.mrf.mxu1 }
 0x1d8   : > { %v2209_v14 = vpop.f32.mrf.mxu3  ;;  %2656 = vmatmul.bf16.gmra.mxu2 %v5507_v42  ;;  %v1891_v6 = vadd.f32 %v1890_v25, %v5508_v50  ;;  %v5513_v42 = vld [vmem:[#allocation18_spill] sm:$0xff] }
 0x1d9   : > { %v2210_v47 = vadd.f32 %v2209_v14, %v1977_v53  ;;  %v3895_v53 = vld [vmem:[#allocation2 + $0x48] sm:$0xff] }
 0x1da   : > { %2349 = vmatmul.bf16.gmra.mxu1 %v4755_v5 }
 0x1db   : > { %v5192_v44 = vadd.f32 %v2298_v37, %v2210_v47  ;;  %v1979_v58 = vpop.f32.mrf.mxu2  ;;  %v5512_v47 = vld [vmem:[#allocation13_spill] sm:$0xff] }
 0x1dc   : > { %v1980_v21 = vadd.f32 %v1979_v58, %v1891_v6  ;;  %v5514_v58 = vld [vmem:[#allocation21_spill] sm:$0xff] }
 0x1dd   : > { %2745 = vmatmul.bf16.gmra.mxu3 %v5509_v3  ;;  %v2306_v12 = vpop.f32.mrf.mxu0 }
 0x1df   : > { %v1892_v59 = vpop.f32.mrf.mxu1 }
 0x1e0   : > { %v2212_v18 = vpop.f32.mrf.mxu3  ;;  %2839 = vmatmul.bf16.gmra.mxu0 %v5510_v29  ;;  %v1893_v27 = vadd.f32 %v1892_v59, %v5511_v38  ;;  %v5515_v59 = vld [vmem:[#allocation15_spill] sm:$0xff] }
 0x1e1   : > { %v2213_v7 = vadd.f32 %v2212_v18, %v1980_v21 }
 0x1e3   : > { %v5198_v35 = vadd.f32 %v2301_v60, %v2213_v7  ;;  %v1981_v28 = vpop.f32.mrf.mxu2 }
 0x1e4   : > { %v1982_v49 = vadd.f32 %v1981_v28, %v1893_v27 }
 0x1e5   : > { %v2308_v37 = vpop.f32.mrf.mxu0 }
 0x1e7   : > { %v1895_v5 = vpop.f32.mrf.mxu1 }
 0x1e8   : > { %v2214_v57 = vpop.f32.mrf.mxu3  ;;  %2661 = vmatmul.bf16.gmra.mxu2 %v3895_v53  ;;  %v1896_v25 = vadd.f32 %v1895_v5, %v5512_v47  ;;  %v5516_v53 = vld [vmem:[#allocation17_spill] sm:$0xff] }
 0x1e9   : > { %v2215_v4 = vadd.f32 %v2214_v57, %v1982_v49 }
 0x1ea   : > { %2354 = vmatmul.bf16.gmra.mxu1 %v4777_v32 }
 0x1eb   : > { %v5201_v14 = vadd.f32 %v2303_v9, %v2215_v4  ;;  %v1984_v50 = vpop.f32.mrf.mxu2  ;;  %v3896_v4 = vld [vmem:[#allocation2 + $0x54] sm:$0xff] }
 0x1ec   : > { %v1985_v6 = vadd.f32 %v1984_v50, %v1896_v25  ;;  %v5517_v25 = vld [vmem:[#allocation22_spill] sm:$0xff] }
 0x1ed   : > { %2750 = vmatmul.bf16.gmra.mxu3 %v5513_v42  ;;  %v2311_v60 = vpop.f32.mrf.mxu0 }
 0x1ef   : > { %v1897_v18 = vpop.f32.mrf.mxu1 }
 0x1f0   : > { %v2217_v3 = vpop.f32.mrf.mxu3  ;;  %2844 = vmatmul.bf16.gmra.mxu0 %v5514_v58  ;;  %v1898_v38 = vadd.f32 %v1897_v18, %v5515_v59 }
 0x1f1   : > { %v2218_v21 = vadd.f32 %v2217_v3, %v1985_v6  ;;  %v5518_v3 = vld [vmem:[#allocation26_spill] sm:$0xff] }
 0x1f3   : > { %v5207_v7 = vadd.f32 %v2306_v12, %v2218_v21  ;;  %v1986_v27 = vpop.f32.mrf.mxu2 }
 0x1f4   : > { %v1987_v28 = vadd.f32 %v1986_v27, %v1898_v38  ;;  %v5519_v38 = vld [vmem:[#allocation20_spill] sm:$0xff] }
 0x1f5   : > { %v2313_v9 = vpop.f32.mrf.mxu0 }
 0x1f7   : > { %v1900_v32 = vpop.f32.mrf.mxu1 }
 0x1f8   : > { %v2219_v49 = vpop.f32.mrf.mxu3  ;;  %2666 = vmatmul.bf16.gmra.mxu2 %v3896_v4  ;;  %v1901_v47 = vadd.f32 %v1900_v32, %v5516_v53  ;;  %v3897_v4 = vld [vmem:[#allocation2 + $0x60] sm:$0xff] }
 0x1f9   : > { %v2220_v57 = vadd.f32 %v2219_v49, %v1987_v28 }
 0x1fa   : > { %2359 = vmatmul.bf16.gmra.mxu1 %v4809_v16 }
 0x1fb   : > { %v5210_v5 = vadd.f32 %v2308_v37, %v2220_v57  ;;  %v1989_v42 = vpop.f32.mrf.mxu2 }
 0x1fc   : > { %v1990_v50 = vadd.f32 %v1989_v42, %v1901_v47  ;;  %v5520_v47 = vld [vmem:[#allocation23_spill] sm:$0xff] }
 0x1fd   : > { %2755 = vmatmul.bf16.gmra.mxu3 %v5517_v25  ;;  %v2316_v12 = vpop.f32.mrf.mxu0  ;;  %v5521_v42 = vld [vmem:[#allocation27_spill] sm:$0xff] }
 0x1ff   : > { %v1902_v18 = vpop.f32.mrf.mxu1 }
 0x200   : > { %v2222_v6 = vpop.f32.mrf.mxu3  ;;  %2849 = vmatmul.bf16.gmra.mxu0 %v5518_v3  ;;  %v1903_v27 = vadd.f32 %v1902_v18, %v5519_v38  ;;  %v5522_v18 = vld [vmem:[#allocation32_spill] sm:$0xff] }
 0x201   : > { %v2223_v21 = vadd.f32 %v2222_v6, %v1990_v50 }
 0x203   : > { %v5216_v59 = vadd.f32 %v2311_v60, %v2223_v21  ;;  %v1991_v28 = vpop.f32.mrf.mxu2 }
 0x204   : > { %v1992_v49 = vadd.f32 %v1991_v28, %v1903_v27 }
 0x205   : > { %v2318_v37 = vpop.f32.mrf.mxu0 }
 0x207   : > { %v1905_v16 = vpop.f32.mrf.mxu1 }
 0x208   : > { %v2224_v57 = vpop.f32.mrf.mxu3  ;;  %2671 = vmatmul.bf16.gmra.mxu2 %v3897_v4  ;;  %v1906_v25 = vadd.f32 %v1905_v16, %v5520_v47 }
 0x209   : > { %v2225_v32 = vadd.f32 %v2224_v57, %v1992_v49  ;;  %v5523_v49 = vld [vmem:[#allocation25_spill] sm:$0xff] }
 0x20a   : > { %2364 = vmatmul.bf16.gmra.mxu1 %v5510_v29 }
 0x20b   : > { %v5219_v53 = vadd.f32 %v2313_v9, %v2225_v32  ;;  %v1994_v50 = vpop.f32.mrf.mxu2 }
 0x20c   : > { %v1995_v6 = vadd.f32 %v1994_v50, %v1906_v25  ;;  %v5524_v25 = vld [vmem:[#allocation29_spill] sm:$0xff] }
 0x20d   : > { %2760 = vmatmul.bf16.gmra.mxu3 %v5521_v42  ;;  %v2321_v60 = vpop.f32.mrf.mxu0 }
 0x20f   : > { %v1907_v27 = vpop.f32.mrf.mxu1 }
 0x210   : > { %v2227_v21 = vpop.f32.mrf.mxu3  ;;  %2854 = vmatmul.bf16.gmra.mxu0 %v5522_v18  ;;  %v1908_v57 = vadd.f32 %v1907_v27, %v5523_v49 }
 0x211   : > { %v2228_v38 = vadd.f32 %v2227_v21, %v1995_v6  ;;  %v5525_v6 = vld [vmem:[#allocation33_spill] sm:$0xff] }
 0x213   : > { %v5225_v28 = vadd.f32 %v2316_v12, %v2228_v38  ;;  %v1996_v32 = vpop.f32.mrf.mxu2 }
 0x214   : > { %v1997_v4 = vadd.f32 %v1996_v32, %v1908_v57 }
 0x215   : > { %v2323_v9 = vpop.f32.mrf.mxu0 }
 0x217   : > { %v1910_v29 = vpop.f32.mrf.mxu1 }
 0x218   : > { %v2229_v16 = vpop.f32.mrf.mxu3  ;;  %2676 = vmatmul.bf16.gmra.mxu2 %v4926_v39  ;;  %v1911_v50 = vadd.f32 %v1910_v29, %v5524_v25 }
 0x219   : > { %v2230_v47 = vadd.f32 %v2229_v16, %v1997_v4  ;;  %v5526_v4 = vld [vmem:[#allocation31_spill] sm:$0xff] }
 0x21a   : > { %2369 = vmatmul.bf16.gmra.mxu1 %v5514_v58 }
 0x21b   : > { %v5229_v42 = vadd.f32 %v2318_v37, %v2230_v47  ;;  %v1999_v21 = vpop.f32.mrf.mxu2 }
 0x21c   : > { %v2000_v38 = vadd.f32 %v1999_v21, %v1911_v50 }
 0x21d   : > { %2765 = vmatmul.bf16.gmra.mxu3 %v5525_v6  ;;  %v2820_v12 = vpop.f32.mrf.mxu0 }
 0x21f   : > { %v1912_v57 = vpop.f32.mrf.mxu1 }
 0x220   : > { %v2232_v27 = vpop.f32.mrf.mxu3  ;;  %2859 = vmatmul.bf16.gmra.mxu0 %v4975_v61  ;;  %v1913_v39 = vadd.f32 %v1912_v57, %v5526_v4 }
 0x221   : > { %v2233_v49 = vadd.f32 %v2232_v27, %v2000_v38 }
 0x223   : > { %v5235_v32 = vadd.f32 %v2321_v60, %v2233_v49  ;;  %v2001_v16 = vpop.f32.mrf.mxu2 }
 0x224   : > { %v2002_v47 = vadd.f32 %v2001_v16, %v1913_v39  ;;  %v5245_v16 = vld [vmem:[#allocation8] ss:$0 sm:$0xff] }
 0x225   : > { %v2822_v37 = vpop.f32.mrf.mxu0 }
 0x227   : > { %v2335_v58 = vpop.f32.mrf.mxu1 }
 0x228   : > { %v2234_v29 = vpop.f32.mrf.mxu3  ;;  %2681 = vmatmul.bf16.gmra.mxu2 %v4961_v17  ;;  %v2336_v39 = vadd.f32 %v2335_v58, %v4968_v54 }
 0x229   : > { %v2235_v25 = vadd.f32 %v2234_v29, %v2002_v47 }
 0x22a   : > { %2374 = vmatmul.bf16.gmra.mxu1 %v5518_v3 }
 0x22b   : > { %v5239_v6 = vadd.f32 %v2323_v9, %v2235_v25  ;;  %v2642_v21 = vpop.f32.mrf.mxu2 }
 0x22d   : > { %2770 = vmatmul.bf16.gmra.mxu3 %v4981_v23  ;;  %v2825_v50 = vpop.f32.mrf.mxu0 }
 0x22f   : > { %v2337_v27 = vpop.f32.mrf.mxu1 }
 0x230   : > { %v2731_v60 = vpop.f32.mrf.mxu3  ;;  %2864 = vmatmul.bf16.gmra.mxu0 %v5007_v2  ;;  %v2338_v23 = vadd.f32 %v2337_v27, %v4987_v11 }
 0x231   : > { %v2732_v38 = vadd.f32 %v2731_v60, %v2642_v21 }
 0x233   : > { %v2821_v49 = vadd.f32 %v2820_v12, %v2732_v38  ;;  %v2644_v4 = vpop.f32.mrf.mxu2  ;;  %v5255_v12 = vld [vmem:[%s300_s29] ss:$0 sm:$0xff] }
 0x235   : > { %v2827_v57 = vpop.f32.mrf.mxu0  ;;  %v2900_v9 = vadd.f32 %v2821_v49, %v2336_v39 }
 0x237   : > { %v2340_v47 = vpop.f32.mrf.mxu1  ;;  %v2936_v25 = vadd.f32 %v5245_v16, %v2900_v9 }
 0x238   : > { %v2733_v17 = vpop.f32.mrf.mxu3  ;;  %2686 = vmatmul.bf16.gmra.mxu2 %v5055_v31  ;;  %v2341_v39 = vadd.f32 %v2340_v47, %v5000_v36 }
 0x239   : > { %v2734_v3 = vadd.f32 %v2733_v17, %v2644_v4  ;;  %v2972_v31 = vadd.f32 %v5255_v12, %v2936_v25 }
 0x23a   : > { %2379 = vmatmul.bf16.gmra.mxu1 %v5522_v18 }
 0x23b   : > { %v2823_v29 = vadd.f32 %v2822_v37, %v2734_v3  ;;  %v2647_v21 = vpop.f32.mrf.mxu2 }
 0x23d   : > { %v2901_v54 = vadd.f32 %v2823_v29, %v2338_v23  ;;  %2775 = vmatmul.bf16.gmra.mxu3 %v5013_v0  ;;  %v2830_v58 = vpop.f32.mrf.mxu0 }
 0x23f   : > { %v2937_v11 = vadd.f32 %v5245_v16, %v2901_v54  ;;  %v2342_v27 = vpop.f32.mrf.mxu1 }
 0x240   : > { %v2736_v37 = vpop.f32.mrf.mxu3  ;;  %2869 = vmatmul.bf16.gmra.mxu0 %v5039_v30  ;;  %v2343_v29 = vadd.f32 %v2342_v27, %v5017_v22 }
 0x241   : > { %v2973_v60 = vadd.f32 %v5255_v12, %v2937_v11  ;;  %v2737_v38 = vadd.f32 %v2736_v37, %v2647_v21 }
 0x243   : > { %v3676_v49 = vpack.c.bf16 %v2973_v60, %v2972_v31  ;;  %v2826_v0 = vadd.f32 %v2825_v50, %v2737_v38  ;;  %v2649_v4 = vpop.f32.mrf.mxu2 }
 0x245   : > { %3677 = vst [vmem:[%s5265_s27] sm:$0xff] %v3676_v49   ;;  %v2832_v18 = vpop.f32.mrf.mxu0  ;;  %v2902_v9 = vadd.f32 %v2826_v0, %v2341_v39  ;;  %v5527_v39 = vld [vmem:[#allocation34_spill] sm:$0xff] }
 0x247   : > { %v2345_v23 = vpop.f32.mrf.mxu1  ;;  %v2938_v54 = vadd.f32 %v5245_v16, %v2902_v9 }
 0x248   : > { %v2738_v17 = vpop.f32.mrf.mxu3  ;;  %2691 = vmatmul.bf16.gmra.mxu2 %v5085_v33 }
 0x249   : > { %v2739_v3 = vadd.f32 %v2738_v17, %v2649_v4  ;;  %v2974_v22 = vadd.f32 %v5255_v12, %v2938_v54 }
 0x24a   : > { %2384 = vmatmul.bf16.gmra.mxu1 %v4975_v61 }
 0x24b   : > { %v2828_v25 = vadd.f32 %v2827_v57, %v2739_v3  ;;  %v2652_v11 = vpop.f32.mrf.mxu2 }
 0x24d   : > { %v2903_v21 = vadd.f32 %v2828_v25, %v2343_v29  ;;  %2780 = vmatmul.bf16.gmra.mxu3 %v5045_v55  ;;  %v2835_v50 = vpop.f32.mrf.mxu0  ;;  %v2346_v55 = vadd.f32 %v2345_v23, %v5032_v51 }
 0x24f   : > { %v2939_v36 = vadd.f32 %v5245_v16, %v2903_v21  ;;  %v2347_v33 = vpop.f32.mrf.mxu1 }
 0x250   : > { %v2741_v47 = vpop.f32.mrf.mxu3  ;;  %2874 = vmatmul.bf16.gmra.mxu0 %v5071_v1  ;;  %v2348_v17 = vadd.f32 %v2347_v33, %v5527_v39 }
 0x251   : > { %v2975_v57 = vadd.f32 %v5255_v12, %v2939_v36  ;;  %v2742_v37 = vadd.f32 %v2741_v47, %v2652_v11 }
 0x253   : > { %v3681_v31 = vpack.c.bf16 %v2975_v57, %v2974_v22  ;;  %v2831_v60 = vadd.f32 %v2830_v58, %v2742_v37  ;;  %v2654_v61 = vpop.f32.mrf.mxu2  ;;  %v5528_v22 = vld [vmem:[#allocation35_spill] sm:$0xff] }
 0x255   : > { %3753 = vst [vmem:[%s5265_s27 + $0x8] sm:$0xff] %v3681_v31   ;;  %v2837_v38 = vpop.f32.mrf.mxu0  ;;  %v2904_v49 = vadd.f32 %v2831_v60, %v2346_v55  ;;  %v5529_v60 = vld [vmem:[#allocation36_spill] sm:$0xff] }
 0x257   : > { %v2350_v4 = vpop.f32.mrf.mxu1  ;;  %v2940_v3 = vadd.f32 %v5245_v16, %v2904_v49 }
 0x258   : > { %v2743_v27 = vpop.f32.mrf.mxu3  ;;  %2696 = vmatmul.bf16.gmra.mxu2 %v5058_v40 }
 0x259   : > { %v2744_v0 = vadd.f32 %v2743_v27, %v2654_v61  ;;  %v2976_v54 = vadd.f32 %v5255_v12, %v2940_v3 }
 0x25a   : > { %2389 = vmatmul.bf16.gmra.mxu1 %v5007_v2 }
 0x25b   : > { %v2833_v9 = vadd.f32 %v2832_v18, %v2744_v0  ;;  %v2657_v25 = vpop.f32.mrf.mxu2 }
 0x25d   : > { %v2905_v29 = vadd.f32 %v2833_v9, %v2348_v17  ;;  %2785 = vmatmul.bf16.gmra.mxu3 %v5075_v26  ;;  %v2840_v58 = vpop.f32.mrf.mxu0  ;;  %v2351_v26 = vadd.f32 %v2350_v4, %v5528_v22 }
 0x25f   : > { %v2941_v51 = vadd.f32 %v5245_v16, %v2905_v29  ;;  %v2352_v40 = vpop.f32.mrf.mxu1 }
 0x260   : > { %v2746_v23 = vpop.f32.mrf.mxu3  ;;  %2879 = vmatmul.bf16.gmra.mxu0 %v5098_v63  ;;  %v2353_v61 = vadd.f32 %v2352_v40, %v5529_v60  ;;  %v5531_v40 = vld [vmem:[#allocation38_spill] sm:$0xff] }
 0x261   : > { %v2977_v18 = vadd.f32 %v5255_v12, %v2941_v51  ;;  %v2747_v21 = vadd.f32 %v2746_v23, %v2657_v25  ;;  %v5530_v51 = vld [vmem:[#allocation37_spill] sm:$0xff] }
 0x263   : > { %v3686_v11 = vpack.c.bf16 %v2977_v18, %v2976_v54  ;;  %v2836_v36 = vadd.f32 %v2835_v50, %v2747_v21  ;;  %v2659_v2 = vpop.f32.mrf.mxu2 }
 0x265   : > { %3754 = vst [vmem:[%s5265_s27 + $0x10] sm:$0xff] %v3686_v11   ;;  %v2842_v47 = vpop.f32.mrf.mxu0  ;;  %v2906_v37 = vadd.f32 %v2836_v36, %v2351_v26 }
 0x267   : > { %v2355_v31 = vpop.f32.mrf.mxu1  ;;  %v2942_v27 = vadd.f32 %v5245_v16, %v2906_v37 }
 0x268   : > { %v2748_v57 = vpop.f32.mrf.mxu3  ;;  %2701 = vmatmul.bf16.gmra.mxu2 %v5088_v8 }
 0x269   : > { %v2749_v33 = vadd.f32 %v2748_v57, %v2659_v2  ;;  %v2978_v17 = vadd.f32 %v5255_v12, %v2942_v27 }
 0x26a   : > { %2394 = vmatmul.bf16.gmra.mxu1 %v5039_v30 }
 0x26b   : > { %v2838_v55 = vadd.f32 %v2837_v38, %v2749_v33  ;;  %v2662_v0 = vpop.f32.mrf.mxu2 }
 0x26d   : > { %v2907_v49 = vadd.f32 %v2838_v55, %v2353_v61  ;;  %2790 = vmatmul.bf16.gmra.mxu3 %v5101_v13  ;;  %v2845_v50 = vpop.f32.mrf.mxu0  ;;  %v2356_v13 = vadd.f32 %v2355_v31, %v5530_v51  ;;  %v1052_v31 = vld [vmem:[#allocation2 + $0xd4] sm:$0x1]  ;;  %v5534_v51 = vld [vmem:[#allocation41_spill] sm:$0xff] }
 0x26e   : > { %v2422_v27 = vunpack.c.l.b16 %v1052_v31 }
 0x26f   : > { %v2943_v4 = vadd.f32 %v5245_v16, %v2907_v49  ;;  %v2357_v8 = vpop.f32.mrf.mxu1 }
 0x270   : > { %v2751_v39 = vpop.f32.mrf.mxu3  ;;  %2884 = vmatmul.bf16.gmra.mxu0 %v5119_v24  ;;  %v2358_v11 = vadd.f32 %v2357_v8, %v5531_v40 }
 0x271   : > { %v2979_v38 = vadd.f32 %v5255_v12, %v2943_v4  ;;  %v2752_v9 = vadd.f32 %v2751_v39, %v2662_v0  ;;  %v5533_v4 = vld [vmem:[#allocation39_spill] sm:$0xff] }
 0x273   : > { %v3691_v3 = vpack.c.bf16 %v2979_v38, %v2978_v17  ;;  %v2841_v29 = vadd.f32 %v2840_v58, %v2752_v9  ;;  %v2664_v30 = vpop.f32.mrf.mxu2  ;;  %v5532_v58 = vld [vmem:[#allocation40_spill] sm:$0xff]  ;;  %v2423_v38 = vpack.c.b16 %v2422_v27, %v2422_v27 }
 0x274   : > { %v3599_v17 = vld [vmem:[#allocation2 + $0xcc] sm:$0xff] }
 0x275   : > { %3755 = vst [vmem:[%s5265_s27 + $0x18] sm:$0xff] %v3691_v3   ;;  %v2847_v25 = vpop.f32.mrf.mxu0  ;;  %v2908_v54 = vadd.f32 %v2841_v29, %v2356_v13  ;;  %v2437_v3 = vrot.slane %v3599_v17, 1  ;;  %v2438_v29 = vrot.slane %v2423_v38, 1 }
 0x277   : > { %v2360_v21 = vpop.f32.mrf.mxu1  ;;  %v2944_v2 = vadd.f32 %v5245_v16, %v2908_v54 }
 0x278   : > { %v2753_v23 = vpop.f32.mrf.mxu3  ;;  %2706 = vmatmul.bf16.gmra.mxu2 %v5109_v10  ;;  %v2361_v39 = vadd.f32 %v2360_v21, %v5533_v4  ;;  %v2439_v21 = vsel %vm1406_vm0, %v2437_v3, %v2438_v29 }
 0x279   : > { %v2754_v18 = vadd.f32 %v2753_v23, %v2664_v30 }
 0x27a   : > { %2399 = vmatmul.bf16.gmra.mxu1 %v5071_v1 }
 0x27b   : > { %v2843_v36 = vadd.f32 %v2842_v47, %v2754_v18  ;;  %v2667_v57 = vpop.f32.mrf.mxu2  ;;  %v2980_v47 = vadd.f32 %v5255_v12, %v2944_v2 }
 0x27d   : > { %v2909_v22 = vadd.f32 %v2843_v36, %v2358_v11  ;;  %2795 = vmatmul.bf16.gmra.mxu3 %v5532_v58  ;;  %v2850_v26 = vpop.f32.mrf.mxu0  ;;  %v2427_v11 = vshll.u32 %v3599_v17, 16 }
 0x27f   : > { %v2945_v37 = vadd.f32 %v5245_v16, %v2909_v22  ;;  %v2362_v61 = vpop.f32.mrf.mxu1 }
 0x280   : > { %v2756_v33 = vpop.f32.mrf.mxu3  ;;  %2889 = vmatmul.bf16.gmra.mxu0 %v5140_v62  ;;  %v2363_v13 = vadd.f32 %v2362_v61, %v5534_v51 }
 0x281   : > { %v2981_v10 = vadd.f32 %v5255_v12, %v2945_v37  ;;  %v2757_v60 = vadd.f32 %v2756_v33, %v2667_v57  ;;  %v2425_v57 = vshrl.u32 %v3599_v17, 16  ;;  %v2432_v37 = vshll.u32 %v2423_v38, 16 }
 0x283   : > { %v3696_v55 = vpack.c.bf16 %v2981_v10, %v2980_v47  ;;  %v2846_v1 = vadd.f32 %v2845_v50, %v2757_v60  ;;  %v2669_v0 = vpop.f32.mrf.mxu2  ;;  %v2434_v60 = vrot.slane %v2432_v37, 1 }
 0x285   : > { %3756 = vst [vmem:[%s5265_s27 + $0x20] sm:$0xff] %v3696_v55   ;;  %v2852_v49 = vpop.f32.mrf.mxu0  ;;  %v2910_v8 = vadd.f32 %v2846_v1, %v2361_v39 }
 0x287   : > { %v2365_v30 = vpop.f32.mrf.mxu1  ;;  %v2946_v54 = vadd.f32 %v5245_v16, %v2910_v8 }
 0x288   : > { %v2758_v9 = vpop.f32.mrf.mxu3  ;;  %2711 = vmatmul.bf16.gmra.mxu2 %v5130_v43  ;;  %v2366_v61 = vadd.f32 %v2365_v30, %v5135_v19 }
 0x289   : > { %v2759_v62 = vadd.f32 %v2758_v9, %v2669_v0 }
 0x28a   : > { %2404 = vmatmul.bf16.gmra.mxu1 %v5098_v63  ;;  %v2429_v63 = vrot.slane %v2427_v11, 1 }
 0x28b   : > { %v2848_v23 = vadd.f32 %v2847_v25, %v2759_v62  ;;  %v2672_v40 = vpop.f32.mrf.mxu2  ;;  %v2982_v25 = vadd.f32 %v5255_v12, %v2946_v54 }
 0x28c   : > { %v2430_v10 = vor.u32 %v2429_v63, %v2425_v57 }
 0x28d   : > { %v2911_v50 = vadd.f32 %v2848_v23, %v2363_v13  ;;  %2800 = vmatmul.bf16.gmra.mxu3 %v5143_v34  ;;  %v2855_v18 = vpop.f32.mrf.mxu0 }
 0x28e   : > { %v2435_v4 = vsel %vm1197_vm15, %v2430_v10, %v2434_v60 }
 0x28f   : > { %v2947_v36 = vadd.f32 %v5245_v16, %v2911_v50  ;;  %v2367_v58 = vpop.f32.mrf.mxu1 }
 0x290   : > { %v2761_v2 = vpop.f32.mrf.mxu3  ;;  %2894 = vmatmul.bf16.gmra.mxu0 %v2439_v21  ;;  %v2368_v39 = vadd.f32 %v2367_v58, %v5146_v20 }
 0x291   : > { %v2983_v43 = vadd.f32 %v5255_v12, %v2947_v36  ;;  %v2762_v22 = vadd.f32 %v2761_v2, %v2672_v40 }
 0x293   : > { %v3701_v34 = vpack.c.bf16 %v2983_v43, %v2982_v25  ;;  %v2851_v33 = vadd.f32 %v2850_v26, %v2762_v22  ;;  %v2674_v47 = vpop.f32.mrf.mxu2 }
 0x295   : > { %3757 = vst [vmem:[%s5265_s27 + $0x28] sm:$0xff] %v3701_v34   ;;  %v2857_v31 = vpop.f32.mrf.mxu0  ;;  %v2912_v27 = vadd.f32 %v2851_v33, %v2366_v61 }
 0x297   : > { %v2370_v0 = vpop.f32.mrf.mxu1  ;;  %v2948_v38 = vadd.f32 %v5245_v16, %v2912_v27 }
 0x298   : > { %v2763_v55 = vpop.f32.mrf.mxu3  ;;  %2716 = vmatmul.bf16.gmra.mxu2 %v3599_v17  ;;  %v2371_v54 = vadd.f32 %v2370_v0, %v5152_v45 }
 0x299   : > { %v2764_v1 = vadd.f32 %v2763_v55, %v2674_v47  ;;  %v2984_v29 = vadd.f32 %v5255_v12, %v2948_v38 }
 0x29a   : > { %2409 = vmatmul.bf16.gmra.mxu1 %v5119_v24 }
 0x29b   : > { %v2853_v9 = vadd.f32 %v2852_v49, %v2764_v1  ;;  %v2677_v62 = vpop.f32.mrf.mxu2 }
 0x29d   : > { %v2913_v26 = vadd.f32 %v2853_v9, %v2368_v39  ;;  %2805 = vmatmul.bf16.gmra.mxu3 %v2435_v4  ;;  %v2860_v8 = vpop.f32.mrf.mxu0 }
 0x29f   : > { %v2949_v19 = vadd.f32 %v5245_v16, %v2913_v26  ;;  %v2372_v20 = vpop.f32.mrf.mxu1 }
 0x2a0   : > { %v2766_v3 = vpop.f32.mrf.mxu3  ;;  %v2373_v11 = vadd.f32 %v2372_v20, %v5157_v52 }
 0x2a1   : > { %v2985_v30 = vadd.f32 %v5255_v12, %v2949_v19  ;;  %v2767_v51 = vadd.f32 %v2766_v3, %v2677_v62 }
 0x2a3   : > { %v3706_v13 = vpack.c.bf16 %v2985_v30, %v2984_v29  ;;  %v2856_v49 = vadd.f32 %v2855_v18, %v2767_v51  ;;  %v2679_v23 = vpop.f32.mrf.mxu2 }
 0x2a5   : > { %3758 = vst [vmem:[%s5265_s27 + $0x30] sm:$0xff] %v3706_v13   ;;  %v2862_v17 = vpop.f32.mrf.mxu0  ;;  %v2914_v50 = vadd.f32 %v2856_v49, %v2371_v54 }
 0x2a7   : > { %v2375_v40 = vpop.f32.mrf.mxu1  ;;  %v2950_v2 = vadd.f32 %v5245_v16, %v2914_v50 }
 0x2a8   : > { %v2768_v24 = vpop.f32.mrf.mxu3 }
 0x2a9   : > { %v2769_v21 = vadd.f32 %v2768_v24, %v2679_v23  ;;  %v2986_v57 = vadd.f32 %v5255_v12, %v2950_v2 }
 0x2ab   : > { %v2858_v36 = vadd.f32 %v2857_v31, %v2769_v21  ;;  %v2682_v22 = vpop.f32.mrf.mxu2  ;;  %v2376_v31 = vadd.f32 %v2375_v40, %v5170_v41 }
 0x2ad   : > { %v2915_v25 = vadd.f32 %v2858_v36, %v2373_v11  ;;  %v2865_v43 = vpop.f32.mrf.mxu0 }
 0x2af   : > { %v2951_v58 = vadd.f32 %v5245_v16, %v2915_v25  ;;  %v2377_v37 = vpop.f32.mrf.mxu1 }
 0x2b0   : > { %v2771_v18 = vpop.f32.mrf.mxu3  ;;  %v2378_v27 = vadd.f32 %v2377_v37, %v5173_v46 }
 0x2b1   : > { %v2987_v45 = vadd.f32 %v5255_v12, %v2951_v58  ;;  %v2772_v63 = vadd.f32 %v2771_v18, %v2682_v22 }
 0x2b3   : > { %v3711_v34 = vpack.c.bf16 %v2987_v45, %v2986_v57  ;;  %v2861_v33 = vadd.f32 %v2860_v8, %v2772_v63  ;;  %v2684_v52 = vpop.f32.mrf.mxu2 }
 0x2b5   : > { %3759 = vst [vmem:[%s5265_s27 + $0x38] sm:$0xff] %v3711_v34   ;;  %v2867_v47 = vpop.f32.mrf.mxu0  ;;  %v2916_v60 = vadd.f32 %v2861_v33, %v2376_v31 }
 0x2b7   : > { %v2380_v55 = vpop.f32.mrf.mxu1  ;;  %v2952_v0 = vadd.f32 %v5245_v16, %v2916_v60 }
 0x2b8   : > { %v2773_v10 = vpop.f32.mrf.mxu3  ;;  %v2381_v51 = vadd.f32 %v2380_v55, %v5179_v56 }
 0x2b9   : > { %v2774_v61 = vadd.f32 %v2773_v10, %v2684_v52  ;;  %v2988_v8 = vadd.f32 %v5255_v12, %v2952_v0 }
 0x2bb   : > { %v2863_v1 = vadd.f32 %v2862_v17, %v2774_v61  ;;  %v2687_v9 = vpop.f32.mrf.mxu2 }
 0x2bd   : > { %v2917_v4 = vadd.f32 %v2863_v1, %v2378_v27  ;;  %v2870_v39 = vpop.f32.mrf.mxu0 }
 0x2bf   : > { %v2953_v38 = vadd.f32 %v5245_v16, %v2917_v4  ;;  %v2382_v19 = vpop.f32.mrf.mxu1 }
 0x2c0   : > { %v2776_v26 = vpop.f32.mrf.mxu3  ;;  %v2383_v23 = vadd.f32 %v2382_v19, %v5182_v48 }
 0x2c1   : > { %v2989_v41 = vadd.f32 %v5255_v12, %v2953_v38  ;;  %v2777_v62 = vadd.f32 %v2776_v26, %v2687_v9 }
 0x2c3   : > { %v3716_v3 = vpack.c.bf16 %v2989_v41, %v2988_v8  ;;  %v2866_v29 = vadd.f32 %v2865_v43, %v2777_v62  ;;  %v2689_v30 = vpop.f32.mrf.mxu2 }
 0x2c5   : > { %3760 = vst [vmem:[%s5265_s27 + $0x40] sm:$0xff] %v3716_v3   ;;  %v2872_v46 = vpop.f32.mrf.mxu0  ;;  %v2918_v13 = vadd.f32 %v2866_v29, %v2381_v51 }
 0x2c7   : > { %v2385_v17 = vpop.f32.mrf.mxu1  ;;  %v2954_v24 = vadd.f32 %v5245_v16, %v2918_v13 }
 0x2c8   : > { %v2778_v20 = vpop.f32.mrf.mxu3  ;;  %v2386_v48 = vadd.f32 %v2385_v17, %v5188_v15 }
 0x2c9   : > { %v2779_v49 = vadd.f32 %v2778_v20, %v2689_v30  ;;  %v2990_v2 = vadd.f32 %v5255_v12, %v2954_v24 }
 0x2cb   : > { %v2868_v54 = vadd.f32 %v2867_v47, %v2779_v49  ;;  %v2692_v21 = vpop.f32.mrf.mxu2 }
 0x2cd   : > { %v2919_v50 = vadd.f32 %v2868_v54, %v2383_v23  ;;  %v2875_v36 = vpop.f32.mrf.mxu0 }
 0x2cf   : > { %v2955_v40 = vadd.f32 %v5245_v16, %v2919_v50  ;;  %v2387_v43 = vpop.f32.mrf.mxu1 }
 0x2d0   : > { %v2781_v11 = vpop.f32.mrf.mxu3  ;;  %v2388_v33 = vadd.f32 %v2387_v43, %v5192_v44 }
 0x2d1   : > { %v2991_v56 = vadd.f32 %v5255_v12, %v2955_v40  ;;  %v2782_v25 = vadd.f32 %v2781_v11, %v2692_v21 }
 0x2d3   : > { %v3721_v22 = vpack.c.bf16 %v2991_v56, %v2990_v2  ;;  %v2871_v58 = vadd.f32 %v2870_v39, %v2782_v25  ;;  %v2694_v18 = vpop.f32.mrf.mxu2 }
 0x2d5   : > { %3761 = vst [vmem:[%s5265_s27 + $0x48] sm:$0xff] %v3721_v22   ;;  %v2920_v45 = vadd.f32 %v2871_v58, %v2386_v48  ;;  %v2877_v34 = vpop.f32.mrf.mxu0 }
 0x2d7   : > { %v2390_v37 = vpop.f32.mrf.mxu1  ;;  %v2956_v52 = vadd.f32 %v5245_v16, %v2920_v45 }
 0x2d8   : > { %v2783_v57 = vpop.f32.mrf.mxu3  ;;  %v2391_v44 = vadd.f32 %v2390_v37, %v5198_v35 }
 0x2d9   : > { %v2784_v63 = vadd.f32 %v2783_v57, %v2694_v18  ;;  %v2992_v55 = vadd.f32 %v5255_v12, %v2956_v52 }
 0x2db   : > { %v2873_v47 = vadd.f32 %v2872_v46, %v2784_v63  ;;  %v2697_v10 = vpop.f32.mrf.mxu2 }
 0x2dd   : > { %v2921_v31 = vadd.f32 %v2873_v47, %v2388_v33  ;;  %v2880_v4 = vpop.f32.mrf.mxu0 }
 0x2df   : > { %v2957_v60 = vadd.f32 %v5245_v16, %v2921_v31  ;;  %v2392_v1 = vpop.f32.mrf.mxu1 }
 0x2e0   : > { %v2786_v61 = vpop.f32.mrf.mxu3  ;;  %v2393_v62 = vadd.f32 %v2392_v1, %v5201_v14 }
 0x2e1   : > { %v2993_v15 = vadd.f32 %v5255_v12, %v2957_v60  ;;  %v2787_v27 = vadd.f32 %v2786_v61, %v2697_v10 }
 0x2e3   : > { %v3726_v0 = vpack.c.bf16 %v2993_v15, %v2992_v55  ;;  %v2876_v39 = vadd.f32 %v2875_v36, %v2787_v27  ;;  %v2699_v9 = vpop.f32.mrf.mxu2 }
 0x2e5   : > { %3762 = vst [vmem:[%s5265_s27 + $0x50] sm:$0xff] %v3726_v0   ;;  %v2922_v26 = vadd.f32 %v2876_v39, %v2391_v44  ;;  %v2882_v46 = vpop.f32.mrf.mxu0 }
 0x2e7   : > { %v2395_v41 = vpop.f32.mrf.mxu1  ;;  %v2958_v3 = vadd.f32 %v5245_v16, %v2922_v26 }
 0x2e8   : > { %v2788_v38 = vpop.f32.mrf.mxu3  ;;  %v2396_v14 = vadd.f32 %v2395_v41, %v5207_v7 }
 0x2e9   : > { %v2789_v8 = vadd.f32 %v2788_v38, %v2699_v9  ;;  %v2994_v13 = vadd.f32 %v5255_v12, %v2958_v3 }
 0x2eb   : > { %v2878_v19 = vadd.f32 %v2877_v34, %v2789_v8  ;;  %v2702_v30 = vpop.f32.mrf.mxu2 }
 0x2ed   : > { %v2923_v29 = vadd.f32 %v2878_v19, %v2393_v62  ;;  %v2885_v21 = vpop.f32.mrf.mxu0 }
 0x2ef   : > { %v2959_v51 = vadd.f32 %v5245_v16, %v2923_v29  ;;  %v2397_v17 = vpop.f32.mrf.mxu1 }
 0x2f0   : > { %v2791_v20 = vpop.f32.mrf.mxu3  ;;  %v2398_v2 = vadd.f32 %v2397_v17, %v5210_v5 }
 0x2f1   : > { %v2995_v35 = vadd.f32 %v5255_v12, %v2959_v51  ;;  %v2792_v49 = vadd.f32 %v2791_v20, %v2702_v30 }
 0x2f3   : > { %v3731_v23 = vpack.c.bf16 %v2995_v35, %v2994_v13  ;;  %v2881_v54 = vadd.f32 %v2880_v4, %v2792_v49  ;;  %v2704_v24 = vpop.f32.mrf.mxu2 }
 0x2f5   : > { %3763 = vst [vmem:[%s5265_s27 + $0x58] sm:$0xff] %v3731_v23   ;;  %v2924_v40 = vadd.f32 %v2881_v54, %v2396_v14  ;;  %v2887_v63 = vpop.f32.mrf.mxu0 }
 0x2f7   : > { %v2400_v36 = vpop.f32.mrf.mxu1  ;;  %v2960_v25 = vadd.f32 %v5245_v16, %v2924_v40 }
 0x2f8   : > { %v2793_v50 = vpop.f32.mrf.mxu3  ;;  %v2401_v5 = vadd.f32 %v2400_v36, %v5216_v59 }
 0x2f9   : > { %v2794_v11 = vadd.f32 %v2793_v50, %v2704_v24  ;;  %v2996_v48 = vadd.f32 %v5255_v12, %v2960_v25 }
 0x2fb   : > { %v2883_v56 = vadd.f32 %v2882_v46, %v2794_v11  ;;  %v2707_v22 = vpop.f32.mrf.mxu2 }
 0x2fd   : > { %v2925_v43 = vadd.f32 %v2883_v56, %v2398_v2  ;;  %v2890_v55 = vpop.f32.mrf.mxu0 }
 0x2ff   : > { %v2961_v58 = vadd.f32 %v5245_v16, %v2925_v43  ;;  %v2402_v45 = vpop.f32.mrf.mxu1 }
 0x300   : > { %v2796_v18 = vpop.f32.mrf.mxu3  ;;  %v2403_v60 = vadd.f32 %v2402_v45, %v5219_v53 }
 0x301   : > { %v2997_v7 = vadd.f32 %v5255_v12, %v2961_v58  ;;  %v2797_v57 = vadd.f32 %v2796_v18, %v2707_v22 }
 0x303   : > { %v3736_v37 = vpack.c.bf16 %v2997_v7, %v2996_v48  ;;  %v2886_v34 = vadd.f32 %v2885_v21, %v2797_v57  ;;  %v2709_v33 = vpop.f32.mrf.mxu2 }
 0x305   : > { %3764 = vst [vmem:[%s5265_s27 + $0x60] sm:$0xff] %v3736_v37   ;;  %v2926_v52 = vadd.f32 %v2886_v34, %v2401_v5  ;;  %v2892_v8 = vpop.f32.mrf.mxu0 }
 0x307   : > { %v2405_v10 = vpop.f32.mrf.mxu1  ;;  %v2962_v15 = vadd.f32 %v5245_v16, %v2926_v52 }
 0x308   : > { %v2798_v47 = vpop.f32.mrf.mxu3  ;;  %v2406_v41 = vadd.f32 %v2405_v10, %v5225_v28 }
 0x309   : > { %v2799_v31 = vadd.f32 %v2798_v47, %v2709_v33  ;;  %v2998_v39 = vadd.f32 %v5255_v12, %v2962_v15 }
 0x30b   : > { %v2888_v61 = vadd.f32 %v2887_v63, %v2799_v31  ;;  %v2712_v1 = vpop.f32.mrf.mxu2 }
 0x30d   : > { %v2927_v27 = vadd.f32 %v2888_v61, %v2403_v60  ;;  %v2895_v49 = vpop.f32.mrf.mxu0 }
 0x30f   : > { %v2963_v0 = vadd.f32 %v5245_v16, %v2927_v27  ;;  %v2407_v38 = vpop.f32.mrf.mxu1 }
 0x310   : > { %v2801_v4 = vpop.f32.mrf.mxu3  ;;  %v2408_v29 = vadd.f32 %v2407_v38, %v5229_v42 }
 0x311   : > { %v2999_v59 = vadd.f32 %v5255_v12, %v2963_v0  ;;  %v2802_v9 = vadd.f32 %v2801_v4, %v2712_v1 }
 0x313   : > { %v3741_v44 = vpack.c.bf16 %v2999_v59, %v2998_v39  ;;  %v2891_v26 = vadd.f32 %v2890_v55, %v2802_v9  ;;  %v2714_v53 = vpop.f32.mrf.mxu2 }
 0x315   : > { %3765 = vst [vmem:[%s5265_s27 + $0x68] sm:$0xff] %v3741_v44   ;;  %v2928_v19 = vadd.f32 %v2891_v26, %v2406_v41  ;;  %v2897_v2 = vpop.f32.mrf.mxu0 }
 0x317   : > { %v2964_v46 = vadd.f32 %v5245_v16, %v2928_v19  ;;  %v2410_v20 = vpop.f32.mrf.mxu1 }
 0x318   : > { %v2803_v62 = vpop.f32.mrf.mxu3  ;;  %v2411_v50 = vadd.f32 %v2410_v20, %v5235_v32 }
 0x319   : > { %v2804_v3 = vadd.f32 %v2803_v62, %v2714_v53  ;;  %v3000_v23 = vadd.f32 %v5255_v12, %v2964_v46 }
 0x31b   : > { %v2893_v30 = vadd.f32 %v2892_v8, %v2804_v3  ;;  %v2717_v13 = vpop.f32.mrf.mxu2 }
 0x31d   : > { %v2929_v51 = vadd.f32 %v2893_v30, %v2408_v29 }
 0x31f   : > { %v2965_v35 = vadd.f32 %v5245_v16, %v2929_v51  ;;  %v2412_v21 = vpop.f32.mrf.mxu1 }
 0x320   : > { %v2806_v17 = vpop.f32.mrf.mxu3  ;;  %v2413_v56 = vadd.f32 %v2412_v21, %v5239_v6 }
 0x321   : > { %v3001_v28 = vadd.f32 %v5255_v12, %v2965_v35  ;;  %v2807_v54 = vadd.f32 %v2806_v17, %v2717_v13 }
 0x323   : > { %v3746_v24 = vpack.c.bf16 %v3001_v28, %v3000_v23  ;;  %v2896_v42 = vadd.f32 %v2895_v49, %v2807_v54  ;;  %v2719_v14 = vpop.f32.mrf.mxu2 }
 0x325   : > { %3766 = vst [vmem:[%s5265_s27 + $0x70] sm:$0xff] %v3746_v24   ;;  %v2930_v11 = vadd.f32 %v2896_v42, %v2411_v50 }
 0x327   : > { %v2966_v43 = vadd.f32 %v5245_v16, %v2930_v11 }
 0x328   : > { %v2808_v40 = vpop.f32.mrf.mxu3 }
 0x329   : > { %v2809_v36 = vadd.f32 %v2808_v40, %v2719_v14  ;;  %v3002_v58 = vadd.f32 %v5255_v12, %v2966_v43 }
 0x32b   : > { %v2898_v25 = vadd.f32 %v2897_v2, %v2809_v36 }
 0x32d   : > { %v2931_v22 = vadd.f32 %v2898_v25, %v2413_v56 }
 0x32f   : > { %v2967_v32 = vadd.f32 %v5245_v16, %v2931_v22 }
 0x331   : > { %v3003_v18 = vadd.f32 %v5255_v12, %v2967_v32 }
 0x333   : > { %v3751_v6 = vpack.c.bf16 %v3003_v18, %v3002_v58 }
 0x335   : > { %3767 = vst [vmem:[%s5265_s27 + $0x78] sm:$0xff] %v3751_v6  }
 0x336   : > { %4015 = shalt.err (!%p4012_p4)
}
 0x337   : > { %s4081_s14 = smov 64   ;;  %s4082_s9 = smov 4  }
 0x338   : > { %3802 = dma.vmem_to_hbm [thread:$0]  (%p4183_p2), %s3083_s11, 2048, %s3085_s12, %s3069_s18, %s4081_s14, %s4081_s14, %s4082_s9  }
 0x339 PF: > { %s3099_s10 = sand.u32 1, %s4054_s15   ;;  %p3816_p6 = pnand %p3207_p10, %p4153_p5 }
 0x33a   : > { %s3100_s27 = scalar_lea.sflag [#allocation5], %s3099_s10 }
 0x33b   : > { %p3817_p8 = pneg %p3816_p6 }
 0x33d   : > { %4049 = dma.done.wait (%p3817_p8), %s3100_s27, 2048  }
 0x33e   : > { %4051 = vsyncadd (%p3817_p8), %s3100_s27, 4294965248  ;;  %s21_s20 = sadd.s32 1, %s4074_s20   ;;  %s5535_s15 = smov %s4058_s16 }
 0x33f   : > { %p18_p9 = scmp.ge.s32.totalorder %s21_s20, 4   ;;  %s5536_s16 = smov %s4062_s17 }
 0x340   : > { %s5537_s17 = smov %s4193_s30  ;;  %s5538_s18 = smov %s4070_s19 }
 0x341   : > { %s5539_s19 = smov %s5541_s13  ;;  %20 = sbr.rel (!%p18_p9) target bundleno = 9 (0x9), region = 96 }
 0x346   :  { %3106 = vsyncpa [#allocation4], 1 }
 0x347   :  { %3108 = vsyncpa [#allocation4 + $0x1], 1 }
 0x348   :  { %3109 = vsyncpa [#allocation7], 1 }
 0x349   :  { %3110 = vsyncpa [#allocation5], 1 }
 0x34a   :  { %3112 = vsyncpa [#allocation5 + $0x1], 1 }

</bundles_post_ra>
